<compile_context>
chip_gen: v6e
topology: v6e:2x2x1
jax: 0.10.0
libtpu: 0.0.40
codegen_flags: <defaults>
</compile_context>

<pallas_src>
import functools
import math

import jax
import jax.numpy as jnp
from jax.experimental import pallas as pl
from jax.experimental.pallas import tpu as pltpu

# ---------------------------------------------------------------------------
# small synthetic "BERT" config (the real module loads a pretrained checkpoint;
# here parameters are initialized deterministically in-script).
# ---------------------------------------------------------------------------
VOCAB = 100
MAX_POS = 16
HIDDEN = 32
NUM_HEADS = 4
NUM_LAYERS = 2
INTERMEDIATE = 64
N_CLASSES = 3
LN_EPS = 1e-12
LANE = 128            # lane-dense padding width for packed vectors / logits

BATCH = 2
SEQ = 8


def _layernorm(x, gamma, beta, eps=LN_EPS):
    mu = jnp.mean(x, axis=-1, keepdims=True)
    var = jnp.mean((x - mu) ** 2, axis=-1, keepdims=True)
    return (x - mu) * jax.lax.rsqrt(var + eps) * gamma + beta


# ---------------------------------------------------------------------------
# Single fused Pallas kernel: embeddings + all encoder layers + pooler +
# classifier. One grid step covers `batch_block` batch elements.
# ---------------------------------------------------------------------------
def fused_bert_kernel(ids_ref,                 # SMEM scalar prefetch (B, S) int32
                      mask_ref,                # (BB, 1, S) f32
                      word_ref,                # (VOCAB, 1, H) f32, resident
                      postype_ref,             # (MAX_POS, H) f32, resident (pos + type0)
                      wqkv_ref, wo_ref, wi_ref, wo2_ref, vecs_ref,
                      wp_ref, wc_ref, misc_ref,
                      out_ref,                 # (BB, 1, LANE) f32
                      x_scr, ctx_scr,          # VMEM scratch (BB*S, H) f32
                      *, num_heads, head_dim, num_layers, batch_block, seq, hidden):
    H, S, BB = hidden, seq, batch_block
    I = wi_ref.shape[2]
    scale = 1.0 / math.sqrt(head_dim)
    base = pl.program_id(0) * BB             # first batch element of this step

    # ---- fused embeddings: per-row token gather + position/type add ----
    # TODO(synk): token_type ids hard-coded to segment 0 (folded into postype_ref).
    for bb in range(BB):
        for s in range(S):
            tok = ids_ref[base + bb, s]                        # SMEM scalar
            x_scr[pl.ds(bb * S + s, 1), :] = (
                word_ref[tok] + postype_ref[s:s + 1, :])       # (1, H)

    emb_g = misc_ref[2:3, :H]
    emb_b = misc_ref[3:4, :H]
    x = _layernorm(x_scr[...], emb_g, emb_b)                   # (BB*S, H) f32

    # BERT-style additive mask, broadcast hoisted out of the layer loop
    # (JAX does not CSE broadcast_in_dim).
    neg_bias = [jnp.broadcast_to((mask_ref[bb] - 1.0) * 10000.0, (S, S))
                for bb in range(BB)]

    # ---- encoder layers (static Python loop, weights indexed statically) ----
    for l in range(num_layers):
        wqkv = wqkv_ref[l]                    # (H, 128) bf16, cols >= 3H are zero
        wo = wo_ref[l]                        # (H, H)  bf16
        wi = wi_ref[l]                        # (H, I)  bf16
        wo2 = wo2_ref[l]                      # (I, H)  bf16
        vec = vecs_ref[l]                     # (8, 128) f32 packed small vectors
        bqkv = vec[0:1, :]                    # padded to 128 lanes (zeros past 3H)
        bo, g1, b1 = vec[1:2, :H], vec[2:3, :H], vec[3:4, :H]
        bi = vec[4:5, :I]
        bo2, g2, b2 = vec[5:6, :H], vec[6:7, :H], vec[7:8, :H]

        # fused QKV projection, lane-dense 128-wide output slab, f32 accumulate
        qkv = jnp.dot(x.astype(jnp.bfloat16), wqkv,
                      preferred_element_type=jnp.float32) + bqkv   # (BB*S, 128)

        # attention: static unrolled loop over (batch, head); lane slices only,
        # no (S, h, d) reshape / transposed batched einsum relayouts.
        for bb in range(BB):
            r = bb * S
            for h in range(num_heads):
                c = h * head_dim
                q = qkv[r:r + S, c:c + head_dim] * scale           # (S, d)
                k = qkv[r:r + S, H + c:H + c + head_dim]           # (S, d)
                v = qkv[r:r + S, 2 * H + c:2 * H + c + head_dim]   # (S, d)
                s_ = jax.lax.dot_general(
                    q, k, (((1,), (1,)), ((), ())),
                    preferred_element_type=jnp.float32) + neg_bias[bb]
                s_ = s_ - jnp.max(s_, axis=-1, keepdims=True)
                p = jnp.exp(s_)
                p = p / jnp.sum(p, axis=-1, keepdims=True)         # exact softmax
                ctx_scr[r:r + S, c:c + head_dim] = jnp.dot(
                    p, v, preferred_element_type=jnp.float32)

        attn = jnp.dot(ctx_scr[...].astype(jnp.bfloat16), wo,
                       preferred_element_type=jnp.float32) + bo
        h1 = _layernorm(x + attn, g1, b1)

        # TODO(synk): BERT uses exact erf-GELU; tanh approximation used here.
        ff = jax.nn.gelu(
            jnp.dot(h1.astype(jnp.bfloat16), wi,
                    preferred_element_type=jnp.float32) + bi,
            approximate=True)
        ff = jnp.dot(ff.astype(jnp.bfloat16), wo2,
                     preferred_element_type=jnp.float32) + bo2
        x = _layernorm(h1 + ff, g2, b2)

    # ---- pooler ([CLS] token) + dropout(eval = identity) + classifier head ----
    # TODO(synk): Dropout(p=0.3) is identity at inference; training mode not implemented.
    cls = jnp.concatenate([x[bb * S:bb * S + 1, :] for bb in range(BB)], axis=0)
    pooled = jnp.tanh(
        jnp.dot(cls.astype(jnp.bfloat16), wp_ref[...],
                preferred_element_type=jnp.float32) + misc_ref[0:1, :H])
    logits = jnp.dot(pooled.astype(jnp.bfloat16), wc_ref[...],
                     preferred_element_type=jnp.float32) + misc_ref[1:2, :]
    for bb in range(BB):                                   # lane-dense (1,128) stores
        out_ref[bb] = logits[bb:bb + 1, :].astype(out_ref.dtype)


def bert_head_fused(input_ids, mask3, params, *, batch_block):
    """input_ids: (B,S) int32, mask3: (B,1,S) f32. Returns (B, 1, 128) logits."""
    B, S = input_ids.shape
    H = HIDDEN
    L = params["wqkv"].shape[0]
    BB = batch_block
    assert B % BB == 0

    kernel = functools.partial(
        fused_bert_kernel,
        num_heads=NUM_HEADS, head_dim=H // NUM_HEADS, num_layers=L,
        batch_block=BB, seq=S, hidden=H)

    def rep(arr):  # whole array resident, same block every grid step
        nd = arr.ndim
        return pl.BlockSpec(arr.shape, lambda b, ids, _nd=nd: (0,) * _nd)

    resident = (params["word_emb"], params["pos_type_emb"],
                params["wqkv"], params["wo"], params["wi"], params["wo2"],
                params["vecs"], params["wp"], params["wc_pad"], params["misc"])

    in_specs = [pl.BlockSpec((BB, 1, S), lambda b, ids: (b, 0, 0))]
    in_specs += [rep(a) for a in resident]

    grid_spec = pltpu.PrefetchScalarGridSpec(
        num_scalar_prefetch=1,                 # input_ids -> SMEM
        grid=(B // BB,),
        in_specs=in_specs,
        out_specs=pl.BlockSpec((BB, 1, LANE), lambda b, ids: (b, 0, 0)),
        scratch_shapes=[pltpu.VMEM((BB * S, H), jnp.float32),   # gathered embeddings
                        pltpu.VMEM((BB * S, H), jnp.float32)])  # attention context

    return pl.pallas_call(
        kernel,
        out_shape=jax.ShapeDtypeStruct((B, 1, LANE), jnp.float32),
        grid_spec=grid_spec,
        compiler_params=pltpu.CompilerParams(
            dimension_semantics=("parallel",)),
    )(input_ids, mask3, *resident)


# ---------------------------------------------------------------------------
# Parameter init (deterministic, synthetic, already stacked/packed/padded).
# Encoder / head weights in bfloat16 (f32 accumulation on the MXU).
# ---------------------------------------------------------------------------
def init_params(key):
    keys = iter(jax.random.split(key, 16))

    def w(shape, dtype=jnp.bfloat16):
        return (0.02 * jax.random.normal(next(keys), shape)).astype(dtype)

    H, I, L = HIDDEN, INTERMEDIATE, NUM_LAYERS

    # fused Q|K|V projection padded to 128 output lanes (cols >= 3H exactly zero)
    wqkv = jnp.zeros((L, H, LANE), jnp.bfloat16).at[:, :, :3 * H].set(w((L, H, 3 * H)))

    # packed per-layer vectors, rows = [bqkv, bo, g1, b1, bi, bo2, g2, b2]
    vecs = jnp.zeros((L, 8, LANE), jnp.float32)
    vecs = vecs.at[:, 2, :H].set(1.0)   # attention LN gamma
    vecs = vecs.at[:, 6, :H].set(1.0)   # FFN LN gamma

    # classifier weight padded to 128 output lanes (cols >= N_CLASSES exactly zero;
    # must be enforced when loading a real checkpoint)
    wc_pad = jnp.zeros((H, LANE), jnp.bfloat16).at[:, :N_CLASSES].set(w((H, N_CLASSES)))

    # misc packed vectors: row0 pooler bias, row1 classifier bias,
    # row2 embedding-LN gamma, row3 embedding-LN beta
    misc = jnp.zeros((4, LANE), jnp.float32)
    misc = misc.at[2, :H].set(1.0)

    word_emb = w((VOCAB, H), jnp.float32).reshape(VOCAB, 1, H)  # leading gather axis
    pos_emb = w((MAX_POS, H), jnp.float32)
    type_emb = w((2, H), jnp.float32)
    pos_type_emb = pos_emb + type_emb[0][None, :]   # segment id 0 folded in

    return {
        "word_emb": word_emb,
        "pos_type_emb": pos_type_emb,
        "wqkv": wqkv,
        "wo": w((L, H, H)),
        "wi": w((L, H, I)),
        "wo2": w((L, I, H)),
        "vecs": vecs,
        "wp": w((H, H)),                   # pooler dense
        "wc_pad": wc_pad,                  # self.out = nn.Linear(hidden, n_classes)
        "misc": misc,
    }


def review_classifier_forward(params, input_ids, attention_mask, *, batch_block):
    B, S = input_ids.shape
    mask3 = attention_mask.astype(jnp.float32).reshape(B, 1, S)
    logits_pad = bert_head_fused(input_ids, mask3, params,
                                 batch_block=batch_block)       # (B, 1, 128)
    return logits_pad[:, 0, :N_CLASSES]                         # (B, n_classes)


def _pick_batch_block(batch):
    """v7x has 2 TensorCores -> keep a batch-parallel grid (block=1).
    v5e/v6e are single-TC -> fold the whole batch into one grid step."""
    try:
        kind = jax.devices()[0].device_kind.lower()
    except Exception:
        kind = ""
    if "v7" in kind or "7x" in kind:
        return 1
    return batch


if __name__ == "__main__":
    key = jax.random.PRNGKey(0)
    pkey, ikey = jax.random.split(key)
    params = init_params(pkey)

    input_ids = jax.random.randint(ikey, (BATCH, SEQ), 0, VOCAB, dtype=jnp.int32)
    attention_mask = jnp.array(
        [[1] * SEQ, [1] * (SEQ - 3) + [0] * 3], dtype=jnp.int32)

    bb = _pick_batch_block(BATCH)
    forward = jax.jit(functools.partial(review_classifier_forward, batch_block=bb))
    logits = forward(params, input_ids, attention_mask)
    logits = jax.block_until_ready(logits)
    assert logits.shape == (BATCH, N_CLASSES)
    assert bool(jnp.all(jnp.isfinite(logits)))
    print("KERNEL_OK")
</pallas_src>

<mosaic_0001>
module attributes {stable_mosaic.version = 11 : i64} {
  func.func @fused_bert_kernel(%arg0: i32, %arg1: memref<2x8xi32, #tpu.memory_space<smem>>, %arg2: memref<2x1x8xf32, #tpu.memory_space<vmem>>, %arg3: memref<100x1x32xf32, #tpu.memory_space<vmem>>, %arg4: memref<16x32xf32, #tpu.memory_space<vmem>>, %arg5: memref<2x32x128xbf16, #tpu.memory_space<vmem>>, %arg6: memref<2x32x32xbf16, #tpu.memory_space<vmem>>, %arg7: memref<2x32x64xbf16, #tpu.memory_space<vmem>>, %arg8: memref<2x64x32xbf16, #tpu.memory_space<vmem>>, %arg9: memref<2x8x128xf32, #tpu.memory_space<vmem>>, %arg10: memref<32x32xbf16, #tpu.memory_space<vmem>>, %arg11: memref<32x128xbf16, #tpu.memory_space<vmem>>, %arg12: memref<4x128xf32, #tpu.memory_space<vmem>>, %arg13: memref<2x1x128xf32, #tpu.memory_space<vmem>>, %arg14: memref<16x32xf32, #tpu.memory_space<vmem>>, %arg15: memref<16x32xf32, #tpu.memory_space<vmem>>) attributes {dimension_semantics = [#tpu.dimension_semantics<parallel>], iteration_bounds = array<i64: 1>, scalar_prefetch = 1 : i64, scratch_operands = 2 : i64, tpu.core_type = #tpu.core_type<tc>, window_params = [{transform_indices = @transform_0, window_bounds = array<i64: 2, 1, 8>}, {pipeline_mode = #tpu.pipeline_mode<synchronous>, transform_indices = @transform_1, window_bounds = array<i64: 100, 1, 32>}, {pipeline_mode = #tpu.pipeline_mode<synchronous>, transform_indices = @transform_2, window_bounds = array<i64: 16, 32>}, {pipeline_mode = #tpu.pipeline_mode<synchronous>, transform_indices = @transform_3, window_bounds = array<i64: 2, 32, 128>}, {pipeline_mode = #tpu.pipeline_mode<synchronous>, transform_indices = @transform_4, window_bounds = array<i64: 2, 32, 32>}, {pipeline_mode = #tpu.pipeline_mode<synchronous>, transform_indices = @transform_5, window_bounds = array<i64: 2, 32, 64>}, {pipeline_mode = #tpu.pipeline_mode<synchronous>, transform_indices = @transform_6, window_bounds = array<i64: 2, 64, 32>}, {pipeline_mode = #tpu.pipeline_mode<synchronous>, transform_indices = @transform_7, window_bounds = array<i64: 2, 8, 128>}, {pipeline_mode = #tpu.pipeline_mode<synchronous>, transform_indices = @transform_8, window_bounds = array<i64: 32, 32>}, {pipeline_mode = #tpu.pipeline_mode<synchronous>, transform_indices = @transform_9, window_bounds = array<i64: 32, 128>}, {pipeline_mode = #tpu.pipeline_mode<synchronous>, transform_indices = @transform_10, window_bounds = array<i64: 4, 128>}, {transform_indices = @transform_11, window_bounds = array<i64: 2, 1, 128>}]} {
    %c2_i32 = arith.constant 2 : i32
    %0 = arith.muli %arg0, %c2_i32 : i32
    %c0_i32 = arith.constant 0 : i32
    %1 = arith.addi %0, %c0_i32 : i32
    %2 = arith.index_cast %1 : i32 to index
    %c0 = arith.constant 0 : index
    %3 = memref.load %arg1[%2, %c0] : memref<2x8xi32, #tpu.memory_space<smem>>
    %4 = arith.index_cast %3 : i32 to index
    %c0_0 = arith.constant 0 : index
    %c0_1 = arith.constant 0 : index
    %5 = vector.load %arg3[%4, %c0_0, %c0_1] : memref<100x1x32xf32, #tpu.memory_space<vmem>>, vector<1x1x32xf32>
    %6 = vector.shape_cast %5 : vector<1x1x32xf32> to vector<1x32xf32>
    %c0_2 = arith.constant 0 : index
    %c0_3 = arith.constant 0 : index
    %7 = vector.load %arg4[%c0_2, %c0_3] : memref<16x32xf32, #tpu.memory_space<vmem>>, vector<1x32xf32>
    %8 = arith.addf %6, %7 : vector<1x32xf32>
    %c0_4 = arith.constant 0 : index
    %c0_5 = arith.constant 0 : index
    %9 = vector.load %arg14[%c0_4, %c0_5] : memref<16x32xf32, #tpu.memory_space<vmem>>, vector<1x32xf32>
    tpu.vector_store %arg14[%c0_4, %c0_5], %8 {strides = array<i32>} : memref<16x32xf32, #tpu.memory_space<vmem>>, vector<1x32xf32>,
    %c0_i32_6 = arith.constant 0 : i32
    %10 = arith.addi %0, %c0_i32_6 : i32
    %11 = arith.index_cast %10 : i32 to index
    %c1 = arith.constant 1 : index
    %12 = memref.load %arg1[%11, %c1] : memref<2x8xi32, #tpu.memory_space<smem>>
    %13 = arith.index_cast %12 : i32 to index
    %c0_7 = arith.constant 0 : index
    %c0_8 = arith.constant 0 : index
    %14 = vector.load %arg3[%13, %c0_7, %c0_8] : memref<100x1x32xf32, #tpu.memory_space<vmem>>, vector<1x1x32xf32>
    %15 = vector.shape_cast %14 : vector<1x1x32xf32> to vector<1x32xf32>
    %c1_9 = arith.constant 1 : index
    %c0_10 = arith.constant 0 : index
    %16 = vector.load %arg4[%c1_9, %c0_10] : memref<16x32xf32, #tpu.memory_space<vmem>>, vector<1x32xf32>
    %17 = arith.addf %15, %16 : vector<1x32xf32>
    %c1_11 = arith.constant 1 : index
    %c0_12 = arith.constant 0 : index
    %18 = vector.load %arg14[%c1_11, %c0_12] : memref<16x32xf32, #tpu.memory_space<vmem>>, vector<1x32xf32>
    tpu.vector_store %arg14[%c1_11, %c0_12], %17 {strides = array<i32>} : memref<16x32xf32, #tpu.memory_space<vmem>>, vector<1x32xf32>,
    %c0_i32_13 = arith.constant 0 : i32
    %19 = arith.addi %0, %c0_i32_13 : i32
    %20 = arith.index_cast %19 : i32 to index
    %c2 = arith.constant 2 : index
    %21 = memref.load %arg1[%20, %c2] : memref<2x8xi32, #tpu.memory_space<smem>>
    %22 = arith.index_cast %21 : i32 to index
    %c0_14 = arith.constant 0 : index
    %c0_15 = arith.constant 0 : index
    %23 = vector.load %arg3[%22, %c0_14, %c0_15] : memref<100x1x32xf32, #tpu.memory_space<vmem>>, vector<1x1x32xf32>
    %24 = vector.shape_cast %23 : vector<1x1x32xf32> to vector<1x32xf32>
    %c2_16 = arith.constant 2 : index
    %c0_17 = arith.constant 0 : index
    %25 = vector.load %arg4[%c2_16, %c0_17] : memref<16x32xf32, #tpu.memory_space<vmem>>, vector<1x32xf32>
    %26 = arith.addf %24, %25 : vector<1x32xf32>
    %c2_18 = arith.constant 2 : index
    %c0_19 = arith.constant 0 : index
    %27 = vector.load %arg14[%c2_18, %c0_19] : memref<16x32xf32, #tpu.memory_space<vmem>>, vector<1x32xf32>
    tpu.vector_store %arg14[%c2_18, %c0_19], %26 {strides = array<i32>} : memref<16x32xf32, #tpu.memory_space<vmem>>, vector<1x32xf32>,
    %c0_i32_20 = arith.constant 0 : i32
    %28 = arith.addi %0, %c0_i32_20 : i32
    %29 = arith.index_cast %28 : i32 to index
    %c3 = arith.constant 3 : index
    %30 = memref.load %arg1[%29, %c3] : memref<2x8xi32, #tpu.memory_space<smem>>
    %31 = arith.index_cast %30 : i32 to index
    %c0_21 = arith.constant 0 : index
    %c0_22 = arith.constant 0 : index
    %32 = vector.load %arg3[%31, %c0_21, %c0_22] : memref<100x1x32xf32, #tpu.memory_space<vmem>>, vector<1x1x32xf32>
    %33 = vector.shape_cast %32 : vector<1x1x32xf32> to vector<1x32xf32>
    %c3_23 = arith.constant 3 : index
    %c0_24 = arith.constant 0 : index
    %34 = vector.load %arg4[%c3_23, %c0_24] : memref<16x32xf32, #tpu.memory_space<vmem>>, vector<1x32xf32>
    %35 = arith.addf %33, %34 : vector<1x32xf32>
    %c3_25 = arith.constant 3 : index
    %c0_26 = arith.constant 0 : index
    %36 = vector.load %arg14[%c3_25, %c0_26] : memref<16x32xf32, #tpu.memory_space<vmem>>, vector<1x32xf32>
    tpu.vector_store %arg14[%c3_25, %c0_26], %35 {strides = array<i32>} : memref<16x32xf32, #tpu.memory_space<vmem>>, vector<1x32xf32>,
    %c0_i32_27 = arith.constant 0 : i32
    %37 = arith.addi %0, %c0_i32_27 : i32
    %38 = arith.index_cast %37 : i32 to index
    %c4 = arith.constant 4 : index
    %39 = memref.load %arg1[%38, %c4] : memref<2x8xi32, #tpu.memory_space<smem>>
    %40 = arith.index_cast %39 : i32 to index
    %c0_28 = arith.constant 0 : index
    %c0_29 = arith.constant 0 : index
    %41 = vector.load %arg3[%40, %c0_28, %c0_29] : memref<100x1x32xf32, #tpu.memory_space<vmem>>, vector<1x1x32xf32>
    %42 = vector.shape_cast %41 : vector<1x1x32xf32> to vector<1x32xf32>
    %c4_30 = arith.constant 4 : index
    %c0_31 = arith.constant 0 : index
    %43 = vector.load %arg4[%c4_30, %c0_31] : memref<16x32xf32, #tpu.memory_space<vmem>>, vector<1x32xf32>
    %44 = arith.addf %42, %43 : vector<1x32xf32>
    %c4_32 = arith.constant 4 : index
    %c0_33 = arith.constant 0 : index
    %45 = vector.load %arg14[%c4_32, %c0_33] : memref<16x32xf32, #tpu.memory_space<vmem>>, vector<1x32xf32>
    tpu.vector_store %arg14[%c4_32, %c0_33], %44 {strides = array<i32>} : memref<16x32xf32, #tpu.memory_space<vmem>>, vector<1x32xf32>,
    %c0_i32_34 = arith.constant 0 : i32
    %46 = arith.addi %0, %c0_i32_34 : i32
    %47 = arith.index_cast %46 : i32 to index
    %c5 = arith.constant 5 : index
    %48 = memref.load %arg1[%47, %c5] : memref<2x8xi32, #tpu.memory_space<smem>>
    %49 = arith.index_cast %48 : i32 to index
    %c0_35 = arith.constant 0 : index
    %c0_36 = arith.constant 0 : index
    %50 = vector.load %arg3[%49, %c0_35, %c0_36] : memref<100x1x32xf32, #tpu.memory_space<vmem>>, vector<1x1x32xf32>
    %51 = vector.shape_cast %50 : vector<1x1x32xf32> to vector<1x32xf32>
    %c5_37 = arith.constant 5 : index
    %c0_38 = arith.constant 0 : index
    %52 = vector.load %arg4[%c5_37, %c0_38] : memref<16x32xf32, #tpu.memory_space<vmem>>, vector<1x32xf32>
    %53 = arith.addf %51, %52 : vector<1x32xf32>
    %c5_39 = arith.constant 5 : index
    %c0_40 = arith.constant 0 : index
    %54 = vector.load %arg14[%c5_39, %c0_40] : memref<16x32xf32, #tpu.memory_space<vmem>>, vector<1x32xf32>
    tpu.vector_store %arg14[%c5_39, %c0_40], %53 {strides = array<i32>} : memref<16x32xf32, #tpu.memory_space<vmem>>, vector<1x32xf32>,
    %c0_i32_41 = arith.constant 0 : i32
    %55 = arith.addi %0, %c0_i32_41 : i32
    %56 = arith.index_cast %55 : i32 to index
    %c6 = arith.constant 6 : index
    %57 = memref.load %arg1[%56, %c6] : memref<2x8xi32, #tpu.memory_space<smem>>
    %58 = arith.index_cast %57 : i32 to index
    %c0_42 = arith.constant 0 : index
    %c0_43 = arith.constant 0 : index
    %59 = vector.load %arg3[%58, %c0_42, %c0_43] : memref<100x1x32xf32, #tpu.memory_space<vmem>>, vector<1x1x32xf32>
    %60 = vector.shape_cast %59 : vector<1x1x32xf32> to vector<1x32xf32>
    %c6_44 = arith.constant 6 : index
    %c0_45 = arith.constant 0 : index
    %61 = vector.load %arg4[%c6_44, %c0_45] : memref<16x32xf32, #tpu.memory_space<vmem>>, vector<1x32xf32>
    %62 = arith.addf %60, %61 : vector<1x32xf32>
    %c6_46 = arith.constant 6 : index
    %c0_47 = arith.constant 0 : index
    %63 = vector.load %arg14[%c6_46, %c0_47] : memref<16x32xf32, #tpu.memory_space<vmem>>, vector<1x32xf32>
    tpu.vector_store %arg14[%c6_46, %c0_47], %62 {strides = array<i32>} : memref<16x32xf32, #tpu.memory_space<vmem>>, vector<1x32xf32>,
    %c0_i32_48 = arith.constant 0 : i32
    %64 = arith.addi %0, %c0_i32_48 : i32
    %65 = arith.index_cast %64 : i32 to index
    %c7 = arith.constant 7 : index
    %66 = memref.load %arg1[%65, %c7] : memref<2x8xi32, #tpu.memory_space<smem>>
    %67 = arith.index_cast %66 : i32 to index
    %c0_49 = arith.constant 0 : index
    %c0_50 = arith.constant 0 : index
    %68 = vector.load %arg3[%67, %c0_49, %c0_50] : memref<100x1x32xf32, #tpu.memory_space<vmem>>, vector<1x1x32xf32>
    %69 = vector.shape_cast %68 : vector<1x1x32xf32> to vector<1x32xf32>
    %c7_51 = arith.constant 7 : index
    %c0_52 = arith.constant 0 : index
    %70 = vector.load %arg4[%c7_51, %c0_52] : memref<16x32xf32, #tpu.memory_space<vmem>>, vector<1x32xf32>
    %71 = arith.addf %69, %70 : vector<1x32xf32>
    %c7_53 = arith.constant 7 : index
    %c0_54 = arith.constant 0 : index
    %72 = vector.load %arg14[%c7_53, %c0_54] : memref<16x32xf32, #tpu.memory_space<vmem>>, vector<1x32xf32>
    tpu.vector_store %arg14[%c7_53, %c0_54], %71 {strides = array<i32>} : memref<16x32xf32, #tpu.memory_space<vmem>>, vector<1x32xf32>,
    %c1_i32 = arith.constant 1 : i32
    %73 = arith.addi %0, %c1_i32 : i32
    %74 = arith.index_cast %73 : i32 to index
    %c0_55 = arith.constant 0 : index
    %75 = memref.load %arg1[%74, %c0_55] : memref<2x8xi32, #tpu.memory_space<smem>>
    %76 = arith.index_cast %75 : i32 to index
    %c0_56 = arith.constant 0 : index
    %c0_57 = arith.constant 0 : index
    %77 = vector.load %arg3[%76, %c0_56, %c0_57] : memref<100x1x32xf32, #tpu.memory_space<vmem>>, vector<1x1x32xf32>
    %78 = vector.shape_cast %77 : vector<1x1x32xf32> to vector<1x32xf32>
    %c0_58 = arith.constant 0 : index
    %c0_59 = arith.constant 0 : index
    %79 = vector.load %arg4[%c0_58, %c0_59] : memref<16x32xf32, #tpu.memory_space<vmem>>, vector<1x32xf32>
    %80 = arith.addf %78, %79 : vector<1x32xf32>
    %c8 = arith.constant 8 : index
    %c0_60 = arith.constant 0 : index
    %81 = vector.load %arg14[%c8, %c0_60] : memref<16x32xf32, #tpu.memory_space<vmem>>, vector<1x32xf32>
    tpu.vector_store %arg14[%c8, %c0_60], %80 {strides = array<i32>} : memref<16x32xf32, #tpu.memory_space<vmem>>, vector<1x32xf32>,
    %c1_i32_61 = arith.constant 1 : i32
    %82 = arith.addi %0, %c1_i32_61 : i32
    %83 = arith.index_cast %82 : i32 to index
    %c1_62 = arith.constant 1 : index
    %84 = memref.load %arg1[%83, %c1_62] : memref<2x8xi32, #tpu.memory_space<smem>>
    %85 = arith.index_cast %84 : i32 to index
    %c0_63 = arith.constant 0 : index
    %c0_64 = arith.constant 0 : index
    %86 = vector.load %arg3[%85, %c0_63, %c0_64] : memref<100x1x32xf32, #tpu.memory_space<vmem>>, vector<1x1x32xf32>
    %87 = vector.shape_cast %86 : vector<1x1x32xf32> to vector<1x32xf32>
    %c1_65 = arith.constant 1 : index
    %c0_66 = arith.constant 0 : index
    %88 = vector.load %arg4[%c1_65, %c0_66] : memref<16x32xf32, #tpu.memory_space<vmem>>, vector<1x32xf32>
    %89 = arith.addf %87, %88 : vector<1x32xf32>
    %c9 = arith.constant 9 : index
    %c0_67 = arith.constant 0 : index
    %90 = vector.load %arg14[%c9, %c0_67] : memref<16x32xf32, #tpu.memory_space<vmem>>, vector<1x32xf32>
    tpu.vector_store %arg14[%c9, %c0_67], %89 {strides = array<i32>} : memref<16x32xf32, #tpu.memory_space<vmem>>, vector<1x32xf32>,
    %c1_i32_68 = arith.constant 1 : i32
    %91 = arith.addi %0, %c1_i32_68 : i32
    %92 = arith.index_cast %91 : i32 to index
    %c2_69 = arith.constant 2 : index
    %93 = memref.load %arg1[%92, %c2_69] : memref<2x8xi32, #tpu.memory_space<smem>>
    %94 = arith.index_cast %93 : i32 to index
    %c0_70 = arith.constant 0 : index
    %c0_71 = arith.constant 0 : index
    %95 = vector.load %arg3[%94, %c0_70, %c0_71] : memref<100x1x32xf32, #tpu.memory_space<vmem>>, vector<1x1x32xf32>
    %96 = vector.shape_cast %95 : vector<1x1x32xf32> to vector<1x32xf32>
    %c2_72 = arith.constant 2 : index
    %c0_73 = arith.constant 0 : index
    %97 = vector.load %arg4[%c2_72, %c0_73] : memref<16x32xf32, #tpu.memory_space<vmem>>, vector<1x32xf32>
    %98 = arith.addf %96, %97 : vector<1x32xf32>
    %c10 = arith.constant 10 : index
    %c0_74 = arith.constant 0 : index
    %99 = vector.load %arg14[%c10, %c0_74] : memref<16x32xf32, #tpu.memory_space<vmem>>, vector<1x32xf32>
    tpu.vector_store %arg14[%c10, %c0_74], %98 {strides = array<i32>} : memref<16x32xf32, #tpu.memory_space<vmem>>, vector<1x32xf32>,
    %c1_i32_75 = arith.constant 1 : i32
    %100 = arith.addi %0, %c1_i32_75 : i32
    %101 = arith.index_cast %100 : i32 to index
    %c3_76 = arith.constant 3 : index
    %102 = memref.load %arg1[%101, %c3_76] : memref<2x8xi32, #tpu.memory_space<smem>>
    %103 = arith.index_cast %102 : i32 to index
    %c0_77 = arith.constant 0 : index
    %c0_78 = arith.constant 0 : index
    %104 = vector.load %arg3[%103, %c0_77, %c0_78] : memref<100x1x32xf32, #tpu.memory_space<vmem>>, vector<1x1x32xf32>
    %105 = vector.shape_cast %104 : vector<1x1x32xf32> to vector<1x32xf32>
    %c3_79 = arith.constant 3 : index
    %c0_80 = arith.constant 0 : index
    %106 = vector.load %arg4[%c3_79, %c0_80] : memref<16x32xf32, #tpu.memory_space<vmem>>, vector<1x32xf32>
    %107 = arith.addf %105, %106 : vector<1x32xf32>
    %c11 = arith.constant 11 : index
    %c0_81 = arith.constant 0 : index
    %108 = vector.load %arg14[%c11, %c0_81] : memref<16x32xf32, #tpu.memory_space<vmem>>, vector<1x32xf32>
    tpu.vector_store %arg14[%c11, %c0_81], %107 {strides = array<i32>} : memref<16x32xf32, #tpu.memory_space<vmem>>, vector<1x32xf32>,
    %c1_i32_82 = arith.constant 1 : i32
    %109 = arith.addi %0, %c1_i32_82 : i32
    %110 = arith.index_cast %109 : i32 to index
    %c4_83 = arith.constant 4 : index
    %111 = memref.load %arg1[%110, %c4_83] : memref<2x8xi32, #tpu.memory_space<smem>>
    %112 = arith.index_cast %111 : i32 to index
    %c0_84 = arith.constant 0 : index
    %c0_85 = arith.constant 0 : index
    %113 = vector.load %arg3[%112, %c0_84, %c0_85] : memref<100x1x32xf32, #tpu.memory_space<vmem>>, vector<1x1x32xf32>
    %114 = vector.shape_cast %113 : vector<1x1x32xf32> to vector<1x32xf32>
    %c4_86 = arith.constant 4 : index
    %c0_87 = arith.constant 0 : index
    %115 = vector.load %arg4[%c4_86, %c0_87] : memref<16x32xf32, #tpu.memory_space<vmem>>, vector<1x32xf32>
    %116 = arith.addf %114, %115 : vector<1x32xf32>
    %c12 = arith.constant 12 : index
    %c0_88 = arith.constant 0 : index
    %117 = vector.load %arg14[%c12, %c0_88] : memref<16x32xf32, #tpu.memory_space<vmem>>, vector<1x32xf32>
    tpu.vector_store %arg14[%c12, %c0_88], %116 {strides = array<i32>} : memref<16x32xf32, #tpu.memory_space<vmem>>, vector<1x32xf32>,
    %c1_i32_89 = arith.constant 1 : i32
    %118 = arith.addi %0, %c1_i32_89 : i32
    %119 = arith.index_cast %118 : i32 to index
    %c5_90 = arith.constant 5 : index
    %120 = memref.load %arg1[%119, %c5_90] : memref<2x8xi32, #tpu.memory_space<smem>>
    %121 = arith.index_cast %120 : i32 to index
    %c0_91 = arith.constant 0 : index
    %c0_92 = arith.constant 0 : index
    %122 = vector.load %arg3[%121, %c0_91, %c0_92] : memref<100x1x32xf32, #tpu.memory_space<vmem>>, vector<1x1x32xf32>
    %123 = vector.shape_cast %122 : vector<1x1x32xf32> to vector<1x32xf32>
    %c5_93 = arith.constant 5 : index
    %c0_94 = arith.constant 0 : index
    %124 = vector.load %arg4[%c5_93, %c0_94] : memref<16x32xf32, #tpu.memory_space<vmem>>, vector<1x32xf32>
    %125 = arith.addf %123, %124 : vector<1x32xf32>
    %c13 = arith.constant 13 : index
    %c0_95 = arith.constant 0 : index
    %126 = vector.load %arg14[%c13, %c0_95] : memref<16x32xf32, #tpu.memory_space<vmem>>, vector<1x32xf32>
    tpu.vector_store %arg14[%c13, %c0_95], %125 {strides = array<i32>} : memref<16x32xf32, #tpu.memory_space<vmem>>, vector<1x32xf32>,
    %c1_i32_96 = arith.constant 1 : i32
    %127 = arith.addi %0, %c1_i32_96 : i32
    %128 = arith.index_cast %127 : i32 to index
    %c6_97 = arith.constant 6 : index
    %129 = memref.load %arg1[%128, %c6_97] : memref<2x8xi32, #tpu.memory_space<smem>>
    %130 = arith.index_cast %129 : i32 to index
    %c0_98 = arith.constant 0 : index
    %c0_99 = arith.constant 0 : index
    %131 = vector.load %arg3[%130, %c0_98, %c0_99] : memref<100x1x32xf32, #tpu.memory_space<vmem>>, vector<1x1x32xf32>
    %132 = vector.shape_cast %131 : vector<1x1x32xf32> to vector<1x32xf32>
    %c6_100 = arith.constant 6 : index
    %c0_101 = arith.constant 0 : index
    %133 = vector.load %arg4[%c6_100, %c0_101] : memref<16x32xf32, #tpu.memory_space<vmem>>, vector<1x32xf32>
    %134 = arith.addf %132, %133 : vector<1x32xf32>
    %c14 = arith.constant 14 : index
    %c0_102 = arith.constant 0 : index
    %135 = vector.load %arg14[%c14, %c0_102] : memref<16x32xf32, #tpu.memory_space<vmem>>, vector<1x32xf32>
    tpu.vector_store %arg14[%c14, %c0_102], %134 {strides = array<i32>} : memref<16x32xf32, #tpu.memory_space<vmem>>, vector<1x32xf32>,
    %c1_i32_103 = arith.constant 1 : i32
    %136 = arith.addi %0, %c1_i32_103 : i32
    %137 = arith.index_cast %136 : i32 to index
    %c7_104 = arith.constant 7 : index
    %138 = memref.load %arg1[%137, %c7_104] : memref<2x8xi32, #tpu.memory_space<smem>>
    %139 = arith.index_cast %138 : i32 to index
    %c0_105 = arith.constant 0 : index
    %c0_106 = arith.constant 0 : index
    %140 = vector.load %arg3[%139, %c0_105, %c0_106] : memref<100x1x32xf32, #tpu.memory_space<vmem>>, vector<1x1x32xf32>
    %141 = vector.shape_cast %140 : vector<1x1x32xf32> to vector<1x32xf32>
    %c7_107 = arith.constant 7 : index
    %c0_108 = arith.constant 0 : index
    %142 = vector.load %arg4[%c7_107, %c0_108] : memref<16x32xf32, #tpu.memory_space<vmem>>, vector<1x32xf32>
    %143 = arith.addf %141, %142 : vector<1x32xf32>
    %c15 = arith.constant 15 : index
    %c0_109 = arith.constant 0 : index
    %144 = vector.load %arg14[%c15, %c0_109] : memref<16x32xf32, #tpu.memory_space<vmem>>, vector<1x32xf32>
    tpu.vector_store %arg14[%c15, %c0_109], %143 {strides = array<i32>} : memref<16x32xf32, #tpu.memory_space<vmem>>, vector<1x32xf32>,
    %c2_110 = arith.constant 2 : index
    %c0_111 = arith.constant 0 : index
    %145 = vector.load %arg12[%c2_110, %c0_111] : memref<4x128xf32, #tpu.memory_space<vmem>>, vector<1x32xf32>
    %c3_112 = arith.constant 3 : index
    %c0_113 = arith.constant 0 : index
    %146 = vector.load %arg12[%c3_112, %c0_113] : memref<4x128xf32, #tpu.memory_space<vmem>>, vector<1x32xf32>
    %c0_114 = arith.constant 0 : index
    %c0_115 = arith.constant 0 : index
    %147 = vector.load %arg14[%c0_114, %c0_115] : memref<16x32xf32, #tpu.memory_space<vmem>>, vector<16x32xf32>
    %cst = arith.constant dense<0.000000e+00> : vector<16xf32>
    %148 = vector.multi_reduction <add>, %147, %cst [1] : vector<16x32xf32> to vector<16xf32>
    %149 = vector.shape_cast %148 : vector<16xf32> to vector<16x1xf32>
    %cst_116 = arith.constant 3.200000e+01 : f32
    %150 = vector.broadcast %cst_116 : f32 to vector<16x1xf32>
    %151 = arith.divf %149, %150 : vector<16x1xf32>
    %152 = vector.broadcast %151 : vector<16x1xf32> to vector<16x32xf32>
    %153 = arith.subf %147, %152 : vector<16x32xf32>
    %154 = arith.mulf %153, %153 : vector<16x32xf32>
    %cst_117 = arith.constant dense<0.000000e+00> : vector<16xf32>
    %155 = vector.multi_reduction <add>, %154, %cst_117 [1] : vector<16x32xf32> to vector<16xf32>
    %156 = vector.shape_cast %155 : vector<16xf32> to vector<16x1xf32>
    %cst_118 = arith.constant 3.200000e+01 : f32
    %157 = vector.broadcast %cst_118 : f32 to vector<16x1xf32>
    %158 = arith.divf %156, %157 : vector<16x1xf32>
    %159 = vector.broadcast %151 : vector<16x1xf32> to vector<16x32xf32>
    %160 = arith.subf %147, %159 : vector<16x32xf32>
    %cst_119 = arith.constant 9.99999996E-13 : f32
    %161 = vector.broadcast %cst_119 : f32 to vector<16x1xf32>
    %162 = arith.addf %158, %161 : vector<16x1xf32>
    %163 = math.rsqrt %162 : vector<16x1xf32>
    %164 = vector.broadcast %163 : vector<16x1xf32> to vector<16x32xf32>
    %165 = arith.mulf %160, %164 : vector<16x32xf32>
    %166 = vector.broadcast %145 : vector<1x32xf32> to vector<16x32xf32>
    %167 = arith.mulf %165, %166 : vector<16x32xf32>
    %168 = vector.broadcast %146 : vector<1x32xf32> to vector<16x32xf32>
    %169 = arith.addf %167, %168 : vector<16x32xf32>
    %c0_120 = arith.constant 0 : index
    %c0_121 = arith.constant 0 : index
    %c0_122 = arith.constant 0 : index
    %170 = vector.load %arg2[%c0_120, %c0_121, %c0_122] : memref<2x1x8xf32, #tpu.memory_space<vmem>>, vector<1x1x8xf32>
    %171 = vector.shape_cast %170 : vector<1x1x8xf32> to vector<1x8xf32>
    %cst_123 = arith.constant 1.000000e+00 : f32
    %172 = vector.broadcast %cst_123 : f32 to vector<1x8xf32>
    %173 = arith.subf %171, %172 : vector<1x8xf32>
    %cst_124 = arith.constant 1.000000e+04 : f32
    %174 = vector.broadcast %cst_124 : f32 to vector<1x8xf32>
    %175 = arith.mulf %173, %174 : vector<1x8xf32>
    %176 = vector.shape_cast %175 : vector<1x8xf32> to vector<1x8xf32>
    %177 = vector.broadcast %176 : vector<1x8xf32> to vector<8x8xf32>
    %c1_125 = arith.constant 1 : index
    %c0_126 = arith.constant 0 : index
    %c0_127 = arith.constant 0 : index
    %178 = vector.load %arg2[%c1_125, %c0_126, %c0_127] : memref<2x1x8xf32, #tpu.memory_space<vmem>>, vector<1x1x8xf32>
    %179 = vector.shape_cast %178 : vector<1x1x8xf32> to vector<1x8xf32>
    %cst_128 = arith.constant 1.000000e+00 : f32
    %180 = vector.broadcast %cst_128 : f32 to vector<1x8xf32>
    %181 = arith.subf %179, %180 : vector<1x8xf32>
    %cst_129 = arith.constant 1.000000e+04 : f32
    %182 = vector.broadcast %cst_129 : f32 to vector<1x8xf32>
    %183 = arith.mulf %181, %182 : vector<1x8xf32>
    %184 = vector.shape_cast %183 : vector<1x8xf32> to vector<1x8xf32>
    %185 = vector.broadcast %184 : vector<1x8xf32> to vector<8x8xf32>
    %c0_130 = arith.constant 0 : index
    %c0_131 = arith.constant 0 : index
    %c0_132 = arith.constant 0 : index
    %186 = vector.load %arg5[%c0_130, %c0_131, %c0_132] : memref<2x32x128xbf16, #tpu.memory_space<vmem>>, vector<1x32x128xbf16>
    %187 = vector.shape_cast %186 : vector<1x32x128xbf16> to vector<32x128xbf16>
    %c0_133 = arith.constant 0 : index
    %c0_134 = arith.constant 0 : index
    %c0_135 = arith.constant 0 : index
    %188 = vector.load %arg6[%c0_133, %c0_134, %c0_135] : memref<2x32x32xbf16, #tpu.memory_space<vmem>>, vector<1x32x32xbf16>
    %189 = vector.shape_cast %188 : vector<1x32x32xbf16> to vector<32x32xbf16>
    %c0_136 = arith.constant 0 : index
    %c0_137 = arith.constant 0 : index
    %c0_138 = arith.constant 0 : index
    %190 = vector.load %arg7[%c0_136, %c0_137, %c0_138] : memref<2x32x64xbf16, #tpu.memory_space<vmem>>, vector<1x32x64xbf16>
    %191 = vector.shape_cast %190 : vector<1x32x64xbf16> to vector<32x64xbf16>
    %c0_139 = arith.constant 0 : index
    %c0_140 = arith.constant 0 : index
    %c0_141 = arith.constant 0 : index
    %192 = vector.load %arg8[%c0_139, %c0_140, %c0_141] : memref<2x64x32xbf16, #tpu.memory_space<vmem>>, vector<1x64x32xbf16>
    %193 = vector.shape_cast %192 : vector<1x64x32xbf16> to vector<64x32xbf16>
    %c0_142 = arith.constant 0 : index
    %c0_143 = arith.constant 0 : index
    %c0_144 = arith.constant 0 : index
    %194 = vector.load %arg9[%c0_142, %c0_143, %c0_144] : memref<2x8x128xf32, #tpu.memory_space<vmem>>, vector<1x8x128xf32>
    %195 = vector.shape_cast %194 : vector<1x8x128xf32> to vector<8x128xf32>
    %196 = vector.extract_strided_slice %195 {offsets = [0, 0], sizes = [1, 128], strides = [1, 1]} : vector<8x128xf32> to vector<1x128xf32>
    %197 = vector.extract_strided_slice %195 {offsets = [1, 0], sizes = [1, 32], strides = [1, 1]} : vector<8x128xf32> to vector<1x32xf32>
    %198 = vector.extract_strided_slice %195 {offsets = [2, 0], sizes = [1, 32], strides = [1, 1]} : vector<8x128xf32> to vector<1x32xf32>
    %199 = vector.extract_strided_slice %195 {offsets = [3, 0], sizes = [1, 32], strides = [1, 1]} : vector<8x128xf32> to vector<1x32xf32>
    %200 = vector.extract_strided_slice %195 {offsets = [4, 0], sizes = [1, 64], strides = [1, 1]} : vector<8x128xf32> to vector<1x64xf32>
    %201 = vector.extract_strided_slice %195 {offsets = [5, 0], sizes = [1, 32], strides = [1, 1]} : vector<8x128xf32> to vector<1x32xf32>
    %202 = vector.extract_strided_slice %195 {offsets = [6, 0], sizes = [1, 32], strides = [1, 1]} : vector<8x128xf32> to vector<1x32xf32>
    %203 = vector.extract_strided_slice %195 {offsets = [7, 0], sizes = [1, 32], strides = [1, 1]} : vector<8x128xf32> to vector<1x32xf32>
    %204 = arith.truncf %169 : vector<16x32xf32> to vector<16x32xbf16>
    %cst_145 = arith.constant dense<0.000000e+00> : vector<16x128xf32>
    %205 = tpu.matmul %204, %187, %cst_145 {dimension_numbers = #tpu.dot_dimension_numbers<[1], [0], [0], [1], [0, 0, 1, 1], [], []>} : vector<16x32xbf16>, vector<32x128xbf16>, vector<16x128xf32> -> vector<16x128xf32>
    %206 = vector.broadcast %196 : vector<1x128xf32> to vector<16x128xf32>
    %207 = arith.addf %205, %206 : vector<16x128xf32>
    %208 = vector.extract_strided_slice %207 {offsets = [0, 0], sizes = [8, 8], strides = [1, 1]} : vector<16x128xf32> to vector<8x8xf32>
    %cst_146 = arith.constant 0.353553385 : f32
    %209 = vector.broadcast %cst_146 : f32 to vector<8x8xf32>
    %210 = arith.mulf %208, %209 : vector<8x8xf32>
    %211 = vector.extract_strided_slice %207 {offsets = [0, 32], sizes = [8, 8], strides = [1, 1]} : vector<16x128xf32> to vector<8x8xf32>
    %212 = vector.extract_strided_slice %207 {offsets = [0, 64], sizes = [8, 8], strides = [1, 1]} : vector<16x128xf32> to vector<8x8xf32>
    %cst_147 = arith.constant dense<0.000000e+00> : vector<8x8xf32>
    %213 = tpu.matmul %210, %211, %cst_147 {dimension_numbers = #tpu.dot_dimension_numbers<[1], [1], [0], [0], [0, 0, 1, 0], [], []>} : vector<8x8xf32>, vector<8x8xf32>, vector<8x8xf32> -> vector<8x8xf32>
    %214 = arith.addf %213, %177 : vector<8x8xf32>
    %cst_148 = arith.constant dense<0xFF800000> : vector<8xf32>
    %215 = vector.multi_reduction <maximumf>, %214, %cst_148 [1] : vector<8x8xf32> to vector<8xf32>
    %216 = vector.shape_cast %215 : vector<8xf32> to vector<8x1xf32>
    %217 = vector.broadcast %216 : vector<8x1xf32> to vector<8x8xf32>
    %218 = arith.subf %214, %217 : vector<8x8xf32>
    %219 = math.exp %218 : vector<8x8xf32>
    %cst_149 = arith.constant dense<0.000000e+00> : vector<8xf32>
    %220 = vector.multi_reduction <add>, %219, %cst_149 [1] : vector<8x8xf32> to vector<8xf32>
    %221 = vector.shape_cast %220 : vector<8xf32> to vector<8x1xf32>
    %222 = vector.broadcast %221 : vector<8x1xf32> to vector<8x8xf32>
    %223 = arith.divf %219, %222 : vector<8x8xf32>
    %cst_150 = arith.constant dense<0.000000e+00> : vector<8x8xf32>
    %224 = tpu.matmul %223, %212, %cst_150 {dimension_numbers = #tpu.dot_dimension_numbers<[1], [0], [0], [1], [0, 0, 1, 1], [], []>} : vector<8x8xf32>, vector<8x8xf32>, vector<8x8xf32> -> vector<8x8xf32>
    %c0_151 = arith.constant 0 : index
    %c0_152 = arith.constant 0 : index
    %225 = vector.load %arg15[%c0_151, %c0_152] : memref<16x32xf32, #tpu.memory_space<vmem>>, vector<8x8xf32>
    tpu.vector_store %arg15[%c0_151, %c0_152], %224 {strides = array<i32>} : memref<16x32xf32, #tpu.memory_space<vmem>>, vector<8x8xf32>,
    %226 = vector.extract_strided_slice %207 {offsets = [0, 8], sizes = [8, 8], strides = [1, 1]} : vector<16x128xf32> to vector<8x8xf32>
    %cst_153 = arith.constant 0.353553385 : f32
    %227 = vector.broadcast %cst_153 : f32 to vector<8x8xf32>
    %228 = arith.mulf %226, %227 : vector<8x8xf32>
    %229 = vector.extract_strided_slice %207 {offsets = [0, 40], sizes = [8, 8], strides = [1, 1]} : vector<16x128xf32> to vector<8x8xf32>
    %230 = vector.extract_strided_slice %207 {offsets = [0, 72], sizes = [8, 8], strides = [1, 1]} : vector<16x128xf32> to vector<8x8xf32>
    %cst_154 = arith.constant dense<0.000000e+00> : vector<8x8xf32>
    %231 = tpu.matmul %228, %229, %cst_154 {dimension_numbers = #tpu.dot_dimension_numbers<[1], [1], [0], [0], [0, 0, 1, 0], [], []>} : vector<8x8xf32>, vector<8x8xf32>, vector<8x8xf32> -> vector<8x8xf32>
    %232 = arith.addf %231, %177 : vector<8x8xf32>
    %cst_155 = arith.constant dense<0xFF800000> : vector<8xf32>
    %233 = vector.multi_reduction <maximumf>, %232, %cst_155 [1] : vector<8x8xf32> to vector<8xf32>
    %234 = vector.shape_cast %233 : vector<8xf32> to vector<8x1xf32>
    %235 = vector.broadcast %234 : vector<8x1xf32> to vector<8x8xf32>
    %236 = arith.subf %232, %235 : vector<8x8xf32>
    %237 = math.exp %236 : vector<8x8xf32>
    %cst_156 = arith.constant dense<0.000000e+00> : vector<8xf32>
    %238 = vector.multi_reduction <add>, %237, %cst_156 [1] : vector<8x8xf32> to vector<8xf32>
    %239 = vector.shape_cast %238 : vector<8xf32> to vector<8x1xf32>
    %240 = vector.broadcast %239 : vector<8x1xf32> to vector<8x8xf32>
    %241 = arith.divf %237, %240 : vector<8x8xf32>
    %cst_157 = arith.constant dense<0.000000e+00> : vector<8x8xf32>
    %242 = tpu.matmul %241, %230, %cst_157 {dimension_numbers = #tpu.dot_dimension_numbers<[1], [0], [0], [1], [0, 0, 1, 1], [], []>} : vector<8x8xf32>, vector<8x8xf32>, vector<8x8xf32> -> vector<8x8xf32>
    %c0_158 = arith.constant 0 : index
    %c8_159 = arith.constant 8 : index
    %243 = vector.load %arg15[%c0_158, %c8_159] : memref<16x32xf32, #tpu.memory_space<vmem>>, vector<8x8xf32>
    tpu.vector_store %arg15[%c0_158, %c8_159], %242 {strides = array<i32>} : memref<16x32xf32, #tpu.memory_space<vmem>>, vector<8x8xf32>,
    %244 = vector.extract_strided_slice %207 {offsets = [0, 16], sizes = [8, 8], strides = [1, 1]} : vector<16x128xf32> to vector<8x8xf32>
    %cst_160 = arith.constant 0.353553385 : f32
    %245 = vector.broadcast %cst_160 : f32 to vector<8x8xf32>
    %246 = arith.mulf %244, %245 : vector<8x8xf32>
    %247 = vector.extract_strided_slice %207 {offsets = [0, 48], sizes = [8, 8], strides = [1, 1]} : vector<16x128xf32> to vector<8x8xf32>
    %248 = vector.extract_strided_slice %207 {offsets = [0, 80], sizes = [8, 8], strides = [1, 1]} : vector<16x128xf32> to vector<8x8xf32>
    %cst_161 = arith.constant dense<0.000000e+00> : vector<8x8xf32>
    %249 = tpu.matmul %246, %247, %cst_161 {dimension_numbers = #tpu.dot_dimension_numbers<[1], [1], [0], [0], [0, 0, 1, 0], [], []>} : vector<8x8xf32>, vector<8x8xf32>, vector<8x8xf32> -> vector<8x8xf32>
    %250 = arith.addf %249, %177 : vector<8x8xf32>
    %cst_162 = arith.constant dense<0xFF800000> : vector<8xf32>
    %251 = vector.multi_reduction <maximumf>, %250, %cst_162 [1] : vector<8x8xf32> to vector<8xf32>
    %252 = vector.shape_cast %251 : vector<8xf32> to vector<8x1xf32>
    %253 = vector.broadcast %252 : vector<8x1xf32> to vector<8x8xf32>
    %254 = arith.subf %250, %253 : vector<8x8xf32>
    %255 = math.exp %254 : vector<8x8xf32>
    %cst_163 = arith.constant dense<0.000000e+00> : vector<8xf32>
    %256 = vector.multi_reduction <add>, %255, %cst_163 [1] : vector<8x8xf32> to vector<8xf32>
    %257 = vector.shape_cast %256 : vector<8xf32> to vector<8x1xf32>
    %258 = vector.broadcast %257 : vector<8x1xf32> to vector<8x8xf32>
    %259 = arith.divf %255, %258 : vector<8x8xf32>
    %cst_164 = arith.constant dense<0.000000e+00> : vector<8x8xf32>
    %260 = tpu.matmul %259, %248, %cst_164 {dimension_numbers = #tpu.dot_dimension_numbers<[1], [0], [0], [1], [0, 0, 1, 1], [], []>} : vector<8x8xf32>, vector<8x8xf32>, vector<8x8xf32> -> vector<8x8xf32>
    %c0_165 = arith.constant 0 : index
    %c16 = arith.constant 16 : index
    %261 = vector.load %arg15[%c0_165, %c16] : memref<16x32xf32, #tpu.memory_space<vmem>>, vector<8x8xf32>
    tpu.vector_store %arg15[%c0_165, %c16], %260 {strides = array<i32>} : memref<16x32xf32, #tpu.memory_space<vmem>>, vector<8x8xf32>,
    %262 = vector.extract_strided_slice %207 {offsets = [0, 24], sizes = [8, 8], strides = [1, 1]} : vector<16x128xf32> to vector<8x8xf32>
    %cst_166 = arith.constant 0.353553385 : f32
    %263 = vector.broadcast %cst_166 : f32 to vector<8x8xf32>
    %264 = arith.mulf %262, %263 : vector<8x8xf32>
    %265 = vector.extract_strided_slice %207 {offsets = [0, 56], sizes = [8, 8], strides = [1, 1]} : vector<16x128xf32> to vector<8x8xf32>
    %266 = vector.extract_strided_slice %207 {offsets = [0, 88], sizes = [8, 8], strides = [1, 1]} : vector<16x128xf32> to vector<8x8xf32>
    %cst_167 = arith.constant dense<0.000000e+00> : vector<8x8xf32>
    %267 = tpu.matmul %264, %265, %cst_167 {dimension_numbers = #tpu.dot_dimension_numbers<[1], [1], [0], [0], [0, 0, 1, 0], [], []>} : vector<8x8xf32>, vector<8x8xf32>, vector<8x8xf32> -> vector<8x8xf32>
    %268 = arith.addf %267, %177 : vector<8x8xf32>
    %cst_168 = arith.constant dense<0xFF800000> : vector<8xf32>
    %269 = vector.multi_reduction <maximumf>, %268, %cst_168 [1] : vector<8x8xf32> to vector<8xf32>
    %270 = vector.shape_cast %269 : vector<8xf32> to vector<8x1xf32>
    %271 = vector.broadcast %270 : vector<8x1xf32> to vector<8x8xf32>
    %272 = arith.subf %268, %271 : vector<8x8xf32>
    %273 = math.exp %272 : vector<8x8xf32>
    %cst_169 = arith.constant dense<0.000000e+00> : vector<8xf32>
    %274 = vector.multi_reduction <add>, %273, %cst_169 [1] : vector<8x8xf32> to vector<8xf32>
    %275 = vector.shape_cast %274 : vector<8xf32> to vector<8x1xf32>
    %276 = vector.broadcast %275 : vector<8x1xf32> to vector<8x8xf32>
    %277 = arith.divf %273, %276 : vector<8x8xf32>
    %cst_170 = arith.constant dense<0.000000e+00> : vector<8x8xf32>
    %278 = tpu.matmul %277, %266, %cst_170 {dimension_numbers = #tpu.dot_dimension_numbers<[1], [0], [0], [1], [0, 0, 1, 1], [], []>} : vector<8x8xf32>, vector<8x8xf32>, vector<8x8xf32> -> vector<8x8xf32>
    %c0_171 = arith.constant 0 : index
    %c24 = arith.constant 24 : index
    %279 = vector.load %arg15[%c0_171, %c24] : memref<16x32xf32, #tpu.memory_space<vmem>>, vector<8x8xf32>
    tpu.vector_store %arg15[%c0_171, %c24], %278 {strides = array<i32>} : memref<16x32xf32, #tpu.memory_space<vmem>>, vector<8x8xf32>,
    %280 = vector.extract_strided_slice %207 {offsets = [8, 0], sizes = [8, 8], strides = [1, 1]} : vector<16x128xf32> to vector<8x8xf32>
    %cst_172 = arith.constant 0.353553385 : f32
    %281 = vector.broadcast %cst_172 : f32 to vector<8x8xf32>
    %282 = arith.mulf %280, %281 : vector<8x8xf32>
    %283 = vector.extract_strided_slice %207 {offsets = [8, 32], sizes = [8, 8], strides = [1, 1]} : vector<16x128xf32> to vector<8x8xf32>
    %284 = vector.extract_strided_slice %207 {offsets = [8, 64], sizes = [8, 8], strides = [1, 1]} : vector<16x128xf32> to vector<8x8xf32>
    %cst_173 = arith.constant dense<0.000000e+00> : vector<8x8xf32>
    %285 = tpu.matmul %282, %283, %cst_173 {dimension_numbers = #tpu.dot_dimension_numbers<[1], [1], [0], [0], [0, 0, 1, 0], [], []>} : vector<8x8xf32>, vector<8x8xf32>, vector<8x8xf32> -> vector<8x8xf32>
    %286 = arith.addf %285, %185 : vector<8x8xf32>
    %cst_174 = arith.constant dense<0xFF800000> : vector<8xf32>
    %287 = vector.multi_reduction <maximumf>, %286, %cst_174 [1] : vector<8x8xf32> to vector<8xf32>
    %288 = vector.shape_cast %287 : vector<8xf32> to vector<8x1xf32>
    %289 = vector.broadcast %288 : vector<8x1xf32> to vector<8x8xf32>
    %290 = arith.subf %286, %289 : vector<8x8xf32>
    %291 = math.exp %290 : vector<8x8xf32>
    %cst_175 = arith.constant dense<0.000000e+00> : vector<8xf32>
    %292 = vector.multi_reduction <add>, %291, %cst_175 [1] : vector<8x8xf32> to vector<8xf32>
    %293 = vector.shape_cast %292 : vector<8xf32> to vector<8x1xf32>
    %294 = vector.broadcast %293 : vector<8x1xf32> to vector<8x8xf32>
    %295 = arith.divf %291, %294 : vector<8x8xf32>
    %cst_176 = arith.constant dense<0.000000e+00> : vector<8x8xf32>
    %296 = tpu.matmul %295, %284, %cst_176 {dimension_numbers = #tpu.dot_dimension_numbers<[1], [0], [0], [1], [0, 0, 1, 1], [], []>} : vector<8x8xf32>, vector<8x8xf32>, vector<8x8xf32> -> vector<8x8xf32>
    %c8_177 = arith.constant 8 : index
    %c0_178 = arith.constant 0 : index
    %297 = vector.load %arg15[%c8_177, %c0_178] : memref<16x32xf32, #tpu.memory_space<vmem>>, vector<8x8xf32>
    tpu.vector_store %arg15[%c8_177, %c0_178], %296 {strides = array<i32>} : memref<16x32xf32, #tpu.memory_space<vmem>>, vector<8x8xf32>,
    %298 = vector.extract_strided_slice %207 {offsets = [8, 8], sizes = [8, 8], strides = [1, 1]} : vector<16x128xf32> to vector<8x8xf32>
    %cst_179 = arith.constant 0.353553385 : f32
    %299 = vector.broadcast %cst_179 : f32 to vector<8x8xf32>
    %300 = arith.mulf %298, %299 : vector<8x8xf32>
    %301 = vector.extract_strided_slice %207 {offsets = [8, 40], sizes = [8, 8], strides = [1, 1]} : vector<16x128xf32> to vector<8x8xf32>
    %302 = vector.extract_strided_slice %207 {offsets = [8, 72], sizes = [8, 8], strides = [1, 1]} : vector<16x128xf32> to vector<8x8xf32>
    %cst_180 = arith.constant dense<0.000000e+00> : vector<8x8xf32>
    %303 = tpu.matmul %300, %301, %cst_180 {dimension_numbers = #tpu.dot_dimension_numbers<[1], [1], [0], [0], [0, 0, 1, 0], [], []>} : vector<8x8xf32>, vector<8x8xf32>, vector<8x8xf32> -> vector<8x8xf32>
    %304 = arith.addf %303, %185 : vector<8x8xf32>
    %cst_181 = arith.constant dense<0xFF800000> : vector<8xf32>
    %305 = vector.multi_reduction <maximumf>, %304, %cst_181 [1] : vector<8x8xf32> to vector<8xf32>
    %306 = vector.shape_cast %305 : vector<8xf32> to vector<8x1xf32>
    %307 = vector.broadcast %306 : vector<8x1xf32> to vector<8x8xf32>
    %308 = arith.subf %304, %307 : vector<8x8xf32>
    %309 = math.exp %308 : vector<8x8xf32>
    %cst_182 = arith.constant dense<0.000000e+00> : vector<8xf32>
    %310 = vector.multi_reduction <add>, %309, %cst_182 [1] : vector<8x8xf32> to vector<8xf32>
    %311 = vector.shape_cast %310 : vector<8xf32> to vector<8x1xf32>
    %312 = vector.broadcast %311 : vector<8x1xf32> to vector<8x8xf32>
    %313 = arith.divf %309, %312 : vector<8x8xf32>
    %cst_183 = arith.constant dense<0.000000e+00> : vector<8x8xf32>
    %314 = tpu.matmul %313, %302, %cst_183 {dimension_numbers = #tpu.dot_dimension_numbers<[1], [0], [0], [1], [0, 0, 1, 1], [], []>} : vector<8x8xf32>, vector<8x8xf32>, vector<8x8xf32> -> vector<8x8xf32>
    %c8_184 = arith.constant 8 : index
    %c8_185 = arith.constant 8 : index
    %315 = vector.load %arg15[%c8_184, %c8_185] : memref<16x32xf32, #tpu.memory_space<vmem>>, vector<8x8xf32>
    tpu.vector_store %arg15[%c8_184, %c8_185], %314 {strides = array<i32>} : memref<16x32xf32, #tpu.memory_space<vmem>>, vector<8x8xf32>,
    %316 = vector.extract_strided_slice %207 {offsets = [8, 16], sizes = [8, 8], strides = [1, 1]} : vector<16x128xf32> to vector<8x8xf32>
    %cst_186 = arith.constant 0.353553385 : f32
    %317 = vector.broadcast %cst_186 : f32 to vector<8x8xf32>
    %318 = arith.mulf %316, %317 : vector<8x8xf32>
    %319 = vector.extract_strided_slice %207 {offsets = [8, 48], sizes = [8, 8], strides = [1, 1]} : vector<16x128xf32> to vector<8x8xf32>
    %320 = vector.extract_strided_slice %207 {offsets = [8, 80], sizes = [8, 8], strides = [1, 1]} : vector<16x128xf32> to vector<8x8xf32>
    %cst_187 = arith.constant dense<0.000000e+00> : vector<8x8xf32>
    %321 = tpu.matmul %318, %319, %cst_187 {dimension_numbers = #tpu.dot_dimension_numbers<[1], [1], [0], [0], [0, 0, 1, 0], [], []>} : vector<8x8xf32>, vector<8x8xf32>, vector<8x8xf32> -> vector<8x8xf32>
    %322 = arith.addf %321, %185 : vector<8x8xf32>
    %cst_188 = arith.constant dense<0xFF800000> : vector<8xf32>
    %323 = vector.multi_reduction <maximumf>, %322, %cst_188 [1] : vector<8x8xf32> to vector<8xf32>
    %324 = vector.shape_cast %323 : vector<8xf32> to vector<8x1xf32>
    %325 = vector.broadcast %324 : vector<8x1xf32> to vector<8x8xf32>
    %326 = arith.subf %322, %325 : vector<8x8xf32>
    %327 = math.exp %326 : vector<8x8xf32>
    %cst_189 = arith.constant dense<0.000000e+00> : vector<8xf32>
    %328 = vector.multi_reduction <add>, %327, %cst_189 [1] : vector<8x8xf32> to vector<8xf32>
    %329 = vector.shape_cast %328 : vector<8xf32> to vector<8x1xf32>
    %330 = vector.broadcast %329 : vector<8x1xf32> to vector<8x8xf32>
    %331 = arith.divf %327, %330 : vector<8x8xf32>
    %cst_190 = arith.constant dense<0.000000e+00> : vector<8x8xf32>
    %332 = tpu.matmul %331, %320, %cst_190 {dimension_numbers = #tpu.dot_dimension_numbers<[1], [0], [0], [1], [0, 0, 1, 1], [], []>} : vector<8x8xf32>, vector<8x8xf32>, vector<8x8xf32> -> vector<8x8xf32>
    %c8_191 = arith.constant 8 : index
    %c16_192 = arith.constant 16 : index
    %333 = vector.load %arg15[%c8_191, %c16_192] : memref<16x32xf32, #tpu.memory_space<vmem>>, vector<8x8xf32>
    tpu.vector_store %arg15[%c8_191, %c16_192], %332 {strides = array<i32>} : memref<16x32xf32, #tpu.memory_space<vmem>>, vector<8x8xf32>,
    %334 = vector.extract_strided_slice %207 {offsets = [8, 24], sizes = [8, 8], strides = [1, 1]} : vector<16x128xf32> to vector<8x8xf32>
    %cst_193 = arith.constant 0.353553385 : f32
    %335 = vector.broadcast %cst_193 : f32 to vector<8x8xf32>
    %336 = arith.mulf %334, %335 : vector<8x8xf32>
    %337 = vector.extract_strided_slice %207 {offsets = [8, 56], sizes = [8, 8], strides = [1, 1]} : vector<16x128xf32> to vector<8x8xf32>
    %338 = vector.extract_strided_slice %207 {offsets = [8, 88], sizes = [8, 8], strides = [1, 1]} : vector<16x128xf32> to vector<8x8xf32>
    %cst_194 = arith.constant dense<0.000000e+00> : vector<8x8xf32>
    %339 = tpu.matmul %336, %337, %cst_194 {dimension_numbers = #tpu.dot_dimension_numbers<[1], [1], [0], [0], [0, 0, 1, 0], [], []>} : vector<8x8xf32>, vector<8x8xf32>, vector<8x8xf32> -> vector<8x8xf32>
    %340 = arith.addf %339, %185 : vector<8x8xf32>
    %cst_195 = arith.constant dense<0xFF800000> : vector<8xf32>
    %341 = vector.multi_reduction <maximumf>, %340, %cst_195 [1] : vector<8x8xf32> to vector<8xf32>
    %342 = vector.shape_cast %341 : vector<8xf32> to vector<8x1xf32>
    %343 = vector.broadcast %342 : vector<8x1xf32> to vector<8x8xf32>
    %344 = arith.subf %340, %343 : vector<8x8xf32>
    %345 = math.exp %344 : vector<8x8xf32>
    %cst_196 = arith.constant dense<0.000000e+00> : vector<8xf32>
    %346 = vector.multi_reduction <add>, %345, %cst_196 [1] : vector<8x8xf32> to vector<8xf32>
    %347 = vector.shape_cast %346 : vector<8xf32> to vector<8x1xf32>
    %348 = vector.broadcast %347 : vector<8x1xf32> to vector<8x8xf32>
    %349 = arith.divf %345, %348 : vector<8x8xf32>
    %cst_197 = arith.constant dense<0.000000e+00> : vector<8x8xf32>
    %350 = tpu.matmul %349, %338, %cst_197 {dimension_numbers = #tpu.dot_dimension_numbers<[1], [0], [0], [1], [0, 0, 1, 1], [], []>} : vector<8x8xf32>, vector<8x8xf32>, vector<8x8xf32> -> vector<8x8xf32>
    %c8_198 = arith.constant 8 : index
    %c24_199 = arith.constant 24 : index
    %351 = vector.load %arg15[%c8_198, %c24_199] : memref<16x32xf32, #tpu.memory_space<vmem>>, vector<8x8xf32>
    tpu.vector_store %arg15[%c8_198, %c24_199], %350 {strides = array<i32>} : memref<16x32xf32, #tpu.memory_space<vmem>>, vector<8x8xf32>,
    %c0_200 = arith.constant 0 : index
    %c0_201 = arith.constant 0 : index
    %352 = vector.load %arg15[%c0_200, %c0_201] : memref<16x32xf32, #tpu.memory_space<vmem>>, vector<16x32xf32>
    %353 = arith.truncf %352 : vector<16x32xf32> to vector<16x32xbf16>
    %cst_202 = arith.constant dense<0.000000e+00> : vector<16x32xf32>
    %354 = tpu.matmul %353, %189, %cst_202 {dimension_numbers = #tpu.dot_dimension_numbers<[1], [0], [0], [1], [0, 0, 1, 1], [], []>} : vector<16x32xbf16>, vector<32x32xbf16>, vector<16x32xf32> -> vector<16x32xf32>
    %355 = vector.broadcast %197 : vector<1x32xf32> to vector<16x32xf32>
    %356 = arith.addf %354, %355 : vector<16x32xf32>
    %357 = arith.addf %169, %356 : vector<16x32xf32>
    %cst_203 = arith.constant dense<0.000000e+00> : vector<16xf32>
    %358 = vector.multi_reduction <add>, %357, %cst_203 [1] : vector<16x32xf32> to vector<16xf32>
    %359 = vector.shape_cast %358 : vector<16xf32> to vector<16x1xf32>
    %cst_204 = arith.constant 3.200000e+01 : f32
    %360 = vector.broadcast %cst_204 : f32 to vector<16x1xf32>
    %361 = arith.divf %359, %360 : vector<16x1xf32>
    %362 = vector.broadcast %361 : vector<16x1xf32> to vector<16x32xf32>
    %363 = arith.subf %357, %362 : vector<16x32xf32>
    %364 = arith.mulf %363, %363 : vector<16x32xf32>
    %cst_205 = arith.constant dense<0.000000e+00> : vector<16xf32>
    %365 = vector.multi_reduction <add>, %364, %cst_205 [1] : vector<16x32xf32> to vector<16xf32>
    %366 = vector.shape_cast %365 : vector<16xf32> to vector<16x1xf32>
    %cst_206 = arith.constant 3.200000e+01 : f32
    %367 = vector.broadcast %cst_206 : f32 to vector<16x1xf32>
    %368 = arith.divf %366, %367 : vector<16x1xf32>
    %369 = vector.broadcast %361 : vector<16x1xf32> to vector<16x32xf32>
    %370 = arith.subf %357, %369 : vector<16x32xf32>
    %cst_207 = arith.constant 9.99999996E-13 : f32
    %371 = vector.broadcast %cst_207 : f32 to vector<16x1xf32>
    %372 = arith.addf %368, %371 : vector<16x1xf32>
    %373 = math.rsqrt %372 : vector<16x1xf32>
    %374 = vector.broadcast %373 : vector<16x1xf32> to vector<16x32xf32>
    %375 = arith.mulf %370, %374 : vector<16x32xf32>
    %376 = vector.broadcast %198 : vector<1x32xf32> to vector<16x32xf32>
    %377 = arith.mulf %375, %376 : vector<16x32xf32>
    %378 = vector.broadcast %199 : vector<1x32xf32> to vector<16x32xf32>
    %379 = arith.addf %377, %378 : vector<16x32xf32>
    %380 = arith.truncf %379 : vector<16x32xf32> to vector<16x32xbf16>
    %cst_208 = arith.constant dense<0.000000e+00> : vector<16x64xf32>
    %381 = tpu.matmul %380, %191, %cst_208 {dimension_numbers = #tpu.dot_dimension_numbers<[1], [0], [0], [1], [0, 0, 1, 1], [], []>} : vector<16x32xbf16>, vector<32x64xbf16>, vector<16x64xf32> -> vector<16x64xf32>
    %382 = vector.broadcast %200 : vector<1x64xf32> to vector<16x64xf32>
    %383 = arith.addf %381, %382 : vector<16x64xf32>
    %384 = arith.mulf %383, %383 : vector<16x64xf32>
    %385 = arith.mulf %383, %384 : vector<16x64xf32>
    %cst_209 = arith.constant 4.471500e-02 : f32
    %386 = vector.broadcast %cst_209 : f32 to vector<16x64xf32>
    %387 = arith.mulf %386, %385 : vector<16x64xf32>
    %388 = arith.addf %383, %387 : vector<16x64xf32>
    %cst_210 = arith.constant 0.797884583 : f32
    %389 = vector.broadcast %cst_210 : f32 to vector<16x64xf32>
    %390 = arith.mulf %389, %388 : vector<16x64xf32>
    %391 = math.tanh %390 : vector<16x64xf32>
    %cst_211 = arith.constant 1.000000e+00 : f32
    %392 = vector.broadcast %cst_211 : f32 to vector<16x64xf32>
    %393 = arith.addf %392, %391 : vector<16x64xf32>
    %cst_212 = arith.constant 5.000000e-01 : f32
    %394 = vector.broadcast %cst_212 : f32 to vector<16x64xf32>
    %395 = arith.mulf %394, %393 : vector<16x64xf32>
    %396 = arith.mulf %383, %395 : vector<16x64xf32>
    %397 = arith.truncf %396 : vector<16x64xf32> to vector<16x64xbf16>
    %cst_213 = arith.constant dense<0.000000e+00> : vector<16x32xf32>
    %398 = tpu.matmul %397, %193, %cst_213 {dimension_numbers = #tpu.dot_dimension_numbers<[1], [0], [0], [1], [0, 0, 1, 1], [], []>} : vector<16x64xbf16>, vector<64x32xbf16>, vector<16x32xf32> -> vector<16x32xf32>
    %399 = vector.broadcast %201 : vector<1x32xf32> to vector<16x32xf32>
    %400 = arith.addf %398, %399 : vector<16x32xf32>
    %401 = arith.addf %379, %400 : vector<16x32xf32>
    %cst_214 = arith.constant dense<0.000000e+00> : vector<16xf32>
    %402 = vector.multi_reduction <add>, %401, %cst_214 [1] : vector<16x32xf32> to vector<16xf32>
    %403 = vector.shape_cast %402 : vector<16xf32> to vector<16x1xf32>
    %cst_215 = arith.constant 3.200000e+01 : f32
    %404 = vector.broadcast %cst_215 : f32 to vector<16x1xf32>
    %405 = arith.divf %403, %404 : vector<16x1xf32>
    %406 = vector.broadcast %405 : vector<16x1xf32> to vector<16x32xf32>
    %407 = arith.subf %401, %406 : vector<16x32xf32>
    %408 = arith.mulf %407, %407 : vector<16x32xf32>
    %cst_216 = arith.constant dense<0.000000e+00> : vector<16xf32>
    %409 = vector.multi_reduction <add>, %408, %cst_216 [1] : vector<16x32xf32> to vector<16xf32>
    %410 = vector.shape_cast %409 : vector<16xf32> to vector<16x1xf32>
    %cst_217 = arith.constant 3.200000e+01 : f32
    %411 = vector.broadcast %cst_217 : f32 to vector<16x1xf32>
    %412 = arith.divf %410, %411 : vector<16x1xf32>
    %413 = vector.broadcast %405 : vector<16x1xf32> to vector<16x32xf32>
    %414 = arith.subf %401, %413 : vector<16x32xf32>
    %cst_218 = arith.constant 9.99999996E-13 : f32
    %415 = vector.broadcast %cst_218 : f32 to vector<16x1xf32>
    %416 = arith.addf %412, %415 : vector<16x1xf32>
    %417 = math.rsqrt %416 : vector<16x1xf32>
    %418 = vector.broadcast %417 : vector<16x1xf32> to vector<16x32xf32>
    %419 = arith.mulf %414, %418 : vector<16x32xf32>
    %420 = vector.broadcast %202 : vector<1x32xf32> to vector<16x32xf32>
    %421 = arith.mulf %419, %420 : vector<16x32xf32>
    %422 = vector.broadcast %203 : vector<1x32xf32> to vector<16x32xf32>
    %423 = arith.addf %421, %422 : vector<16x32xf32>
    %c1_219 = arith.constant 1 : index
    %c0_220 = arith.constant 0 : index
    %c0_221 = arith.constant 0 : index
    %424 = vector.load %arg5[%c1_219, %c0_220, %c0_221] : memref<2x32x128xbf16, #tpu.memory_space<vmem>>, vector<1x32x128xbf16>
    %425 = vector.shape_cast %424 : vector<1x32x128xbf16> to vector<32x128xbf16>
    %c1_222 = arith.constant 1 : index
    %c0_223 = arith.constant 0 : index
    %c0_224 = arith.constant 0 : index
    %426 = vector.load %arg6[%c1_222, %c0_223, %c0_224] : memref<2x32x32xbf16, #tpu.memory_space<vmem>>, vector<1x32x32xbf16>
    %427 = vector.shape_cast %426 : vector<1x32x32xbf16> to vector<32x32xbf16>
    %c1_225 = arith.constant 1 : index
    %c0_226 = arith.constant 0 : index
    %c0_227 = arith.constant 0 : index
    %428 = vector.load %arg7[%c1_225, %c0_226, %c0_227] : memref<2x32x64xbf16, #tpu.memory_space<vmem>>, vector<1x32x64xbf16>
    %429 = vector.shape_cast %428 : vector<1x32x64xbf16> to vector<32x64xbf16>
    %c1_228 = arith.constant 1 : index
    %c0_229 = arith.constant 0 : index
    %c0_230 = arith.constant 0 : index
    %430 = vector.load %arg8[%c1_228, %c0_229, %c0_230] : memref<2x64x32xbf16, #tpu.memory_space<vmem>>, vector<1x64x32xbf16>
    %431 = vector.shape_cast %430 : vector<1x64x32xbf16> to vector<64x32xbf16>
    %c1_231 = arith.constant 1 : index
    %c0_232 = arith.constant 0 : index
    %c0_233 = arith.constant 0 : index
    %432 = vector.load %arg9[%c1_231, %c0_232, %c0_233] : memref<2x8x128xf32, #tpu.memory_space<vmem>>, vector<1x8x128xf32>
    %433 = vector.shape_cast %432 : vector<1x8x128xf32> to vector<8x128xf32>
    %434 = vector.extract_strided_slice %433 {offsets = [0, 0], sizes = [1, 128], strides = [1, 1]} : vector<8x128xf32> to vector<1x128xf32>
    %435 = vector.extract_strided_slice %433 {offsets = [1, 0], sizes = [1, 32], strides = [1, 1]} : vector<8x128xf32> to vector<1x32xf32>
    %436 = vector.extract_strided_slice %433 {offsets = [2, 0], sizes = [1, 32], strides = [1, 1]} : vector<8x128xf32> to vector<1x32xf32>
    %437 = vector.extract_strided_slice %433 {offsets = [3, 0], sizes = [1, 32], strides = [1, 1]} : vector<8x128xf32> to vector<1x32xf32>
    %438 = vector.extract_strided_slice %433 {offsets = [4, 0], sizes = [1, 64], strides = [1, 1]} : vector<8x128xf32> to vector<1x64xf32>
    %439 = vector.extract_strided_slice %433 {offsets = [5, 0], sizes = [1, 32], strides = [1, 1]} : vector<8x128xf32> to vector<1x32xf32>
    %440 = vector.extract_strided_slice %433 {offsets = [6, 0], sizes = [1, 32], strides = [1, 1]} : vector<8x128xf32> to vector<1x32xf32>
    %441 = vector.extract_strided_slice %433 {offsets = [7, 0], sizes = [1, 32], strides = [1, 1]} : vector<8x128xf32> to vector<1x32xf32>
    %442 = arith.truncf %423 : vector<16x32xf32> to vector<16x32xbf16>
    %cst_234 = arith.constant dense<0.000000e+00> : vector<16x128xf32>
    %443 = tpu.matmul %442, %425, %cst_234 {dimension_numbers = #tpu.dot_dimension_numbers<[1], [0], [0], [1], [0, 0, 1, 1], [], []>} : vector<16x32xbf16>, vector<32x128xbf16>, vector<16x128xf32> -> vector<16x128xf32>
    %444 = vector.broadcast %434 : vector<1x128xf32> to vector<16x128xf32>
    %445 = arith.addf %443, %444 : vector<16x128xf32>
    %446 = vector.extract_strided_slice %445 {offsets = [0, 0], sizes = [8, 8], strides = [1, 1]} : vector<16x128xf32> to vector<8x8xf32>
    %cst_235 = arith.constant 0.353553385 : f32
    %447 = vector.broadcast %cst_235 : f32 to vector<8x8xf32>
    %448 = arith.mulf %446, %447 : vector<8x8xf32>
    %449 = vector.extract_strided_slice %445 {offsets = [0, 32], sizes = [8, 8], strides = [1, 1]} : vector<16x128xf32> to vector<8x8xf32>
    %450 = vector.extract_strided_slice %445 {offsets = [0, 64], sizes = [8, 8], strides = [1, 1]} : vector<16x128xf32> to vector<8x8xf32>
    %cst_236 = arith.constant dense<0.000000e+00> : vector<8x8xf32>
    %451 = tpu.matmul %448, %449, %cst_236 {dimension_numbers = #tpu.dot_dimension_numbers<[1], [1], [0], [0], [0, 0, 1, 0], [], []>} : vector<8x8xf32>, vector<8x8xf32>, vector<8x8xf32> -> vector<8x8xf32>
    %452 = arith.addf %451, %177 : vector<8x8xf32>
    %cst_237 = arith.constant dense<0xFF800000> : vector<8xf32>
    %453 = vector.multi_reduction <maximumf>, %452, %cst_237 [1] : vector<8x8xf32> to vector<8xf32>
    %454 = vector.shape_cast %453 : vector<8xf32> to vector<8x1xf32>
    %455 = vector.broadcast %454 : vector<8x1xf32> to vector<8x8xf32>
    %456 = arith.subf %452, %455 : vector<8x8xf32>
    %457 = math.exp %456 : vector<8x8xf32>
    %cst_238 = arith.constant dense<0.000000e+00> : vector<8xf32>
    %458 = vector.multi_reduction <add>, %457, %cst_238 [1] : vector<8x8xf32> to vector<8xf32>
    %459 = vector.shape_cast %458 : vector<8xf32> to vector<8x1xf32>
    %460 = vector.broadcast %459 : vector<8x1xf32> to vector<8x8xf32>
    %461 = arith.divf %457, %460 : vector<8x8xf32>
    %cst_239 = arith.constant dense<0.000000e+00> : vector<8x8xf32>
    %462 = tpu.matmul %461, %450, %cst_239 {dimension_numbers = #tpu.dot_dimension_numbers<[1], [0], [0], [1], [0, 0, 1, 1], [], []>} : vector<8x8xf32>, vector<8x8xf32>, vector<8x8xf32> -> vector<8x8xf32>
    %c0_240 = arith.constant 0 : index
    %c0_241 = arith.constant 0 : index
    %463 = vector.load %arg15[%c0_240, %c0_241] : memref<16x32xf32, #tpu.memory_space<vmem>>, vector<8x8xf32>
    tpu.vector_store %arg15[%c0_240, %c0_241], %462 {strides = array<i32>} : memref<16x32xf32, #tpu.memory_space<vmem>>, vector<8x8xf32>,
    %464 = vector.extract_strided_slice %445 {offsets = [0, 8], sizes = [8, 8], strides = [1, 1]} : vector<16x128xf32> to vector<8x8xf32>
    %cst_242 = arith.constant 0.353553385 : f32
    %465 = vector.broadcast %cst_242 : f32 to vector<8x8xf32>
    %466 = arith.mulf %464, %465 : vector<8x8xf32>
    %467 = vector.extract_strided_slice %445 {offsets = [0, 40], sizes = [8, 8], strides = [1, 1]} : vector<16x128xf32> to vector<8x8xf32>
    %468 = vector.extract_strided_slice %445 {offsets = [0, 72], sizes = [8, 8], strides = [1, 1]} : vector<16x128xf32> to vector<8x8xf32>
    %cst_243 = arith.constant dense<0.000000e+00> : vector<8x8xf32>
    %469 = tpu.matmul %466, %467, %cst_243 {dimension_numbers = #tpu.dot_dimension_numbers<[1], [1], [0], [0], [0, 0, 1, 0], [], []>} : vector<8x8xf32>, vector<8x8xf32>, vector<8x8xf32> -> vector<8x8xf32>
    %470 = arith.addf %469, %177 : vector<8x8xf32>
    %cst_244 = arith.constant dense<0xFF800000> : vector<8xf32>
    %471 = vector.multi_reduction <maximumf>, %470, %cst_244 [1] : vector<8x8xf32> to vector<8xf32>
    %472 = vector.shape_cast %471 : vector<8xf32> to vector<8x1xf32>
    %473 = vector.broadcast %472 : vector<8x1xf32> to vector<8x8xf32>
    %474 = arith.subf %470, %473 : vector<8x8xf32>
    %475 = math.exp %474 : vector<8x8xf32>
    %cst_245 = arith.constant dense<0.000000e+00> : vector<8xf32>
    %476 = vector.multi_reduction <add>, %475, %cst_245 [1] : vector<8x8xf32> to vector<8xf32>
    %477 = vector.shape_cast %476 : vector<8xf32> to vector<8x1xf32>
    %478 = vector.broadcast %477 : vector<8x1xf32> to vector<8x8xf32>
    %479 = arith.divf %475, %478 : vector<8x8xf32>
    %cst_246 = arith.constant dense<0.000000e+00> : vector<8x8xf32>
    %480 = tpu.matmul %479, %468, %cst_246 {dimension_numbers = #tpu.dot_dimension_numbers<[1], [0], [0], [1], [0, 0, 1, 1], [], []>} : vector<8x8xf32>, vector<8x8xf32>, vector<8x8xf32> -> vector<8x8xf32>
    %c0_247 = arith.constant 0 : index
    %c8_248 = arith.constant 8 : index
    %481 = vector.load %arg15[%c0_247, %c8_248] : memref<16x32xf32, #tpu.memory_space<vmem>>, vector<8x8xf32>
    tpu.vector_store %arg15[%c0_247, %c8_248], %480 {strides = array<i32>} : memref<16x32xf32, #tpu.memory_space<vmem>>, vector<8x8xf32>,
    %482 = vector.extract_strided_slice %445 {offsets = [0, 16], sizes = [8, 8], strides = [1, 1]} : vector<16x128xf32> to vector<8x8xf32>
    %cst_249 = arith.constant 0.353553385 : f32
    %483 = vector.broadcast %cst_249 : f32 to vector<8x8xf32>
    %484 = arith.mulf %482, %483 : vector<8x8xf32>
    %485 = vector.extract_strided_slice %445 {offsets = [0, 48], sizes = [8, 8], strides = [1, 1]} : vector<16x128xf32> to vector<8x8xf32>
    %486 = vector.extract_strided_slice %445 {offsets = [0, 80], sizes = [8, 8], strides = [1, 1]} : vector<16x128xf32> to vector<8x8xf32>
    %cst_250 = arith.constant dense<0.000000e+00> : vector<8x8xf32>
    %487 = tpu.matmul %484, %485, %cst_250 {dimension_numbers = #tpu.dot_dimension_numbers<[1], [1], [0], [0], [0, 0, 1, 0], [], []>} : vector<8x8xf32>, vector<8x8xf32>, vector<8x8xf32> -> vector<8x8xf32>
    %488 = arith.addf %487, %177 : vector<8x8xf32>
    %cst_251 = arith.constant dense<0xFF800000> : vector<8xf32>
    %489 = vector.multi_reduction <maximumf>, %488, %cst_251 [1] : vector<8x8xf32> to vector<8xf32>
    %490 = vector.shape_cast %489 : vector<8xf32> to vector<8x1xf32>
    %491 = vector.broadcast %490 : vector<8x1xf32> to vector<8x8xf32>
    %492 = arith.subf %488, %491 : vector<8x8xf32>
    %493 = math.exp %492 : vector<8x8xf32>
    %cst_252 = arith.constant dense<0.000000e+00> : vector<8xf32>
    %494 = vector.multi_reduction <add>, %493, %cst_252 [1] : vector<8x8xf32> to vector<8xf32>
    %495 = vector.shape_cast %494 : vector<8xf32> to vector<8x1xf32>
    %496 = vector.broadcast %495 : vector<8x1xf32> to vector<8x8xf32>
    %497 = arith.divf %493, %496 : vector<8x8xf32>
    %cst_253 = arith.constant dense<0.000000e+00> : vector<8x8xf32>
    %498 = tpu.matmul %497, %486, %cst_253 {dimension_numbers = #tpu.dot_dimension_numbers<[1], [0], [0], [1], [0, 0, 1, 1], [], []>} : vector<8x8xf32>, vector<8x8xf32>, vector<8x8xf32> -> vector<8x8xf32>
    %c0_254 = arith.constant 0 : index
    %c16_255 = arith.constant 16 : index
    %499 = vector.load %arg15[%c0_254, %c16_255] : memref<16x32xf32, #tpu.memory_space<vmem>>, vector<8x8xf32>
    tpu.vector_store %arg15[%c0_254, %c16_255], %498 {strides = array<i32>} : memref<16x32xf32, #tpu.memory_space<vmem>>, vector<8x8xf32>,
    %500 = vector.extract_strided_slice %445 {offsets = [0, 24], sizes = [8, 8], strides = [1, 1]} : vector<16x128xf32> to vector<8x8xf32>
    %cst_256 = arith.constant 0.353553385 : f32
    %501 = vector.broadcast %cst_256 : f32 to vector<8x8xf32>
    %502 = arith.mulf %500, %501 : vector<8x8xf32>
    %503 = vector.extract_strided_slice %445 {offsets = [0, 56], sizes = [8, 8], strides = [1, 1]} : vector<16x128xf32> to vector<8x8xf32>
    %504 = vector.extract_strided_slice %445 {offsets = [0, 88], sizes = [8, 8], strides = [1, 1]} : vector<16x128xf32> to vector<8x8xf32>
    %cst_257 = arith.constant dense<0.000000e+00> : vector<8x8xf32>
    %505 = tpu.matmul %502, %503, %cst_257 {dimension_numbers = #tpu.dot_dimension_numbers<[1], [1], [0], [0], [0, 0, 1, 0], [], []>} : vector<8x8xf32>, vector<8x8xf32>, vector<8x8xf32> -> vector<8x8xf32>
    %506 = arith.addf %505, %177 : vector<8x8xf32>
    %cst_258 = arith.constant dense<0xFF800000> : vector<8xf32>
    %507 = vector.multi_reduction <maximumf>, %506, %cst_258 [1] : vector<8x8xf32> to vector<8xf32>
    %508 = vector.shape_cast %507 : vector<8xf32> to vector<8x1xf32>
    %509 = vector.broadcast %508 : vector<8x1xf32> to vector<8x8xf32>
    %510 = arith.subf %506, %509 : vector<8x8xf32>
    %511 = math.exp %510 : vector<8x8xf32>
    %cst_259 = arith.constant dense<0.000000e+00> : vector<8xf32>
    %512 = vector.multi_reduction <add>, %511, %cst_259 [1] : vector<8x8xf32> to vector<8xf32>
    %513 = vector.shape_cast %512 : vector<8xf32> to vector<8x1xf32>
    %514 = vector.broadcast %513 : vector<8x1xf32> to vector<8x8xf32>
    %515 = arith.divf %511, %514 : vector<8x8xf32>
    %cst_260 = arith.constant dense<0.000000e+00> : vector<8x8xf32>
    %516 = tpu.matmul %515, %504, %cst_260 {dimension_numbers = #tpu.dot_dimension_numbers<[1], [0], [0], [1], [0, 0, 1, 1], [], []>} : vector<8x8xf32>, vector<8x8xf32>, vector<8x8xf32> -> vector<8x8xf32>
    %c0_261 = arith.constant 0 : index
    %c24_262 = arith.constant 24 : index
    %517 = vector.load %arg15[%c0_261, %c24_262] : memref<16x32xf32, #tpu.memory_space<vmem>>, vector<8x8xf32>
    tpu.vector_store %arg15[%c0_261, %c24_262], %516 {strides = array<i32>} : memref<16x32xf32, #tpu.memory_space<vmem>>, vector<8x8xf32>,
    %518 = vector.extract_strided_slice %445 {offsets = [8, 0], sizes = [8, 8], strides = [1, 1]} : vector<16x128xf32> to vector<8x8xf32>
    %cst_263 = arith.constant 0.353553385 : f32
    %519 = vector.broadcast %cst_263 : f32 to vector<8x8xf32>
    %520 = arith.mulf %518, %519 : vector<8x8xf32>
    %521 = vector.extract_strided_slice %445 {offsets = [8, 32], sizes = [8, 8], strides = [1, 1]} : vector<16x128xf32> to vector<8x8xf32>
    %522 = vector.extract_strided_slice %445 {offsets = [8, 64], sizes = [8, 8], strides = [1, 1]} : vector<16x128xf32> to vector<8x8xf32>
    %cst_264 = arith.constant dense<0.000000e+00> : vector<8x8xf32>
    %523 = tpu.matmul %520, %521, %cst_264 {dimension_numbers = #tpu.dot_dimension_numbers<[1], [1], [0], [0], [0, 0, 1, 0], [], []>} : vector<8x8xf32>, vector<8x8xf32>, vector<8x8xf32> -> vector<8x8xf32>
    %524 = arith.addf %523, %185 : vector<8x8xf32>
    %cst_265 = arith.constant dense<0xFF800000> : vector<8xf32>
    %525 = vector.multi_reduction <maximumf>, %524, %cst_265 [1] : vector<8x8xf32> to vector<8xf32>
    %526 = vector.shape_cast %525 : vector<8xf32> to vector<8x1xf32>
    %527 = vector.broadcast %526 : vector<8x1xf32> to vector<8x8xf32>
    %528 = arith.subf %524, %527 : vector<8x8xf32>
    %529 = math.exp %528 : vector<8x8xf32>
    %cst_266 = arith.constant dense<0.000000e+00> : vector<8xf32>
    %530 = vector.multi_reduction <add>, %529, %cst_266 [1] : vector<8x8xf32> to vector<8xf32>
    %531 = vector.shape_cast %530 : vector<8xf32> to vector<8x1xf32>
    %532 = vector.broadcast %531 : vector<8x1xf32> to vector<8x8xf32>
    %533 = arith.divf %529, %532 : vector<8x8xf32>
    %cst_267 = arith.constant dense<0.000000e+00> : vector<8x8xf32>
    %534 = tpu.matmul %533, %522, %cst_267 {dimension_numbers = #tpu.dot_dimension_numbers<[1], [0], [0], [1], [0, 0, 1, 1], [], []>} : vector<8x8xf32>, vector<8x8xf32>, vector<8x8xf32> -> vector<8x8xf32>
    %c8_268 = arith.constant 8 : index
    %c0_269 = arith.constant 0 : index
    %535 = vector.load %arg15[%c8_268, %c0_269] : memref<16x32xf32, #tpu.memory_space<vmem>>, vector<8x8xf32>
    tpu.vector_store %arg15[%c8_268, %c0_269], %534 {strides = array<i32>} : memref<16x32xf32, #tpu.memory_space<vmem>>, vector<8x8xf32>,
    %536 = vector.extract_strided_slice %445 {offsets = [8, 8], sizes = [8, 8], strides = [1, 1]} : vector<16x128xf32> to vector<8x8xf32>
    %cst_270 = arith.constant 0.353553385 : f32
    %537 = vector.broadcast %cst_270 : f32 to vector<8x8xf32>
    %538 = arith.mulf %536, %537 : vector<8x8xf32>
    %539 = vector.extract_strided_slice %445 {offsets = [8, 40], sizes = [8, 8], strides = [1, 1]} : vector<16x128xf32> to vector<8x8xf32>
    %540 = vector.extract_strided_slice %445 {offsets = [8, 72], sizes = [8, 8], strides = [1, 1]} : vector<16x128xf32> to vector<8x8xf32>
    %cst_271 = arith.constant dense<0.000000e+00> : vector<8x8xf32>
    %541 = tpu.matmul %538, %539, %cst_271 {dimension_numbers = #tpu.dot_dimension_numbers<[1], [1], [0], [0], [0, 0, 1, 0], [], []>} : vector<8x8xf32>, vector<8x8xf32>, vector<8x8xf32> -> vector<8x8xf32>
    %542 = arith.addf %541, %185 : vector<8x8xf32>
    %cst_272 = arith.constant dense<0xFF800000> : vector<8xf32>
    %543 = vector.multi_reduction <maximumf>, %542, %cst_272 [1] : vector<8x8xf32> to vector<8xf32>
    %544 = vector.shape_cast %543 : vector<8xf32> to vector<8x1xf32>
    %545 = vector.broadcast %544 : vector<8x1xf32> to vector<8x8xf32>
    %546 = arith.subf %542, %545 : vector<8x8xf32>
    %547 = math.exp %546 : vector<8x8xf32>
    %cst_273 = arith.constant dense<0.000000e+00> : vector<8xf32>
    %548 = vector.multi_reduction <add>, %547, %cst_273 [1] : vector<8x8xf32> to vector<8xf32>
    %549 = vector.shape_cast %548 : vector<8xf32> to vector<8x1xf32>
    %550 = vector.broadcast %549 : vector<8x1xf32> to vector<8x8xf32>
    %551 = arith.divf %547, %550 : vector<8x8xf32>
    %cst_274 = arith.constant dense<0.000000e+00> : vector<8x8xf32>
    %552 = tpu.matmul %551, %540, %cst_274 {dimension_numbers = #tpu.dot_dimension_numbers<[1], [0], [0], [1], [0, 0, 1, 1], [], []>} : vector<8x8xf32>, vector<8x8xf32>, vector<8x8xf32> -> vector<8x8xf32>
    %c8_275 = arith.constant 8 : index
    %c8_276 = arith.constant 8 : index
    %553 = vector.load %arg15[%c8_275, %c8_276] : memref<16x32xf32, #tpu.memory_space<vmem>>, vector<8x8xf32>
    tpu.vector_store %arg15[%c8_275, %c8_276], %552 {strides = array<i32>} : memref<16x32xf32, #tpu.memory_space<vmem>>, vector<8x8xf32>,
    %554 = vector.extract_strided_slice %445 {offsets = [8, 16], sizes = [8, 8], strides = [1, 1]} : vector<16x128xf32> to vector<8x8xf32>
    %cst_277 = arith.constant 0.353553385 : f32
    %555 = vector.broadcast %cst_277 : f32 to vector<8x8xf32>
    %556 = arith.mulf %554, %555 : vector<8x8xf32>
    %557 = vector.extract_strided_slice %445 {offsets = [8, 48], sizes = [8, 8], strides = [1, 1]} : vector<16x128xf32> to vector<8x8xf32>
    %558 = vector.extract_strided_slice %445 {offsets = [8, 80], sizes = [8, 8], strides = [1, 1]} : vector<16x128xf32> to vector<8x8xf32>
    %cst_278 = arith.constant dense<0.000000e+00> : vector<8x8xf32>
    %559 = tpu.matmul %556, %557, %cst_278 {dimension_numbers = #tpu.dot_dimension_numbers<[1], [1], [0], [0], [0, 0, 1, 0], [], []>} : vector<8x8xf32>, vector<8x8xf32>, vector<8x8xf32> -> vector<8x8xf32>
    %560 = arith.addf %559, %185 : vector<8x8xf32>
    %cst_279 = arith.constant dense<0xFF800000> : vector<8xf32>
    %561 = vector.multi_reduction <maximumf>, %560, %cst_279 [1] : vector<8x8xf32> to vector<8xf32>
    %562 = vector.shape_cast %561 : vector<8xf32> to vector<8x1xf32>
    %563 = vector.broadcast %562 : vector<8x1xf32> to vector<8x8xf32>
    %564 = arith.subf %560, %563 : vector<8x8xf32>
    %565 = math.exp %564 : vector<8x8xf32>
    %cst_280 = arith.constant dense<0.000000e+00> : vector<8xf32>
    %566 = vector.multi_reduction <add>, %565, %cst_280 [1] : vector<8x8xf32> to vector<8xf32>
    %567 = vector.shape_cast %566 : vector<8xf32> to vector<8x1xf32>
    %568 = vector.broadcast %567 : vector<8x1xf32> to vector<8x8xf32>
    %569 = arith.divf %565, %568 : vector<8x8xf32>
    %cst_281 = arith.constant dense<0.000000e+00> : vector<8x8xf32>
    %570 = tpu.matmul %569, %558, %cst_281 {dimension_numbers = #tpu.dot_dimension_numbers<[1], [0], [0], [1], [0, 0, 1, 1], [], []>} : vector<8x8xf32>, vector<8x8xf32>, vector<8x8xf32> -> vector<8x8xf32>
    %c8_282 = arith.constant 8 : index
    %c16_283 = arith.constant 16 : index
    %571 = vector.load %arg15[%c8_282, %c16_283] : memref<16x32xf32, #tpu.memory_space<vmem>>, vector<8x8xf32>
    tpu.vector_store %arg15[%c8_282, %c16_283], %570 {strides = array<i32>} : memref<16x32xf32, #tpu.memory_space<vmem>>, vector<8x8xf32>,
    %572 = vector.extract_strided_slice %445 {offsets = [8, 24], sizes = [8, 8], strides = [1, 1]} : vector<16x128xf32> to vector<8x8xf32>
    %cst_284 = arith.constant 0.353553385 : f32
    %573 = vector.broadcast %cst_284 : f32 to vector<8x8xf32>
    %574 = arith.mulf %572, %573 : vector<8x8xf32>
    %575 = vector.extract_strided_slice %445 {offsets = [8, 56], sizes = [8, 8], strides = [1, 1]} : vector<16x128xf32> to vector<8x8xf32>
    %576 = vector.extract_strided_slice %445 {offsets = [8, 88], sizes = [8, 8], strides = [1, 1]} : vector<16x128xf32> to vector<8x8xf32>
    %cst_285 = arith.constant dense<0.000000e+00> : vector<8x8xf32>
    %577 = tpu.matmul %574, %575, %cst_285 {dimension_numbers = #tpu.dot_dimension_numbers<[1], [1], [0], [0], [0, 0, 1, 0], [], []>} : vector<8x8xf32>, vector<8x8xf32>, vector<8x8xf32> -> vector<8x8xf32>
    %578 = arith.addf %577, %185 : vector<8x8xf32>
    %cst_286 = arith.constant dense<0xFF800000> : vector<8xf32>
    %579 = vector.multi_reduction <maximumf>, %578, %cst_286 [1] : vector<8x8xf32> to vector<8xf32>
    %580 = vector.shape_cast %579 : vector<8xf32> to vector<8x1xf32>
    %581 = vector.broadcast %580 : vector<8x1xf32> to vector<8x8xf32>
    %582 = arith.subf %578, %581 : vector<8x8xf32>
    %583 = math.exp %582 : vector<8x8xf32>
    %cst_287 = arith.constant dense<0.000000e+00> : vector<8xf32>
    %584 = vector.multi_reduction <add>, %583, %cst_287 [1] : vector<8x8xf32> to vector<8xf32>
    %585 = vector.shape_cast %584 : vector<8xf32> to vector<8x1xf32>
    %586 = vector.broadcast %585 : vector<8x1xf32> to vector<8x8xf32>
    %587 = arith.divf %583, %586 : vector<8x8xf32>
    %cst_288 = arith.constant dense<0.000000e+00> : vector<8x8xf32>
    %588 = tpu.matmul %587, %576, %cst_288 {dimension_numbers = #tpu.dot_dimension_numbers<[1], [0], [0], [1], [0, 0, 1, 1], [], []>} : vector<8x8xf32>, vector<8x8xf32>, vector<8x8xf32> -> vector<8x8xf32>
    %c8_289 = arith.constant 8 : index
    %c24_290 = arith.constant 24 : index
    %589 = vector.load %arg15[%c8_289, %c24_290] : memref<16x32xf32, #tpu.memory_space<vmem>>, vector<8x8xf32>
    tpu.vector_store %arg15[%c8_289, %c24_290], %588 {strides = array<i32>} : memref<16x32xf32, #tpu.memory_space<vmem>>, vector<8x8xf32>,
    %c0_291 = arith.constant 0 : index
    %c0_292 = arith.constant 0 : index
    %590 = vector.load %arg15[%c0_291, %c0_292] : memref<16x32xf32, #tpu.memory_space<vmem>>, vector<16x32xf32>
    %591 = arith.truncf %590 : vector<16x32xf32> to vector<16x32xbf16>
    %cst_293 = arith.constant dense<0.000000e+00> : vector<16x32xf32>
    %592 = tpu.matmul %591, %427, %cst_293 {dimension_numbers = #tpu.dot_dimension_numbers<[1], [0], [0], [1], [0, 0, 1, 1], [], []>} : vector<16x32xbf16>, vector<32x32xbf16>, vector<16x32xf32> -> vector<16x32xf32>
    %593 = vector.broadcast %435 : vector<1x32xf32> to vector<16x32xf32>
    %594 = arith.addf %592, %593 : vector<16x32xf32>
    %595 = arith.addf %423, %594 : vector<16x32xf32>
    %cst_294 = arith.constant dense<0.000000e+00> : vector<16xf32>
    %596 = vector.multi_reduction <add>, %595, %cst_294 [1] : vector<16x32xf32> to vector<16xf32>
    %597 = vector.shape_cast %596 : vector<16xf32> to vector<16x1xf32>
    %cst_295 = arith.constant 3.200000e+01 : f32
    %598 = vector.broadcast %cst_295 : f32 to vector<16x1xf32>
    %599 = arith.divf %597, %598 : vector<16x1xf32>
    %600 = vector.broadcast %599 : vector<16x1xf32> to vector<16x32xf32>
    %601 = arith.subf %595, %600 : vector<16x32xf32>
    %602 = arith.mulf %601, %601 : vector<16x32xf32>
    %cst_296 = arith.constant dense<0.000000e+00> : vector<16xf32>
    %603 = vector.multi_reduction <add>, %602, %cst_296 [1] : vector<16x32xf32> to vector<16xf32>
    %604 = vector.shape_cast %603 : vector<16xf32> to vector<16x1xf32>
    %cst_297 = arith.constant 3.200000e+01 : f32
    %605 = vector.broadcast %cst_297 : f32 to vector<16x1xf32>
    %606 = arith.divf %604, %605 : vector<16x1xf32>
    %607 = vector.broadcast %599 : vector<16x1xf32> to vector<16x32xf32>
    %608 = arith.subf %595, %607 : vector<16x32xf32>
    %cst_298 = arith.constant 9.99999996E-13 : f32
    %609 = vector.broadcast %cst_298 : f32 to vector<16x1xf32>
    %610 = arith.addf %606, %609 : vector<16x1xf32>
    %611 = math.rsqrt %610 : vector<16x1xf32>
    %612 = vector.broadcast %611 : vector<16x1xf32> to vector<16x32xf32>
    %613 = arith.mulf %608, %612 : vector<16x32xf32>
    %614 = vector.broadcast %436 : vector<1x32xf32> to vector<16x32xf32>
    %615 = arith.mulf %613, %614 : vector<16x32xf32>
    %616 = vector.broadcast %437 : vector<1x32xf32> to vector<16x32xf32>
    %617 = arith.addf %615, %616 : vector<16x32xf32>
    %618 = arith.truncf %617 : vector<16x32xf32> to vector<16x32xbf16>
    %cst_299 = arith.constant dense<0.000000e+00> : vector<16x64xf32>
    %619 = tpu.matmul %618, %429, %cst_299 {dimension_numbers = #tpu.dot_dimension_numbers<[1], [0], [0], [1], [0, 0, 1, 1], [], []>} : vector<16x32xbf16>, vector<32x64xbf16>, vector<16x64xf32> -> vector<16x64xf32>
    %620 = vector.broadcast %438 : vector<1x64xf32> to vector<16x64xf32>
    %621 = arith.addf %619, %620 : vector<16x64xf32>
    %622 = arith.mulf %621, %621 : vector<16x64xf32>
    %623 = arith.mulf %621, %622 : vector<16x64xf32>
    %cst_300 = arith.constant 4.471500e-02 : f32
    %624 = vector.broadcast %cst_300 : f32 to vector<16x64xf32>
    %625 = arith.mulf %624, %623 : vector<16x64xf32>
    %626 = arith.addf %621, %625 : vector<16x64xf32>
    %cst_301 = arith.constant 0.797884583 : f32
    %627 = vector.broadcast %cst_301 : f32 to vector<16x64xf32>
    %628 = arith.mulf %627, %626 : vector<16x64xf32>
    %629 = math.tanh %628 : vector<16x64xf32>
    %cst_302 = arith.constant 1.000000e+00 : f32
    %630 = vector.broadcast %cst_302 : f32 to vector<16x64xf32>
    %631 = arith.addf %630, %629 : vector<16x64xf32>
    %cst_303 = arith.constant 5.000000e-01 : f32
    %632 = vector.broadcast %cst_303 : f32 to vector<16x64xf32>
    %633 = arith.mulf %632, %631 : vector<16x64xf32>
    %634 = arith.mulf %621, %633 : vector<16x64xf32>
    %635 = arith.truncf %634 : vector<16x64xf32> to vector<16x64xbf16>
    %cst_304 = arith.constant dense<0.000000e+00> : vector<16x32xf32>
    %636 = tpu.matmul %635, %431, %cst_304 {dimension_numbers = #tpu.dot_dimension_numbers<[1], [0], [0], [1], [0, 0, 1, 1], [], []>} : vector<16x64xbf16>, vector<64x32xbf16>, vector<16x32xf32> -> vector<16x32xf32>
    %637 = vector.broadcast %439 : vector<1x32xf32> to vector<16x32xf32>
    %638 = arith.addf %636, %637 : vector<16x32xf32>
    %639 = arith.addf %617, %638 : vector<16x32xf32>
    %cst_305 = arith.constant dense<0.000000e+00> : vector<16xf32>
    %640 = vector.multi_reduction <add>, %639, %cst_305 [1] : vector<16x32xf32> to vector<16xf32>
    %641 = vector.shape_cast %640 : vector<16xf32> to vector<16x1xf32>
    %cst_306 = arith.constant 3.200000e+01 : f32
    %642 = vector.broadcast %cst_306 : f32 to vector<16x1xf32>
    %643 = arith.divf %641, %642 : vector<16x1xf32>
    %644 = vector.broadcast %643 : vector<16x1xf32> to vector<16x32xf32>
    %645 = arith.subf %639, %644 : vector<16x32xf32>
    %646 = arith.mulf %645, %645 : vector<16x32xf32>
    %cst_307 = arith.constant dense<0.000000e+00> : vector<16xf32>
    %647 = vector.multi_reduction <add>, %646, %cst_307 [1] : vector<16x32xf32> to vector<16xf32>
    %648 = vector.shape_cast %647 : vector<16xf32> to vector<16x1xf32>
    %cst_308 = arith.constant 3.200000e+01 : f32
    %649 = vector.broadcast %cst_308 : f32 to vector<16x1xf32>
    %650 = arith.divf %648, %649 : vector<16x1xf32>
    %651 = vector.broadcast %643 : vector<16x1xf32> to vector<16x32xf32>
    %652 = arith.subf %639, %651 : vector<16x32xf32>
    %cst_309 = arith.constant 9.99999996E-13 : f32
    %653 = vector.broadcast %cst_309 : f32 to vector<16x1xf32>
    %654 = arith.addf %650, %653 : vector<16x1xf32>
    %655 = math.rsqrt %654 : vector<16x1xf32>
    %656 = vector.broadcast %655 : vector<16x1xf32> to vector<16x32xf32>
    %657 = arith.mulf %652, %656 : vector<16x32xf32>
    %658 = vector.broadcast %440 : vector<1x32xf32> to vector<16x32xf32>
    %659 = arith.mulf %657, %658 : vector<16x32xf32>
    %660 = vector.broadcast %441 : vector<1x32xf32> to vector<16x32xf32>
    %661 = arith.addf %659, %660 : vector<16x32xf32>
    %662 = vector.extract_strided_slice %661 {offsets = [0, 0], sizes = [1, 32], strides = [1, 1]} : vector<16x32xf32> to vector<1x32xf32>
    %663 = vector.extract_strided_slice %661 {offsets = [8, 0], sizes = [1, 32], strides = [1, 1]} : vector<16x32xf32> to vector<1x32xf32>
    %664 = tpu.concatenate %662, %663 in 0 : vector<1x32xf32>, vector<1x32xf32> -> vector<2x32xf32>
    %665 = arith.truncf %664 : vector<2x32xf32> to vector<2x32xbf16>
    %c0_310 = arith.constant 0 : index
    %c0_311 = arith.constant 0 : index
    %666 = vector.load %arg10[%c0_310, %c0_311] : memref<32x32xbf16, #tpu.memory_space<vmem>>, vector<32x32xbf16>
    %cst_312 = arith.constant dense<0.000000e+00> : vector<2x32xf32>
    %667 = tpu.matmul %665, %666, %cst_312 {dimension_numbers = #tpu.dot_dimension_numbers<[1], [0], [0], [1], [0, 0, 1, 1], [], []>} : vector<2x32xbf16>, vector<32x32xbf16>, vector<2x32xf32> -> vector<2x32xf32>
    %c0_313 = arith.constant 0 : index
    %c0_314 = arith.constant 0 : index
    %668 = vector.load %arg12[%c0_313, %c0_314] : memref<4x128xf32, #tpu.memory_space<vmem>>, vector<1x32xf32>
    %669 = vector.broadcast %668 : vector<1x32xf32> to vector<2x32xf32>
    %670 = arith.addf %667, %669 : vector<2x32xf32>
    %671 = math.tanh %670 : vector<2x32xf32>
    %672 = arith.truncf %671 : vector<2x32xf32> to vector<2x32xbf16>
    %c0_315 = arith.constant 0 : index
    %c0_316 = arith.constant 0 : index
    %673 = vector.load %arg11[%c0_315, %c0_316] : memref<32x128xbf16, #tpu.memory_space<vmem>>, vector<32x128xbf16>
    %cst_317 = arith.constant dense<0.000000e+00> : vector<2x128xf32>
    %674 = tpu.matmul %672, %673, %cst_317 {dimension_numbers = #tpu.dot_dimension_numbers<[1], [0], [0], [1], [0, 0, 1, 1], [], []>} : vector<2x32xbf16>, vector<32x128xbf16>, vector<2x128xf32> -> vector<2x128xf32>
    %c1_318 = arith.constant 1 : index
    %c0_319 = arith.constant 0 : index
    %675 = vector.load %arg12[%c1_318, %c0_319] : memref<4x128xf32, #tpu.memory_space<vmem>>, vector<1x128xf32>
    %676 = vector.broadcast %675 : vector<1x128xf32> to vector<2x128xf32>
    %677 = arith.addf %674, %676 : vector<2x128xf32>
    %678 = vector.extract_strided_slice %677 {offsets = [0, 0], sizes = [1, 128], strides = [1, 1]} : vector<2x128xf32> to vector<1x128xf32>
    %c0_320 = arith.constant 0 : index
    %c0_321 = arith.constant 0 : index
    %c0_322 = arith.constant 0 : index
    %679 = vector.load %arg13[%c0_320, %c0_321, %c0_322] : memref<2x1x128xf32, #tpu.memory_space<vmem>>, vector<1x1x128xf32>
    %680 = vector.shape_cast %679 : vector<1x1x128xf32> to vector<1x128xf32>
    %681 = vector.shape_cast %678 : vector<1x128xf32> to vector<1x1x128xf32>
    tpu.vector_store %arg13[%c0_320, %c0_321, %c0_322], %681 {strides = array<i32>} : memref<2x1x128xf32, #tpu.memory_space<vmem>>, vector<1x1x128xf32>,
    %682 = vector.extract_strided_slice %677 {offsets = [1, 0], sizes = [1, 128], strides = [1, 1]} : vector<2x128xf32> to vector<1x128xf32>
    %c1_323 = arith.constant 1 : index
    %c0_324 = arith.constant 0 : index
    %c0_325 = arith.constant 0 : index
    %683 = vector.load %arg13[%c1_323, %c0_324, %c0_325] : memref<2x1x128xf32, #tpu.memory_space<vmem>>, vector<1x1x128xf32>
    %684 = vector.shape_cast %683 : vector<1x1x128xf32> to vector<1x128xf32>
    %685 = vector.shape_cast %682 : vector<1x128xf32> to vector<1x1x128xf32>
    tpu.vector_store %arg13[%c1_323, %c0_324, %c0_325], %685 {strides = array<i32>} : memref<2x1x128xf32, #tpu.memory_space<vmem>>, vector<1x1x128xf32>,
    return
  }
  func.func @transform_0(%arg0: i32, %arg1: memref<2x8xi32, #tpu.memory_space<smem>>) -> (i32, i32, i32) {
    %c0_i32 = arith.constant 0 : i32
    %c0_i32_0 = arith.constant 0 : i32
    %c0_i32_1 = arith.constant 0 : i32
    return %arg0, %c0_i32, %c0_i32_0 : i32, i32, i32
  }
  func.func @transform_1(%arg0: i32, %arg1: memref<2x8xi32, #tpu.memory_space<smem>>) -> (i32, i32, i32) {
    %c0_i32 = arith.constant 0 : i32
    %c0_i32_0 = arith.constant 0 : i32
    %c0_i32_1 = arith.constant 0 : i32
    %c0_i32_2 = arith.constant 0 : i32
    return %c0_i32, %c0_i32_0, %c0_i32_1 : i32, i32, i32
  }
  func.func @transform_2(%arg0: i32, %arg1: memref<2x8xi32, #tpu.memory_space<smem>>) -> (i32, i32) {
    %c0_i32 = arith.constant 0 : i32
    %c0_i32_0 = arith.constant 0 : i32
    %c0_i32_1 = arith.constant 0 : i32
    return %c0_i32, %c0_i32_0 : i32, i32
  }
  func.func @transform_3(%arg0: i32, %arg1: memref<2x8xi32, #tpu.memory_space<smem>>) -> (i32, i32, i32) {
    %c0_i32 = arith.constant 0 : i32
    %c0_i32_0 = arith.constant 0 : i32
    %c0_i32_1 = arith.constant 0 : i32
    %c0_i32_2 = arith.constant 0 : i32
    return %c0_i32, %c0_i32_0, %c0_i32_1 : i32, i32, i32
  }
  func.func @transform_4(%arg0: i32, %arg1: memref<2x8xi32, #tpu.memory_space<smem>>) -> (i32, i32, i32) {
    %c0_i32 = arith.constant 0 : i32
    %c0_i32_0 = arith.constant 0 : i32
    %c0_i32_1 = arith.constant 0 : i32
    %c0_i32_2 = arith.constant 0 : i32
    return %c0_i32, %c0_i32_0, %c0_i32_1 : i32, i32, i32
  }
  func.func @transform_5(%arg0: i32, %arg1: memref<2x8xi32, #tpu.memory_space<smem>>) -> (i32, i32, i32) {
    %c0_i32 = arith.constant 0 : i32
    %c0_i32_0 = arith.constant 0 : i32
    %c0_i32_1 = arith.constant 0 : i32
    %c0_i32_2 = arith.constant 0 : i32
    return %c0_i32, %c0_i32_0, %c0_i32_1 : i32, i32, i32
  }
  func.func @transform_6(%arg0: i32, %arg1: memref<2x8xi32, #tpu.memory_space<smem>>) -> (i32, i32, i32) {
    %c0_i32 = arith.constant 0 : i32
    %c0_i32_0 = arith.constant 0 : i32
    %c0_i32_1 = arith.constant 0 : i32
    %c0_i32_2 = arith.constant 0 : i32
    return %c0_i32, %c0_i32_0, %c0_i32_1 : i32, i32, i32
  }
  func.func @transform_7(%arg0: i32, %arg1: memref<2x8xi32, #tpu.memory_space<smem>>) -> (i32, i32, i32) {
    %c0_i32 = arith.constant 0 : i32
    %c0_i32_0 = arith.constant 0 : i32
    %c0_i32_1 = arith.constant 0 : i32
    %c0_i32_2 = arith.constant 0 : i32
    return %c0_i32, %c0_i32_0, %c0_i32_1 : i32, i32, i32
  }
  func.func @transform_8(%arg0: i32, %arg1: memref<2x8xi32, #tpu.memory_space<smem>>) -> (i32, i32) {
    %c0_i32 = arith.constant 0 : i32
    %c0_i32_0 = arith.constant 0 : i32
    %c0_i32_1 = arith.constant 0 : i32
    return %c0_i32, %c0_i32_0 : i32, i32
  }
  func.func @transform_9(%arg0: i32, %arg1: memref<2x8xi32, #tpu.memory_space<smem>>) -> (i32, i32) {
    %c0_i32 = arith.constant 0 : i32
    %c0_i32_0 = arith.constant 0 : i32
    %c0_i32_1 = arith.constant 0 : i32
    return %c0_i32, %c0_i32_0 : i32, i32
  }
  func.func @transform_10(%arg0: i32, %arg1: memref<2x8xi32, #tpu.memory_space<smem>>) -> (i32, i32) {
    %c0_i32 = arith.constant 0 : i32
    %c0_i32_0 = arith.constant 0 : i32
    %c0_i32_1 = arith.constant 0 : i32
    return %c0_i32, %c0_i32_0 : i32, i32
  }
  func.func @transform_11(%arg0: i32, %arg1: memref<2x8xi32, #tpu.memory_space<smem>>) -> (i32, i32, i32) {
    %c0_i32 = arith.constant 0 : i32
    %c0_i32_0 = arith.constant 0 : i32
    %c0_i32_1 = arith.constant 0 : i32
    return %arg0, %c0_i32, %c0_i32_0 : i32, i32, i32
  }
}

</mosaic_0001>

<bundles_post_ra>
// kernel: review_classifier_forward.1
= control target key start
LH: loop header
LB: loop body
LE: loop exit
PB: predicated region body
PF: predicated region fallthrough
CT: control target
= control target key end

     0   :  { %s5344_s0 = inlined_call_operand.vmem [shape: s32[2,8], index: 0, kind: input, shape index: {}]   ;;  %s5345_s1 = inlined_call_operand.vmem [shape: f32[2,1,8], index: 1, kind: input, shape index: {}]   ;;  %s5346_s2 = inlined_call_operand.vmem [shape: f32[100,1,32], index: 2, kind: input, shape index: {}]   ;;  %s5347_s3 = inlined_call_operand.vmem [shape: f32[16,32], index: 3, kind: input, shape index: {}]   ;;  %s5348_s4 = inlined_call_operand.vmem [shape: bf16[2,32,128], index: 4, kind: input, shape index: {}]   ;;  %s5349_s5 = inlined_call_operand.vmem [shape: bf16[2,32,32], index: 5, kind: input, shape index: {}]   ;;  %s5350_s6 = inlined_call_operand.vmem [shape: bf16[2,32,64], index: 6, kind: input, shape index: {}]   ;;  %s5351_s7 = inlined_call_operand.vmem [shape: bf16[2,64,32], index: 7, kind: input, shape index: {}]   ;;  %s5352_s8 = inlined_call_operand.vmem [shape: f32[2,8,128], index: 8, kind: input, shape index: {}]   ;;  %s5353_s9 = inlined_call_operand.vmem [shape: bf16[32,32], index: 9, kind: input, shape index: {}]   ;;  %s5354_s10 = inlined_call_operand.vmem [shape: bf16[32,128], index: 10, kind: input, shape index: {}]   ;;  %s5355_s11 = inlined_call_operand.vmem [shape: f32[4,128], index: 11, kind: input, shape index: {}]   ;;  %s5356_s12 = inlined_call_operand.hbm [shape: f32[2,1,128], index: 12, kind: output, shape index: {}]  }
   0x1   :  { %s17_s23 = sshll.u32 %s5344_s0, 4  ;;  %s18_s23 = int_to_ptr.vmem [resolvable:$true] %s17_s23 }
   0x2   :  { %s4476_s24 = scalar_lea.vmem %s18_s23, 32  ;;  %p4481_p1 = scmp.lt.s32.totalorder %s18_s23, %s18_s23 }
   0x3   :  { %p4477_p0 = scmp.ne.s32.totalorder %s18_s23, %s4476_s24  ;;  %p4482_p2 = scmp.lt.s32.totalorder %s4476_s24, %s4476_s24 }
   0x5   :  { %p4483_p3 = por %p4482_p2, %p4481_p1 }
   0x7   :  { %p4484_p4 = pnand %p4483_p3, %p4477_p0 }
   0x9   :  { %4487 = shalt.err (!%p4484_p4)  }
   0xa   :  { %s4512_s25 = smov [#allocation5]  }
   0xb   :  { %20 = dma.vmem_to_smem %s18_s23, 32, %s4512_s25, [#allocation4] }
   0xc   :  { %4508 = dma.done.wait [#allocation4], 32 }
   0xd   :  { %4509 = vsyncadd [#allocation4], 4294967264 }
   0xe   :  { %22 = sfence }
   0xf   :  { %s49_s26 = sld [smem:[#allocation5]]  ;;  %v52_v0 = vld [vmem:[%s5347_s3] sm:$0x1]  ;;  %vm54_vm0 = vcmask 253952   ;;  %v60_v1 = vld [vmem:[%s5347_s3 + $0x1] sm:$0x1] }
  0x10   :  { %s3868_s27 = sld [smem:[#allocation5 + $0x1]]  ;;  %v67_v2 = vld [vmem:[%s5347_s3 + $0x2] sm:$0x1]  ;;  %v74_v3 = vld [vmem:[%s5347_s3 + $0x3] sm:$0x1]  ;;  %vm166_vm1 = vcmask 261120  }
  0x11   :  { %s3869_s28 = sld [smem:[#allocation5 + $0x2]]  ;;  %v81_v5 = vld [vmem:[%s5347_s3 + $0x4] sm:$0x1]  ;;  %v88_v8 = vld [vmem:[%s5347_s3 + $0x5] sm:$0x1] }
  0x12   :  { %s3870_s29 = sld [smem:[#allocation5 + $0x3]]  ;;  %v95_v11 = vld [vmem:[%s5347_s3 + $0x6] sm:$0x1]  ;;  %v102_v14 = vld [vmem:[%s5347_s3 + $0x7] sm:$0x1] }
  0x13   :  { %s4602_s0 = sld [smem:[#allocation5 + $0x4]]  ;;  %v110_v17 = vld [vmem:[%s5347_s3] sm:$0x1]  ;;  %v117_v20 = vld [vmem:[%s5347_s3 + $0x1] sm:$0x1] }
  0x14   :  { %s4607_s16 = sld [smem:[#allocation5 + $0x5]]  ;;  %v124_v23 = vld [vmem:[%s5347_s3 + $0x2] sm:$0x1]  ;;  %v131_v26 = vld [vmem:[%s5347_s3 + $0x3] sm:$0x1] }
  0x15   :  { %s50_s19 = scalar_lea.vmem %s5346_s2, %s49_s26  ;;  %s4618_s24 = sld [smem:[#allocation5 + $0x6]]  ;;  %v138_v29 = vld [vmem:[%s5347_s3 + $0x4] sm:$0x1]  ;;  %v145_v32 = vld [vmem:[%s5347_s3 + $0x5] sm:$0x1] }
  0x16   :  { %v51_v4 = vld [vmem:[%s50_s19] sm:$0x1]  ;;  %s58_s13 = scalar_lea.vmem %s5346_s2, %s3868_s27  ;;  %s4626_s26 = sld [smem:[#allocation5 + $0x7]]  ;;  %v152_v35 = vld [vmem:[%s5347_s3 + $0x6] sm:$0x1] }
  0x17   :  { %v53_v6 = vadd.f32 %v52_v0, %v51_v4  ;;  %v59_v7 = vld [vmem:[%s58_s13] sm:$0x1]  ;;  %s65_s20 = scalar_lea.vmem %s5346_s2, %s3869_s28  ;;  %s4634_s19 = sld [smem:[#allocation5 + $0x80]]  ;;  %v159_v38 = vld [vmem:[%s5347_s3 + $0x7] sm:$0x1] }
  0x18   :  { %v61_v9 = vadd.f32 %v60_v1, %v59_v7  ;;  %v66_v10 = vld [vmem:[%s65_s20] sm:$0x1]  ;;  %s72_s25 = scalar_lea.vmem %s5346_s2, %s3870_s29  ;;  %s4642_s13 = sld [smem:[#allocation5 + $0x81]] }
  0x19   :  { %55 = vst.msk [vmem:[#allocation2] sm:$0x1] %vm54_vm0, %v53_v6  ;;  %v68_v12 = vadd.f32 %v67_v2, %v66_v10  ;;  %v73_v13 = vld [vmem:[%s72_s25] sm:$0x1]  ;;  %s79_s17 = scalar_lea.vmem %s5346_s2, %s4602_s0  ;;  %s4652_s29 = sld [smem:[#allocation5 + $0x82]] }
  0x1a   :  { %62 = vst.msk [vmem:[#allocation2 + $0x1] sm:$0x1] %vm54_vm0, %v61_v9  ;;  %v75_v15 = vadd.f32 %v74_v3, %v73_v13  ;;  %v80_v16 = vld [vmem:[%s79_s17] sm:$0x1]  ;;  %s86_s27 = scalar_lea.vmem %s5346_s2, %s4607_s16  ;;  %s4662_s0 = sld [smem:[#allocation5 + $0x83]] }
  0x1b   :  { %69 = vst.msk [vmem:[#allocation2 + $0x2] sm:$0x1] %vm54_vm0, %v68_v12  ;;  %v82_v18 = vadd.f32 %v81_v5, %v80_v16  ;;  %v87_v19 = vld [vmem:[%s86_s27] sm:$0x1]  ;;  %s93_s28 = scalar_lea.vmem %s5346_s2, %s4618_s24  ;;  %s4672_s16 = sld [smem:[#allocation5 + $0x84]] }
  0x1c   :  { %76 = vst.msk [vmem:[#allocation2 + $0x3] sm:$0x1] %vm54_vm0, %v75_v15  ;;  %v89_v21 = vadd.f32 %v88_v8, %v87_v19  ;;  %v94_v22 = vld [vmem:[%s93_s28] sm:$0x1]  ;;  %s100_s21 = scalar_lea.vmem %s5346_s2, %s4626_s26  ;;  %s4682_s24 = sld [smem:[#allocation5 + $0x85]] }
  0x1d   :  { %83 = vst.msk [vmem:[#allocation2 + $0x4] sm:$0x1] %vm54_vm0, %v82_v18  ;;  %v96_v24 = vadd.f32 %v95_v11, %v94_v22  ;;  %v101_v25 = vld [vmem:[%s100_s21] sm:$0x1]  ;;  %s108_s30 = scalar_lea.vmem %s5346_s2, %s4634_s19  ;;  %s4692_s26 = sld [smem:[#allocation5 + $0x86]] }
  0x1e   :  { %90 = vst.msk [vmem:[#allocation2 + $0x5] sm:$0x1] %vm54_vm0, %v89_v21  ;;  %v103_v27 = vadd.f32 %v102_v14, %v101_v25  ;;  %v109_v28 = vld [vmem:[%s108_s30] sm:$0x1]  ;;  %s115_s18 = scalar_lea.vmem %s5346_s2, %s4642_s13  ;;  %s4702_s19 = sld [smem:[#allocation5 + $0x87]] }
  0x1f   :  { %97 = vst.msk [vmem:[#allocation2 + $0x6] sm:$0x1] %vm54_vm0, %v96_v24  ;;  %v111_v30 = vadd.f32 %v110_v17, %v109_v28  ;;  %v116_v31 = vld [vmem:[%s115_s18] sm:$0x1]  ;;  %s122_s23 = scalar_lea.vmem %s5346_s2, %s4652_s29 }
  0x20   :  { %104 = vst.msk [vmem:[#allocation2 + $0x7] sm:$0x1] %vm54_vm0, %v103_v27  ;;  %v118_v33 = vadd.f32 %v117_v20, %v116_v31  ;;  %v123_v34 = vld [vmem:[%s122_s23] sm:$0x1]  ;;  %s129_s28 = scalar_lea.vmem %s5346_s2, %s4662_s0 }
  0x21   :  { %112 = vst.msk [vmem:[#allocation2 + $0x8] sm:$0x1] %vm54_vm0, %v111_v30  ;;  %v125_v36 = vadd.f32 %v124_v23, %v123_v34  ;;  %v130_v37 = vld [vmem:[%s129_s28] sm:$0x1]  ;;  %s136_s20 = scalar_lea.vmem %s5346_s2, %s4672_s16 }
  0x22   :  { %119 = vst.msk [vmem:[#allocation2 + $0x9] sm:$0x1] %vm54_vm0, %v118_v33  ;;  %v132_v39 = vadd.f32 %v131_v26, %v130_v37  ;;  %v137_v40 = vld [vmem:[%s136_s20] sm:$0x1]  ;;  %s143_s23 = scalar_lea.vmem %s5346_s2, %s4682_s24 }
  0x23   :  { %126 = vst.msk [vmem:[#allocation2 + $0xa] sm:$0x1] %vm54_vm0, %v125_v36  ;;  %v139_v41 = vadd.f32 %v138_v29, %v137_v40  ;;  %v144_v42 = vld [vmem:[%s143_s23] sm:$0x1]  ;;  %s150_s16 = scalar_lea.vmem %s5346_s2, %s4692_s26 }
  0x24   :  { %133 = vst.msk [vmem:[#allocation2 + $0xb] sm:$0x1] %vm54_vm0, %v132_v39  ;;  %v146_v43 = vadd.f32 %v145_v32, %v144_v42  ;;  %v151_v44 = vld [vmem:[%s150_s16] sm:$0x1]  ;;  %s157_s14 = scalar_lea.vmem %s5346_s2, %s4702_s19 }
  0x25   :  { %140 = vst.msk [vmem:[#allocation2 + $0xc] sm:$0x1] %vm54_vm0, %v139_v41  ;;  %v153_v45 = vadd.f32 %v152_v35, %v151_v44  ;;  %v158_v46 = vld [vmem:[%s157_s14] sm:$0x1] }
  0x26   :  { %147 = vst.msk [vmem:[#allocation2 + $0xd] sm:$0x1] %vm54_vm0, %v146_v43  ;;  %v160_v47 = vadd.f32 %v159_v38, %v158_v46 }
  0x27   :  { %v164_v48 = vld [vmem:[#allocation2] sm:$0xff]  ;;  %154 = vst.msk [vmem:[#allocation2 + $0xe] sm:$0x1] %vm54_vm0, %v153_v45 }
  0x28   :  { %v167_v49 = vsel %vm166_vm1, %v164_v48, 0.0  ;;  %161 = vst.msk [vmem:[#allocation2 + $0xf] sm:$0x1] %vm54_vm0, %v160_v47 }
  0x29   :  { %168 = vadd.xlane.f32.xlu0 %v167_v49 }
  0x2f   :  { %v165_v50 = vld [vmem:[#allocation2 + $0x8] sm:$0xff] }
  0x30   :  { %v170_v51 = vsel %vm166_vm1, %v165_v50, 0.0 }
  0x31   :  { %23 = vsyncpa [#allocation7], 0  ;;  %171 = vadd.xlane.f32.xlu0 %v170_v51  ;;  %v4358_v62 = vld [vmem:[%s5348_s4 + $0x8] sm:$0xff]   ;;  %v4513_v63 = vmov 0.0   ;;  %vm4514_vm2 = vmmov 0   ;;  %v4359_v0 = vld [vmem:[%s5348_s4] sm:$0xff]   ;;  %v210_v18 = vlaneseq }
  0x32   :  { %4091 = vmatprep.subr.bf16.mxu0 %v4513_v63  ;;  %4095 = vmatprep.mubr.msk.bf16.mxu0 %vm4514_vm2, %v4513_v63  ;;  %v3883_v9 = vld [vmem:[%s5355_s11 + $0x2] ss:$0 sm:$0xff]  ;;  %v3884_v13 = vld [vmem:[%s5355_s11 + $0x3] ss:$0 sm:$0xff]  ;;  %s4515_s21 = smov 96   ;;  %s4516_s22 = smov 88  }
  0x33   :  { %4092 = vmatpush3.bf16.msra.mxu0 %v4358_v62  ;;  %4099 = vmatprep.subr.mxu1 %v4513_v63  ;;  %v4780_v19 = vshrl.u32 %v210_v18, 7  ;;  %v4788_v21 = vld [vmem:[%s5352_s8] sm:$0xff]  ;;  %s4517_s0 = smov 80   ;;  %s4518_s27 = smov 72   ;;  %vm311_vm3 = vcmask 64512   ;;  %vm644_vm4 = vcmask 130112  }
  0x34   :  { %4093 = vmatprep.subr.bf16.mxu0 %v4513_v63  ;;  %4101 = vmatprep.mubr.msk.f32.mxu1 %vm4514_vm2, %v4513_v63  ;;  %s4519_s23 = smov 120   ;;  %s4520_s25 = smov 112   ;;  %v206_v32 = vld [vmem:[%s5345_s1] sm:$0x1]  ;;  %vm815_vm5 = vcmask 195712   ;;  %vm986_vm6 = vcmask 261312  }
  0x35   :  { %v4783_v20 = vsub.s32 0, %v4780_v19  ;;  %s4521_s30 = smov 104   ;;  %v3885_v33 = vadd.f32 -1.0, %v206_v32  ;;  %s4522_s13 = smov 64   ;;  %vm1876_vm7 = vcmask 523264   ;;  %vm3700_vm8 = vcmask 1040384  }
  0x36   :  { %s4524_s24 = smov 40   ;;  %s4525_s26 = smov 48  }
  0x37   :  { %4094 = vmatpush3.bf16.msra.mxu0 %v4359_v0  ;;  %v250_v22 = vrot.slane %v4788_v21, %v4783_v20  ;;  %v208_v34 = vmul.f32 10000.0, %v3885_v33  ;;  %v3886_v0 = vld [vmem:[%s5345_s1 + $0x1] sm:$0x1]  ;;  %s4523_s1 = smov 56   ;;  %s4526_s19 = smov 8  }
  0x38   :  { %4114 = vmatprep.subr.mxu0 %v4513_v63  ;;  %s4527_s28 = smov 16   ;;  %s4528_s15 = smov 24  }
  0x39   :  { %v4825_v35 = vrot.slane %v208_v34, %v4783_v20 }
  0xb2   :  { %v169_v52 = vpop.xlane.xlu0 %168 }
  0xb3   :  { %v174_v53 = vmul.f32 0.03125, %v169_v52 }
  0xb5   :  { %v176_v54 = vsub.f32 %v164_v48, %v174_v53 }
  0xb7   :  { %v178_v55 = vmul.f32 %v176_v54, %v176_v54 }
  0xb9   :  { %v180_v56 = vsel %vm166_vm1, %v178_v55, 0.0 }
  0xba   :  { %v172_v57 = vpop.xlane.xlu0 %171  ;;  %181 = vadd.xlane.f32.xlu1 %v180_v56 }
  0xbb   :  { %v175_v58 = vmul.f32 0.03125, %v172_v57 }
  0xbd   :  { %v177_v59 = vsub.f32 %v165_v50, %v175_v58 }
  0xbf   :  { %v179_v60 = vmul.f32 %v177_v59, %v177_v59 }
  0xc1   :  { %v183_v61 = vsel %vm166_vm1, %v179_v60, 0.0 }
  0xc2   :  { %184 = vadd.xlane.f32.xlu1 %v183_v61 }
 0x143   :  { %v182_v1 = vpop.xlane.xlu1 %181 }
 0x144   :  { %v186_v2 = vmul.f32 0.03125, %v182_v1 }
 0x146   :  { %v188_v3 = vadd.f32 1e-12, %v186_v2 }
 0x148   :  { %4382 = vrsqrt.f32 %v188_v3  ;;  %v3887_v3 = vadd.f32 -1.0, %v3886_v0 }
 0x14b   :  { %v185_v4 = vpop.xlane.xlu1 %184 }
 0x14c   :  { %v187_v5 = vmul.f32 0.03125, %v185_v4 }
 0x14e   :  { %v189_v6 = vadd.f32 1e-12, %v187_v5 }
 0x150   :  { %4384 = vrsqrt.f32 %v189_v6 }
 0x155   :  { %v4383_v7 = vpop.eup %4382 }
 0x156   :  { %v192_v8 = vmul.f32 %v4383_v7, %v176_v54 }
 0x158   :  { %v198_v12 = vmul.f32 %v3883_v9, %v192_v8  ;;  %v218_v8 = vmul.f32 10000.0, %v3887_v3 }
 0x15a   :  { %v4771_v15 = vadd.f32 %v3884_v13, %v198_v12 }
 0x15d   :  { %v4385_v10 = vpop.eup %4384 }
 0x15e   :  { %v193_v11 = vmul.f32 %v4385_v10, %v177_v59 }
 0x160   :  { %v199_v14 = vmul.f32 %v3883_v9, %v193_v11 }
 0x162   :  { %v4773_v16 = vadd.f32 %v3884_v13, %v199_v14  ;;  %v4890_v13 = vrot.slane %v218_v8, %v4783_v20 }
 0x164   :  { %v246_v17 = vpack.c.bf16 %v4773_v16, %v4771_v15 }
 0x166   :  { %4096 = vmatmul.mubr.msk.bf16.vlgmr.msra.gmra.mxu0 %vm166_vm1, %v246_v17 }
 0x167   :  { %4116 = vmatprep.mubr.msk.f32.mxu0 %vm4514_vm2, %v4513_v63 }
 0x226   :  { %v300_v23 = vpop.f32.mrf.mxu0 }
 0x227   :  { %v4792_v24 = vadd.f32 %v300_v23, %v250_v22 }
 0x228   :  { %v4097_v25 = vpop.f32.mrf.mxu0 }
 0x229   :  { %309 = vrot.lane.b32.xlu0 %v4792_v24, %s4515_s21  ;;  %v307_v31 = vmul.f32 0.35355338, %v4792_v24 }
 0x22a   :  { %v303_v26 = vpop.f32.mrf.mxu0 }
 0x22b   :  { %v4802_v28 = vadd.f32 %v303_v26, %v250_v22 }
 0x22c   :  { %v4098_v27 = vpop.f32.mrf.mxu0 }
 0x22d   :  { %477 = vrot.lane.b32.xlu0 %v4792_v24, %s4516_s22  ;;  %v4807_v29 = vmul.f32 0.35355338, %v4802_v28 }
 0x231   :  { %648 = vrot.lane.b32.xlu0 %v4792_v24, %s4517_s0 }
 0x235   :  { %819 = vrot.lane.b32.xlu0 %v4792_v24, %s4518_s27 }
 0x239   :  { %990 = vrot.lane.b32.xlu0 %v4802_v28, %s4515_s21 }
 0x23d   :  { %1155 = vrot.lane.b32.xlu0 %v4807_v29, %s4519_s23 }
 0x241   :  { %1325 = vrot.lane.b32.xlu0 %v4807_v29, %s4520_s25 }
 0x245   :  { %1495 = vrot.lane.b32.xlu0 %v4807_v29, %s4521_s30 }
 0x29b   :  { %v310_v30 = vpop.permute.xlu0 %309 }
 0x29c   :  { %4100 = vmatpush3.xpose.msk.msra.mxu1 %vm311_vm3, %v310_v30 }
 0x29d   :  { %4104 = vmatprep.subr.mxu1 %v4513_v63 }
 0x29f   :  { %4102 = vmatmul.mubr.msk.f32.vlgmr.msra.gmra.mxu1 %vm311_vm3, %v307_v31  ;;  %v478_v48 = vpop.permute.xlu0 %477 }
 0x2a0   :  { %4106 = vmatprep.mubr.msk.f32.mxu1 %vm4514_vm2, %v4513_v63 }
 0x2a3   :  { %v649_v50 = vpop.permute.xlu0 %648 }
 0x2a7   :  { %v820_v53 = vpop.permute.xlu0 %819 }
 0x2ab   :  { %v991_v55 = vpop.permute.xlu0 %990 }
 0x2af   :  { %v1156_v57 = vpop.permute.xlu0 %1155 }
 0x2b3   :  { %v1326_v59 = vpop.permute.xlu0 %1325 }
 0x2b7   :  { %v1496_v61 = vpop.permute.xlu0 %1495 }
 0x35f   :  { %v383_v36 = vpop.f32.mrf.mxu1 }
 0x360   :  { %v384_v37 = vadd.f32 %v383_v36, %v4825_v35 }
 0x361   :  { %v4103_v38 = vpop.f32.mrf.mxu1 }
 0x362   :  { %v387_v39 = vsel %vm311_vm3, %v384_v37, -inf }
 0x363   :  { %388 = vmax.xlane.f32.xlu1 %v387_v39 }
 0x374   :  { %398 = vrot.lane.b32.xlu1 %v4792_v24, %s4522_s13 }
 0x378   :  { %475 = vrot.lane.b32.xlu1 %v307_v31, %s4519_s23 }
 0x3ec   :  { %v389_v40 = vpop.xlane.xlu1 %388 }
 0x3ed   :  { %v390_v41 = vsub.f32 %v384_v37, %v389_v40 }
 0x3ef   :  { %v391_v42 = vmul.f32 1.442695, %v390_v41 }
 0x3f0   :  { %v399_v43 = vpop.permute.xlu1 %398 }
 0x3f1   :  { %4386 = vpow2.f32 %v391_v42  ;;  %4105 = vmatpush3.msra.mxu1 %v399_v43 }
 0x3f2   :  { %4109 = vmatprep.subr.mxu1 %v4513_v63 }
 0x3f4   :  { %v476_v46 = vpop.permute.xlu1 %475 }
 0x3fe   :  { %v4387_v44 = vpop.eup %4386 }
 0x3ff   :  { %v393_v45 = vsel %vm311_vm3, %v4387_v44, 0.0 }
 0x400   :  { %394 = vadd.xlane.f32.xlu1 %v393_v45 }
 0x411   :  { %646 = vrot.lane.b32.xlu1 %v307_v31, %s4520_s25 }
 0x415   :  { %817 = vrot.lane.b32.xlu1 %v307_v31, %s4521_s30 }
 0x419   :  { %1157 = vrot.lane.b32.xlu1 %v4802_v28, %s4516_s22 }
 0x41d   :  { %1327 = vrot.lane.b32.xlu1 %v4802_v28, %s4517_s0 }
 0x421   :  { %1497 = vrot.lane.b32.xlu1 %v4802_v28, %s4518_s27 }
 0x489   :  { %v395_v47 = vpop.xlane.xlu1 %394 }
 0x48a   :  { %4388 = vrcp.f32 %v395_v47 }
 0x48d   :  { %v647_v52 = vpop.permute.xlu1 %646 }
 0x491   :  { %v818_v54 = vpop.permute.xlu1 %817 }
 0x495   :  { %v1158_v56 = vpop.permute.xlu1 %1157 }
 0x497   :  { %v4389_v49 = vpop.eup %4388 }
 0x498   :  { %v397_v51 = vmul.f32 %v4389_v49, %v4387_v44 }
 0x499   :  { %v1328_v58 = vpop.permute.xlu1 %1327 }
 0x49a   :  { %4107 = vmatmul.mubr.msk.f32.vlgmr.msra.gmra.mxu1 %vm311_vm3, %v397_v51 }
 0x49b   :  { %4110 = vmatpush3.xpose.msk.msra.mxu1 %vm311_vm3, %v478_v48  ;;  %4111 = vmatprep.mubr.msk.f32.mxu1 %vm4514_vm2, %v4513_v63 }
 0x49c   :  { %4119 = vmatprep.subr.mxu1 %v4513_v63 }
 0x49d   :  { %v1498_v60 = vpop.permute.xlu1 %1497 }
 0x49e   :  { %4112 = vmatmul.mubr.msk.f32.vlgmr.msra.gmra.mxu1 %vm311_vm3, %v476_v46 }
 0x49f   :  { %4120 = vmatpush3.xpose.msk.msra.mxu1 %vm311_vm3, %v649_v50  ;;  %4121 = vmatprep.mubr.msk.f32.mxu1 %vm4514_vm2, %v4513_v63 }
 0x4a0   :  { %4129 = vmatprep.subr.mxu1 %v4513_v63 }
 0x4a2   :  { %4122 = vmatmul.mubr.msk.f32.vlgmr.msra.gmra.mxu1 %vm311_vm3, %v647_v52 }
 0x4a3   :  { %4130 = vmatpush3.xpose.msk.msra.mxu1 %vm311_vm3, %v820_v53  ;;  %4131 = vmatprep.mubr.msk.f32.mxu1 %vm4514_vm2, %v4513_v63 }
 0x4a4   :  { %4139 = vmatprep.subr.mxu1 %v4513_v63 }
 0x4a6   :  { %4132 = vmatmul.mubr.msk.f32.vlgmr.msra.gmra.mxu1 %vm311_vm3, %v818_v54 }
 0x4a7   :  { %4140 = vmatpush3.xpose.msk.msra.mxu1 %vm311_vm3, %v991_v55  ;;  %4141 = vmatprep.mubr.msk.f32.mxu1 %vm4514_vm2, %v4513_v63 }
 0x4a8   :  { %4149 = vmatprep.subr.mxu1 %v4513_v63 }
 0x4aa   :  { %4142 = vmatmul.mubr.msk.f32.vlgmr.msra.gmra.mxu1 %vm311_vm3, %v4807_v29 }
 0x4ab   :  { %4150 = vmatpush3.xpose.msk.msra.mxu1 %vm311_vm3, %v1158_v56  ;;  %4151 = vmatprep.mubr.msk.f32.mxu1 %vm4514_vm2, %v4513_v63 }
 0x4ac   :  { %4159 = vmatprep.subr.mxu1 %v4513_v63 }
 0x4ae   :  { %4152 = vmatmul.mubr.msk.f32.vlgmr.msra.gmra.mxu1 %vm311_vm3, %v1156_v57 }
 0x4af   :  { %4160 = vmatpush3.xpose.msk.msra.mxu1 %vm311_vm3, %v1328_v58  ;;  %4161 = vmatprep.mubr.msk.f32.mxu1 %vm4514_vm2, %v4513_v63 }
 0x4b0   :  { %4169 = vmatprep.subr.mxu1 %v4513_v63 }
 0x4b2   :  { %4162 = vmatmul.mubr.msk.f32.vlgmr.msra.gmra.mxu1 %vm311_vm3, %v1326_v59 }
 0x4b3   :  { %4170 = vmatpush3.xpose.msk.msra.mxu1 %vm311_vm3, %v1498_v60  ;;  %4171 = vmatprep.mubr.msk.f32.mxu1 %vm4514_vm2, %v4513_v63 }
 0x4b4   :  { %4179 = vmatprep.subr.bf16.mxu1 %v4513_v63 }
 0x4b6   :  { %4172 = vmatmul.mubr.msk.f32.vlgmr.msra.gmra.mxu1 %vm311_vm3, %v1496_v61 }
 0x4b7   :  { %4183 = vmatprep.mubr.msk.bf16.mxu1 %vm4514_vm2, %v4513_v63 }
 0x55a   :  { %v470_v62 = vpop.f32.mrf.mxu1 }
 0x55b   :  { %474 = vst.msk [vmem:[#allocation3] sm:$0xff] %vm311_vm3, %v470_v62 }
 0x55c   :  { %v4108_v1 = vpop.f32.mrf.mxu1 }
 0x55e   :  { %v549_v2 = vpop.f32.mrf.mxu1 }
 0x55f   :  { %v550_v4 = vadd.f32 %v549_v2, %v4825_v35 }
 0x560   :  { %v4113_v5 = vpop.f32.mrf.mxu1 }
 0x561   :  { %v553_v6 = vsel %vm311_vm3, %v550_v4, -inf }
 0x562   :  { %v720_v7 = vpop.f32.mrf.mxu1  ;;  %554 = vmax.xlane.f32.xlu1 %v553_v6 }
 0x563   :  { %v721_v9 = vadd.f32 %v720_v7, %v4825_v35 }
 0x564   :  { %v4123_v10 = vpop.f32.mrf.mxu1 }
 0x565   :  { %v724_v11 = vsel %vm311_vm3, %v721_v9, -inf }
 0x566   :  { %v891_v12 = vpop.f32.mrf.mxu1  ;;  %725 = vmax.xlane.f32.xlu0 %v724_v11 }
 0x567   :  { %v892_v14 = vadd.f32 %v891_v12, %v4825_v35 }
 0x568   :  { %v4133_v17 = vpop.f32.mrf.mxu1 }
 0x569   :  { %v895_v18 = vsel %vm311_vm3, %v892_v14, -inf }
 0x56a   :  { %896 = vmax.xlane.f32.xlu0 %v895_v18  ;;  %v1063_v22 = vpop.f32.mrf.mxu1 }
 0x56b   :  { %v1064_v23 = vadd.f32 %v1063_v22, %v4890_v13 }
 0x56c   :  { %v4143_v25 = vpop.f32.mrf.mxu1 }
 0x56d   :  { %v1067_v26 = vsel %vm311_vm3, %v1064_v23, -inf }
 0x56e   :  { %1068 = vmax.xlane.f32.xlu0 %v1067_v26  ;;  %v1229_v27 = vpop.f32.mrf.mxu1 }
 0x56f   :  { %v1230_v29 = vadd.f32 %v1229_v27, %v4890_v13 }
 0x570   :  { %v4153_v30 = vpop.f32.mrf.mxu1 }
 0x571   :  { %v1233_v31 = vsel %vm311_vm3, %v1230_v29, -inf }
 0x572   :  { %1234 = vmax.xlane.f32.xlu1 %v1233_v31  ;;  %v1399_v32 = vpop.f32.mrf.mxu1 }
 0x573   :  { %v1400_v33 = vadd.f32 %v1399_v32, %v4890_v13 }
 0x574   :  { %v4163_v34 = vpop.f32.mrf.mxu1 }
 0x575   :  { %v1403_v36 = vsel %vm311_vm3, %v1400_v33, -inf }
 0x576   :  { %1404 = vmax.xlane.f32.xlu0 %v1403_v36  ;;  %v1569_v37 = vpop.f32.mrf.mxu1 }
 0x577   :  { %v1570_v39 = vadd.f32 %v1569_v37, %v4890_v13 }
 0x578   :  { %v4173_v38 = vpop.f32.mrf.mxu1 }
 0x579   :  { %v1573_v40 = vsel %vm311_vm3, %v1570_v39, -inf }
 0x583   :  { %564 = vrot.lane.b32.xlu1 %v4792_v24, %s4523_s1 }
 0x5a7   :  { %1574 = vmax.xlane.f32.xlu1 %v1573_v40 }
 0x5b8   :  { %906 = vrot.lane.b32.xlu1 %v4792_v24, %s4524_s24 }
 0x5bc   :  { %1078 = vrot.lane.b32.xlu1 %v4802_v28, %s4522_s13 }
 0x5eb   :  { %v555_v41 = vpop.xlane.xlu1 %554 }
 0x5ec   :  { %v556_v42 = vsub.f32 %v550_v4, %v555_v41 }
 0x5ee   :  { %v557_v43 = vmul.f32 1.442695, %v556_v42 }
 0x5ef   :  { %v726_v44 = vpop.xlane.xlu0 %725 }
 0x5f0   :  { %4390 = vpow2.f32 %v557_v43  ;;  %v727_v45 = vsub.f32 %v721_v9, %v726_v44 }
 0x5f2   :  { %v728_v46 = vmul.f32 1.442695, %v727_v45 }
 0x5f3   :  { %v897_v53 = vpop.xlane.xlu0 %896 }
 0x5f4   :  { %4392 = vpow2.f32 %v728_v46  ;;  %v898_v54 = vsub.f32 %v892_v14, %v897_v53 }
 0x5f6   :  { %v899_v57 = vmul.f32 1.442695, %v898_v54 }
 0x5f7   :  { %v1069_v55 = vpop.xlane.xlu0 %1068 }
 0x5f8   :  { %v1070_v56 = vsub.f32 %v1064_v23, %v1069_v55  ;;  %4394 = vpow2.f32 %v899_v57  ;;  %v4360_v55 = vld [vmem:[%s5349_s5 + $0x8] sm:$0xff]   ;;  %v4361_v57 = vld [vmem:[%s5349_s5] sm:$0xff]  }
 0x5f9   :  { %4180 = vmatpush3.bf16.msra.mxu1 %v4360_v55 }
 0x5fa   :  { %v1071_v60 = vmul.f32 1.442695, %v1070_v56  ;;  %4181 = vmatprep.subr.bf16.mxu1 %v4513_v63 }
 0x5fb   :  { %v1235_v47 = vpop.xlane.xlu1 %1234 }
 0x5fc   :  { %v1236_v58 = vsub.f32 %v1230_v29, %v1235_v47  ;;  %4396 = vpow2.f32 %v1071_v60 }
 0x5fd   :  { %v4391_v48 = vpop.eup %4390  ;;  %4182 = vmatpush3.bf16.msra.mxu1 %v4361_v57 }
 0x5fe   :  { %v559_v49 = vsel %vm311_vm3, %v4391_v48, 0.0  ;;  %v1237_v61 = vmul.f32 1.442695, %v1236_v58  ;;  %4195 = vmatprep.subr.bf16.mxu1 %v4513_v63 }
 0x5ff   :  { %v565_v50 = vpop.permute.xlu1 %564  ;;  %560 = vadd.xlane.f32.xlu0 %v559_v49  ;;  %v1405_v59 = vpop.xlane.xlu0 %1404 }
 0x600   :  { %4115 = vmatpush3.msra.mxu0 %v565_v50  ;;  %v1406_v62 = vsub.f32 %v1400_v33, %v1405_v59  ;;  %4398 = vpow2.f32 %v1237_v61 }
 0x601   :  { %v4393_v51 = vpop.eup %4392  ;;  %4124 = vmatprep.subr.mxu0 %v4513_v63 }
 0x602   :  { %v730_v52 = vsel %vm311_vm3, %v4393_v51, 0.0  ;;  %v1407_v0 = vmul.f32 1.442695, %v1406_v62 }
 0x603   :  { %731 = vadd.xlane.f32.xlu1 %v730_v52 }
 0x604   :  { %4400 = vpow2.f32 %v1407_v0 }
 0x605   :  { %v4395_v1 = vpop.eup %4394 }
 0x609   :  { %v4397_v4 = vpop.eup %4396 }
 0x60a   :  { %v1073_v8 = vsel %vm311_vm3, %v4397_v4, 0.0 }
 0x60d   :  { %v4399_v6 = vpop.eup %4398 }
 0x60e   :  { %v1239_v7 = vsel %vm311_vm3, %v4399_v6, 0.0 }
 0x611   :  { %v4401_v9 = vpop.eup %4400 }
 0x612   :  { %v1409_v10 = vsel %vm311_vm3, %v4401_v9, 0.0 }
 0x614   :  { %1244 = vrot.lane.b32.xlu1 %v4802_v28, %s4523_s1 }
 0x615   :  { %735 = vrot.lane.b32.xlu0 %v4792_v24, %s4525_s26  ;;  %v901_v24 = vsel %vm311_vm3, %v4395_v1, 0.0 }
 0x630   :  { %v1575_v2 = vpop.xlane.xlu1 %1574 }
 0x631   :  { %v1576_v3 = vsub.f32 %v1570_v39, %v1575_v2 }
 0x633   :  { %v1577_v5 = vmul.f32 1.442695, %v1576_v3 }
 0x634   :  { %902 = vadd.xlane.f32.xlu0 %v901_v24  ;;  %v907_v14 = vpop.permute.xlu1 %906 }
 0x635   :  { %4402 = vpow2.f32 %v1577_v5 }
 0x638   :  { %1240 = vadd.xlane.f32.xlu0 %v1239_v7  ;;  %1074 = vadd.xlane.f32.xlu1 %v1073_v8  ;;  %v1079_v17 = vpop.permute.xlu1 %1078 }
 0x63c   :  { %1410 = vadd.xlane.f32.xlu1 %v1409_v10 }
 0x642   :  { %v4403_v11 = vpop.eup %4402 }
 0x643   :  { %v1579_v12 = vsel %vm311_vm3, %v4403_v11, 0.0 }
 0x644   :  { %1580 = vadd.xlane.f32.xlu0 %v1579_v12 }
 0x64d   :  { %1584 = vrot.lane.b32.xlu1 %v4802_v28, %s4524_s24 }
 0x65a   :  { %1414 = vrot.lane.b32.xlu0 %v4802_v28, %s4525_s26 }
 0x688   :  { %v561_v18 = vpop.xlane.xlu0 %560 }
 0x689   :  { %4404 = vrcp.f32 %v561_v18 }
 0x68c   :  { %v732_v22 = vpop.xlane.xlu1 %731  ;;  %v736_v26 = vpop.permute.xlu0 %735 }
 0x68d   :  { %4406 = vrcp.f32 %v732_v22 }
 0x690   :  { %v1245_v28 = vpop.permute.xlu1 %1244 }
 0x696   :  { %v4405_v23 = vpop.eup %4404 }
 0x697   :  { %v563_v25 = vmul.f32 %v4405_v23, %v4391_v48 }
 0x699   :  { %4117 = vmatmul.mubr.msk.f32.vlgmr.msra.gmra.mxu0 %vm311_vm3, %v563_v25 }
 0x69a   :  { %v4407_v27 = vpop.eup %4406  ;;  %4125 = vmatpush3.msra.mxu0 %v736_v26  ;;  %4126 = vmatprep.mubr.msk.f32.mxu0 %vm4514_vm2, %v4513_v63 }
 0x69b   :  { %4134 = vmatprep.subr.mxu0 %v4513_v63  ;;  %v734_v29 = vmul.f32 %v4407_v27, %v4393_v51 }
 0x69d   :  { %4127 = vmatmul.mubr.msk.f32.vlgmr.msra.gmra.mxu0 %vm311_vm3, %v734_v29 }
 0x69e   :  { %4135 = vmatpush3.msra.mxu0 %v907_v14  ;;  %4136 = vmatprep.mubr.msk.f32.mxu0 %vm4514_vm2, %v4513_v63 }
 0x69f   :  { %4144 = vmatprep.subr.mxu0 %v4513_v63 }
 0x6bd   :  { %v903_v30 = vpop.xlane.xlu0 %902 }
 0x6be   :  { %4408 = vrcp.f32 %v903_v30 }
 0x6c1   :  { %v1075_v31 = vpop.xlane.xlu1 %1074  ;;  %v1241_v32 = vpop.xlane.xlu0 %1240 }
 0x6c2   :  { %4410 = vrcp.f32 %v1075_v31 }
 0x6c3   :  { %4412 = vrcp.f32 %v1241_v32 }
 0x6c5   :  { %v1411_v33 = vpop.xlane.xlu1 %1410 }
 0x6c6   :  { %4414 = vrcp.f32 %v1411_v33 }
 0x6c9   :  { %v1585_v46 = vpop.permute.xlu1 %1584 }
 0x6cb   :  { %v4409_v34 = vpop.eup %4408 }
 0x6cc   :  { %v905_v36 = vmul.f32 %v4409_v34, %v4395_v1 }
 0x6cd   :  { %v1581_v37 = vpop.xlane.xlu0 %1580 }
 0x6ce   :  { %4416 = vrcp.f32 %v1581_v37  ;;  %4137 = vmatmul.mubr.msk.f32.vlgmr.msra.gmra.mxu0 %vm311_vm3, %v905_v36 }
 0x6cf   :  { %4145 = vmatpush3.msra.mxu0 %v1079_v17  ;;  %4146 = vmatprep.mubr.msk.f32.mxu0 %vm4514_vm2, %v4513_v63  ;;  %v4411_v38 = vpop.eup %4410 }
 0x6d0   :  { %4154 = vmatprep.subr.mxu0 %v4513_v63  ;;  %v1077_v39 = vmul.f32 %v4411_v38, %v4397_v4  ;;  %v4413_v40 = vpop.eup %4412  ;;  %v4363_v38 = vld [vmem:[%s5350_s6] sm:$0xff]  }
 0x6d1   :  { %v1243_v41 = vmul.f32 %v4413_v40, %v4399_v6  ;;  %v1415_v43 = vpop.permute.xlu0 %1414 }
 0x6d2   :  { %4147 = vmatmul.mubr.msk.f32.vlgmr.msra.gmra.mxu0 %vm311_vm3, %v1077_v39 }
 0x6d3   :  { %4155 = vmatpush3.msra.mxu0 %v1245_v28  ;;  %4156 = vmatprep.mubr.msk.f32.mxu0 %vm4514_vm2, %v4513_v63  ;;  %v4415_v42 = vpop.eup %4414 }
 0x6d4   :  { %4164 = vmatprep.subr.mxu0 %v4513_v63  ;;  %v1413_v44 = vmul.f32 %v4415_v42, %v4401_v9  ;;  %v1670_v9 = vsub.s32 1, %v4780_v19 }
 0x6d6   :  { %4157 = vmatmul.mubr.msk.f32.vlgmr.msra.gmra.mxu0 %vm311_vm3, %v1243_v41  ;;  %v1671_v10 = vrot.slane %v4788_v21, %v1670_v9 }
 0x6d7   :  { %4165 = vmatpush3.msra.mxu0 %v1415_v43  ;;  %4166 = vmatprep.mubr.msk.f32.mxu0 %vm4514_vm2, %v4513_v63 }
 0x6d8   :  { %4174 = vmatprep.subr.mxu0 %v4513_v63 }
 0x6da   :  { %4167 = vmatmul.mubr.msk.f32.vlgmr.msra.gmra.mxu0 %vm311_vm3, %v1413_v44 }
 0x6db   :  { %v4417_v45 = vpop.eup %4416  ;;  %4175 = vmatpush3.msra.mxu0 %v1585_v46  ;;  %4176 = vmatprep.mubr.msk.f32.mxu0 %vm4514_vm2, %v4513_v63 }
 0x6dc   :  { %v1583_v47 = vmul.f32 %v4417_v45, %v4403_v11  ;;  %4187 = vmatprep.subr.bf16.mxu0 %v4513_v63  ;;  %v1758_v45 = vsub.s32 2, %v4780_v19 }
 0x6de   :  { %4177 = vmatmul.mubr.msk.f32.vlgmr.msra.gmra.mxu0 %vm311_vm3, %v1583_v47 }
 0x6df   :  { %4191 = vmatprep.mubr.msk.bf16.mxu0 %vm4514_vm2, %v4513_v63 }
 0x759   :  { %v636_v48 = vpop.f32.mrf.mxu0 }
 0x75a   :  { %641 = vrot.lane.b32.xlu0 %v636_v48, %s4526_s19  ;;  %v1759_v48 = vrot.slane %v4788_v21, %v1758_v45 }
 0x75b   :  { %v4118_v49 = vpop.f32.mrf.mxu0 }
 0x75c   :  { %v1764_v49 = vsub.s32 3, %v4780_v19 }
 0x75d   :  { %v807_v50 = vpop.f32.mrf.mxu0 }
 0x75e   :  { %812 = vrot.lane.b32.xlu0 %v807_v50, %s4527_s28 }
 0x75f   :  { %v4128_v51 = vpop.f32.mrf.mxu0 }
 0x78e   :  { %v978_v52 = vpop.f32.mrf.mxu0 }
 0x78f   :  { %983 = vrot.lane.b32.xlu0 %v978_v52, %s4528_s15 }
 0x790   :  { %v4138_v53 = vpop.f32.mrf.mxu0 }
 0x791   :  { %v1765_v53 = vrot.slane %v4788_v21, %v1764_v49 }
 0x792   :  { %v1150_v54 = vpop.f32.mrf.mxu0 }
 0x793   :  { %1154 = vst.msk [vmem:[#allocation3 + $0x8] sm:$0xff] %vm311_vm3, %v1150_v54 }
 0x794   :  { %v4148_v56 = vpop.f32.mrf.mxu0 }
 0x796   :  { %v1316_v58 = vpop.f32.mrf.mxu0 }
 0x797   :  { %1321 = vrot.lane.b32.xlu1 %v1316_v58, %s4526_s19  ;;  %v4364_v58 = vld [vmem:[%s5351_s7 + $0x18] sm:$0xff]  }
 0x798   :  { %v4158_v59 = vpop.f32.mrf.mxu0 }
 0x799   :  { %v4365_v59 = vld [vmem:[%s5351_s7 + $0x10] sm:$0xff]  }
 0x79a   :  { %v1486_v60 = vpop.f32.mrf.mxu0 }
 0x79b   :  { %1491 = vrot.lane.b32.xlu1 %v1486_v60, %s4527_s28  ;;  %v4366_v60 = vld [vmem:[%s5351_s7 + $0x8] sm:$0xff]  }
 0x79c   :  { %v4168_v61 = vpop.f32.mrf.mxu0 }
 0x79d   :  { %v4367_v61 = vld [vmem:[%s5351_s7] sm:$0xff]  }
 0x79e   :  { %v1656_v62 = vpop.f32.mrf.mxu0 }
 0x79f   :  { %1661 = vrot.lane.b32.xlu1 %v1656_v62, %s4528_s15  ;;  %v1771_v62 = vsub.s32 4, %v4780_v19 }
 0x7a0   :  { %v4178_v0 = vpop.f32.mrf.mxu0 }
 0x7a1   :  { %v1772_v0 = vrot.slane %v4788_v21, %v1771_v62 }
 0x7cc   :  { %v642_v1 = vpop.permute.xlu0 %641 }
 0x7cd   :  { %645 = vst.msk [vmem:[#allocation3] sm:$0xff] %vm644_vm4, %v642_v1 }
 0x7d0   :  { %v813_v2 = vpop.permute.xlu0 %812 }
 0x7d1   :  { %816 = vst.msk [vmem:[#allocation3] sm:$0xff] %vm815_vm5, %v813_v2 }
 0x801   :  { %v984_v3 = vpop.permute.xlu0 %983 }
 0x802   :  { %987 = vst.msk [vmem:[#allocation3] sm:$0xff] %vm986_vm6, %v984_v3 }
 0x809   :  { %v1322_v4 = vpop.permute.xlu1 %1321  ;;  %v1665_v6 = vld [vmem:[#allocation3] sm:$0xff] }
 0x80a   :  { %1324 = vst.msk [vmem:[#allocation3 + $0x8] sm:$0xff] %vm644_vm4, %v1322_v4 }
 0x80d   :  { %v1492_v5 = vpop.permute.xlu1 %1491 }
 0x80e   :  { %1494 = vst.msk [vmem:[#allocation3 + $0x8] sm:$0xff] %vm815_vm5, %v1492_v5 }
 0x811   :  { %v1662_v24 = vpop.permute.xlu1 %1661 }
 0x812   :  { %1664 = vst.msk [vmem:[#allocation3 + $0x8] sm:$0xff] %vm986_vm6, %v1662_v24 }
 0x819   :  { %v1666_v7 = vld [vmem:[#allocation3 + $0x8] sm:$0xff] }
 0x81a   :  { %v1667_v8 = vpack.c.bf16 %v1666_v7, %v1665_v6 }
 0x81c   :  { %4184 = vmatmul.mubr.msk.bf16.vlgmr.msra.gmra.mxu1 %vm166_vm1, %v1667_v8 }
 0x81d   :  { %4203 = vmatprep.mubr.msk.bf16.mxu1 %vm4514_vm2, %v4513_v63  ;;  %4196 = vmatpush3.bf16.msra.mxu1 %v4364_v58 }
 0x81e   :  { %4197 = vmatprep.subr.bf16.mxu1 %v4513_v63 }
 0x821   :  { %4198 = vmatpush3.bf16.msra.mxu1 %v4365_v59 }
 0x822   :  { %4199 = vmatprep.subr.bf16.mxu1 %v4513_v63 }
 0x825   :  { %4200 = vmatpush3.bf16.msra.mxu1 %v4366_v60 }
 0x826   :  { %4201 = vmatprep.subr.bf16.mxu1 %v4513_v63 }
 0x829   :  { %4202 = vmatpush3.bf16.msra.mxu1 %v4367_v61 }
 0x82a   :  { %4225 = vmatprep.subr.mxu1 %v4513_v63 }
 0x8dc   :  { %v1721_v11 = vpop.f32.mrf.mxu1 }
 0x8dd   :  { %v1722_v12 = vadd.f32 %v1721_v11, %v1671_v10 }
 0x8de   :  { %v4185_v14 = vpop.f32.mrf.mxu1 }
 0x8df   :  { %v1728_v17 = vadd.f32 %v1722_v12, %v4771_v15 }
 0x8e0   :  { %v1724_v18 = vpop.f32.mrf.mxu1 }
 0x8e1   :  { %v1725_v22 = vadd.f32 %v1724_v18, %v1671_v10  ;;  %v1730_v23 = vsel %vm166_vm1, %v1728_v17, 0.0 }
 0x8e2   :  { %1731 = vadd.xlane.f32.xlu0 %v1730_v23  ;;  %v4186_v25 = vpop.f32.mrf.mxu1 }
 0x8e3   :  { %v1729_v26 = vadd.f32 %v1725_v22, %v4773_v16  ;;  %v4362_v16 = vld [vmem:[%s5350_s6 + $0x8] sm:$0xff]  }
 0x8e4   :  { %4188 = vmatpush3.bf16.msra.mxu0 %v4362_v16 }
 0x8e5   :  { %v1733_v27 = vsel %vm166_vm1, %v1729_v26, 0.0  ;;  %4189 = vmatprep.subr.bf16.mxu0 %v4513_v63 }
 0x8e6   :  { %1734 = vadd.xlane.f32.xlu1 %v1733_v27 }
 0x8e8   :  { %4190 = vmatpush3.bf16.msra.mxu0 %v4363_v38 }
 0x8e9   :  { %4207 = vmatprep.subr.bf16.mxu0 %v4513_v63 }
 0x96b   :  { %v1732_v29 = vpop.xlane.xlu0 %1731 }
 0x96c   :  { %v1736_v28 = vmul.f32 0.03125, %v1732_v29 }
 0x96e   :  { %v1738_v30 = vsub.f32 %v1728_v17, %v1736_v28 }
 0x96f   :  { %v1735_v31 = vpop.xlane.xlu1 %1734 }
 0x970   :  { %v1737_v32 = vmul.f32 0.03125, %v1735_v31  ;;  %v1740_v33 = vmul.f32 %v1738_v30, %v1738_v30 }
 0x972   :  { %v1739_v34 = vsub.f32 %v1729_v26, %v1737_v32  ;;  %v1742_v15 = vsel %vm166_vm1, %v1740_v33, 0.0  ;;  %v1850_v33 = vsub.s32 5, %v4780_v19 }
 0x973   :  { %1743 = vadd.xlane.f32.xlu0 %v1742_v15 }
 0x974   :  { %v1741_v36 = vmul.f32 %v1739_v34, %v1739_v34 }
 0x976   :  { %v1745_v37 = vsel %vm166_vm1, %v1741_v36, 0.0 }
 0x977   :  { %1746 = vadd.xlane.f32.xlu0 %v1745_v37 }
 0x9fc   :  { %v1744_v39 = vpop.xlane.xlu0 %1743 }
 0x9fd   :  { %v1748_v40 = vmul.f32 0.03125, %v1744_v39 }
 0x9ff   :  { %v1750_v41 = vadd.f32 1e-12, %v1748_v40 }
 0xa00   :  { %v1747_v42 = vpop.xlane.xlu0 %1746 }
 0xa01   :  { %4418 = vrsqrt.f32 %v1750_v41  ;;  %v1749_v43 = vmul.f32 0.03125, %v1747_v42 }
 0xa03   :  { %v1751_v44 = vadd.f32 1e-12, %v1749_v43 }
 0xa05   :  { %4420 = vrsqrt.f32 %v1751_v44 }
 0xa0e   :  { %v4419_v46 = vpop.eup %4418 }
 0xa0f   :  { %v1754_v47 = vmul.f32 %v4419_v46, %v1738_v30 }
 0xa11   :  { %v1760_v52 = vmul.f32 %v1759_v48, %v1754_v47 }
 0xa12   :  { %v4421_v50 = vpop.eup %4420 }
 0xa13   :  { %v1755_v51 = vmul.f32 %v4421_v50, %v1739_v34  ;;  %v1766_v55 = vadd.f32 %v1765_v53, %v1760_v52  ;;  %v1851_v34 = vrot.slane %v4788_v21, %v1850_v33 }
 0xa15   :  { %v1761_v54 = vmul.f32 %v1759_v48, %v1755_v51 }
 0xa17   :  { %v1767_v56 = vadd.f32 %v1765_v53, %v1761_v54 }
 0xa19   :  { %v1768_v57 = vpack.c.bf16 %v1767_v56, %v1766_v55 }
 0xa1b   :  { %4192 = vmatmul.mubr.msk.bf16.vlgmr.msra.gmra.mxu0 %vm166_vm1, %v1768_v57  ;;  %v4369_v57 = vld [vmem:[%s5348_s4 + $0x10] sm:$0xff]  }
 0xa1c   :  { %4211 = vmatprep.mubr.msk.bf16.mxu0 %vm4514_vm2, %v4513_v63 }
 0xadb   :  { %v1822_v1 = vpop.f32.mrf.mxu0 }
 0xadc   :  { %v1823_v2 = vadd.f32 %v1822_v1, %v1772_v0 }
 0xadd   :  { %v4193_v3 = vpop.f32.mrf.mxu0 }
 0xade   :  { %v1829_v4 = vmul.f32 %v1823_v2, %v1823_v2 }
 0xadf   :  { %v1825_v5 = vpop.f32.mrf.mxu0 }
 0xae0   :  { %v1831_v24 = vmul.f32 %v1829_v4, %v1823_v2  ;;  %v1826_v6 = vadd.f32 %v1825_v5, %v1772_v0 }
 0xae1   :  { %v4194_v7 = vpop.f32.mrf.mxu0 }
 0xae2   :  { %v1833_v8 = vmul.f32 0.044715, %v1831_v24  ;;  %v1830_v10 = vmul.f32 %v1826_v6, %v1826_v6  ;;  %v1957_v24 = vsub.s32 7, %v4780_v19 }
 0xae4   :  { %v1835_v11 = vadd.f32 %v1833_v8, %v1823_v2  ;;  %v1832_v12 = vmul.f32 %v1830_v10, %v1826_v6  ;;  %v1958_v10 = vrot.slane %v4788_v21, %v1957_v24 }
 0xae6   :  { %v1837_v14 = vmul.f32 0.7978846, %v1835_v11  ;;  %v1834_v17 = vmul.f32 0.044715, %v1832_v12 }
 0xae8   :  { %4422 = vtanh.f32 %v1837_v14  ;;  %v1836_v18 = vadd.f32 %v1834_v17, %v1826_v6 }
 0xaea   :  { %v1838_v22 = vmul.f32 0.7978846, %v1836_v18  ;;  %v5063_v18 = vld [vmem:[%s5352_s8 + $0x8] sm:$0xff] }
 0xaec   :  { %4424 = vtanh.f32 %v1838_v22 }
 0xaf5   :  { %v4423_v23 = vpop.eup %4422 }
 0xaf6   :  { %v1841_v25 = vadd.f32 1.0, %v4423_v23 }
 0xaf8   :  { %v1843_v27 = vmul.f32 0.5, %v1841_v25 }
 0xaf9   :  { %v4425_v26 = vpop.eup %4424 }
 0xafa   :  { %v1842_v29 = vadd.f32 1.0, %v4425_v26  ;;  %v1845_v30 = vmul.f32 %v1843_v27, %v1823_v2  ;;  %v1951_v2 = vsub.s32 6, %v4780_v19  ;;  %v4381_v19 = vld [vmem:[%s5354_s10] sm:$0xff]  }
 0xafc   :  { %v1844_v28 = vmul.f32 0.5, %v1842_v29  ;;  %v1952_v5 = vrot.slane %v4788_v21, %v1951_v2  ;;  %v1991_v21 = vrot.slane %v5063_v18, %v4783_v20 }
 0xafe   :  { %v1846_v31 = vmul.f32 %v1844_v28, %v1826_v6 }
 0xb00   :  { %v1847_v32 = vpack.c.bf16 %v1846_v31, %v1845_v30 }
 0xb02   :  { %4204 = vmatmul.mubr.msk.bf16.vlgmr.msra.gmra.mxu1 %vm1876_vm7, %v1847_v32 }
 0xb03   :  { %4227 = vmatprep.mubr.msk.f32.mxu1 %vm4514_vm2, %v4513_v63 }
 0xbc2   :  { %v1914_v15 = vpop.f32.mrf.mxu1 }
 0xbc3   :  { %v1915_v36 = vadd.f32 %v1914_v15, %v1851_v34 }
 0xbc4   :  { %v4205_v37 = vpop.f32.mrf.mxu1 }
 0xbc5   :  { %v1921_v16 = vadd.f32 %v1915_v36, %v1766_v55 }
 0xbc6   :  { %v1917_v38 = vpop.f32.mrf.mxu1 }
 0xbc7   :  { %v1918_v39 = vadd.f32 %v1917_v38, %v1851_v34  ;;  %v1923_v40 = vsel %vm166_vm1, %v1921_v16, 0.0 }
 0xbc8   :  { %1924 = vadd.xlane.f32.xlu0 %v1923_v40  ;;  %v4206_v41 = vpop.f32.mrf.mxu1 }
 0xbc9   :  { %v1922_v42 = vadd.f32 %v1918_v39, %v1767_v56  ;;  %v4368_v56 = vld [vmem:[%s5348_s4 + $0x18] sm:$0xff]  }
 0xbca   :  { %4208 = vmatpush3.bf16.msra.mxu0 %v4368_v56 }
 0xbcb   :  { %v1926_v43 = vsel %vm166_vm1, %v1922_v42, 0.0  ;;  %4209 = vmatprep.subr.bf16.mxu0 %v4513_v63 }
 0xbcc   :  { %1927 = vadd.xlane.f32.xlu1 %v1926_v43 }
 0xbce   :  { %4210 = vmatpush3.bf16.msra.mxu0 %v4369_v57 }
 0xbcf   :  { %4215 = vmatprep.subr.mxu0 %v4513_v63 }
 0xc51   :  { %v1925_v44 = vpop.xlane.xlu0 %1924 }
 0xc52   :  { %v1929_v46 = vmul.f32 0.03125, %v1925_v44 }
 0xc54   :  { %v1931_v47 = vsub.f32 %v1921_v16, %v1929_v46 }
 0xc55   :  { %v1928_v48 = vpop.xlane.xlu1 %1927 }
 0xc56   :  { %v1930_v50 = vmul.f32 0.03125, %v1928_v48  ;;  %v1933_v51 = vmul.f32 %v1931_v47, %v1931_v47 }
 0xc58   :  { %v1932_v52 = vsub.f32 %v1922_v42, %v1930_v50  ;;  %v1935_v53 = vsel %vm166_vm1, %v1933_v51, 0.0 }
 0xc59   :  { %1936 = vadd.xlane.f32.xlu0 %v1935_v53 }
 0xc5a   :  { %v1934_v54 = vmul.f32 %v1932_v52, %v1932_v52 }
 0xc5c   :  { %v1938_v55 = vsel %vm166_vm1, %v1934_v54, 0.0 }
 0xc5d   :  { %1939 = vadd.xlane.f32.xlu1 %v1938_v55 }
 0xce2   :  { %v1937_v58 = vpop.xlane.xlu0 %1936 }
 0xce3   :  { %v1941_v59 = vmul.f32 0.03125, %v1937_v58 }
 0xce5   :  { %v1943_v60 = vadd.f32 1e-12, %v1941_v59 }
 0xce6   :  { %v1940_v61 = vpop.xlane.xlu1 %1939 }
 0xce7   :  { %4426 = vrsqrt.f32 %v1943_v60  ;;  %v1942_v0 = vmul.f32 0.03125, %v1940_v61 }
 0xce9   :  { %v1944_v1 = vadd.f32 1e-12, %v1942_v0 }
 0xceb   :  { %4428 = vrsqrt.f32 %v1944_v1 }
 0xcf4   :  { %v4427_v3 = vpop.eup %4426 }
 0xcf5   :  { %v1947_v4 = vmul.f32 %v4427_v3, %v1931_v47 }
 0xcf7   :  { %v1953_v8 = vmul.f32 %v1952_v5, %v1947_v4 }
 0xcf8   :  { %v4429_v6 = vpop.eup %4428 }
 0xcf9   :  { %v1948_v7 = vmul.f32 %v4429_v6, %v1932_v52  ;;  %v5051_v12 = vadd.f32 %v1958_v10, %v1953_v8 }
 0xcfb   :  { %v1954_v11 = vmul.f32 %v1952_v5, %v1948_v7 }
 0xcfd   :  { %v5053_v14 = vadd.f32 %v1958_v10, %v1954_v11 }
 0xcff   :  { %v1987_v17 = vpack.c.bf16 %v5053_v14, %v5051_v12 }
 0xd01   :  { %4212 = vmatmul.mubr.msk.bf16.vlgmr.msra.gmra.mxu0 %vm166_vm1, %v1987_v17 }
 0xd02   :  { %4217 = vmatprep.mubr.msk.f32.mxu0 %vm4514_vm2, %v4513_v63 }
 0xdc1   :  { %v2041_v22 = vpop.f32.mrf.mxu0 }
 0xdc2   :  { %v5067_v23 = vadd.f32 %v2041_v22, %v1991_v21 }
 0xdc3   :  { %v4213_v25 = vpop.f32.mrf.mxu0 }
 0xdc4   :  { %2217 = vrot.lane.b32.xlu1 %v5067_v23, %s4516_s22  ;;  %2050 = vrot.lane.b32.xlu0 %v5067_v23, %s4515_s21  ;;  %v2048_v27 = vmul.f32 0.35355338, %v5067_v23 }
 0xdc5   :  { %v2044_v26 = vpop.f32.mrf.mxu0 }
 0xdc6   :  { %v5079_v20 = vadd.f32 %v2044_v26, %v1991_v21 }
 0xdc7   :  { %v4214_v29 = vpop.f32.mrf.mxu0 }
 0xdc8   :  { %2385 = vrot.lane.b32.xlu0 %v2048_v27, %s4520_s25  ;;  %2215 = vrot.lane.b32.xlu1 %v2048_v27, %s4519_s23  ;;  %v2725_v28 = vmul.f32 0.35355338, %v5079_v20 }
 0xdcc   :  { %2555 = vrot.lane.b32.xlu0 %v2048_v27, %s4521_s30  ;;  %2387 = vrot.lane.b32.xlu1 %v5067_v23, %s4517_s0 }
 0xdd0   :  { %2557 = vrot.lane.b32.xlu1 %v5067_v23, %s4518_s27  ;;  %2894 = vrot.lane.b32.xlu0 %v5079_v20, %s4516_s22 }
 0xdd4   :  { %3064 = vrot.lane.b32.xlu0 %v5079_v20, %s4517_s0  ;;  %2727 = vrot.lane.b32.xlu1 %v5079_v20, %s4515_s21 }
 0xdd8   :  { %3234 = vrot.lane.b32.xlu0 %v5079_v20, %s4518_s27  ;;  %2892 = vrot.lane.b32.xlu1 %v2725_v28, %s4519_s23 }
 0xddc   :  { %3062 = vrot.lane.b32.xlu1 %v2725_v28, %s4520_s25 }
 0xde0   :  { %3232 = vrot.lane.b32.xlu1 %v2725_v28, %s4521_s30 }
 0xe36   :  { %v2218_v30 = vpop.permute.xlu1 %2217  ;;  %v2051_v31 = vpop.permute.xlu0 %2050 }
 0xe37   :  { %4216 = vmatpush3.xpose.msk.msra.mxu0 %vm311_vm3, %v2051_v31  ;;  %4226 = vmatpush3.xpose.msk.msra.mxu1 %vm311_vm3, %v2218_v30 }
 0xe38   :  { %4235 = vmatprep.subr.mxu1 %v4513_v63  ;;  %4220 = vmatprep.subr.mxu0 %v4513_v63 }
 0xe3a   :  { %v2386_v32 = vpop.permute.xlu0 %2385  ;;  %v2216_v34 = vpop.permute.xlu1 %2215  ;;  %4218 = vmatmul.mubr.msk.f32.vlgmr.msra.gmra.mxu0 %vm311_vm3, %v2048_v27 }
 0xe3b   :  { %4228 = vmatmul.mubr.msk.f32.vlgmr.msra.gmra.mxu1 %vm311_vm3, %v2216_v34  ;;  %4222 = vmatprep.mubr.msk.f32.mxu0 %vm4514_vm2, %v4513_v63 }
 0xe3c   :  { %4237 = vmatprep.mubr.msk.f32.mxu1 %vm4514_vm2, %v4513_v63 }
 0xe3e   :  { %v2388_v15 = vpop.permute.xlu1 %2387  ;;  %v2556_v36 = vpop.permute.xlu0 %2555 }
 0xe3f   :  { %4236 = vmatpush3.xpose.msk.msra.mxu1 %vm311_vm3, %v2388_v15 }
 0xe40   :  { %4245 = vmatprep.subr.mxu1 %v4513_v63 }
 0xe42   :  { %4238 = vmatmul.mubr.msk.f32.vlgmr.msra.gmra.mxu1 %vm311_vm3, %v2386_v32  ;;  %v2558_v37 = vpop.permute.xlu1 %2557  ;;  %v2895_v16 = vpop.permute.xlu0 %2894 }
 0xe43   :  { %4246 = vmatpush3.xpose.msk.msra.mxu1 %vm311_vm3, %v2558_v37  ;;  %4247 = vmatprep.mubr.msk.f32.mxu1 %vm4514_vm2, %v4513_v63 }
 0xe44   :  { %4255 = vmatprep.subr.mxu1 %v4513_v63 }
 0xe46   :  { %4248 = vmatmul.mubr.msk.f32.vlgmr.msra.gmra.mxu1 %vm311_vm3, %v2556_v36  ;;  %v2728_v38 = vpop.permute.xlu1 %2727  ;;  %v3065_v40 = vpop.permute.xlu0 %3064 }
 0xe47   :  { %4256 = vmatpush3.xpose.msk.msra.mxu1 %vm311_vm3, %v2728_v38  ;;  %4257 = vmatprep.mubr.msk.f32.mxu1 %vm4514_vm2, %v4513_v63 }
 0xe48   :  { %4265 = vmatprep.subr.mxu1 %v4513_v63 }
 0xe4a   :  { %v2893_v39 = vpop.permute.xlu1 %2892  ;;  %4258 = vmatmul.mubr.msk.f32.vlgmr.msra.gmra.mxu1 %vm311_vm3, %v2725_v28  ;;  %v3235_v42 = vpop.permute.xlu0 %3234 }
 0xe4b   :  { %4266 = vmatpush3.xpose.msk.msra.mxu1 %vm311_vm3, %v2895_v16  ;;  %4267 = vmatprep.mubr.msk.f32.mxu1 %vm4514_vm2, %v4513_v63 }
 0xe4c   :  { %4275 = vmatprep.subr.mxu1 %v4513_v63 }
 0xe4e   :  { %4268 = vmatmul.mubr.msk.f32.vlgmr.msra.gmra.mxu1 %vm311_vm3, %v2893_v39  ;;  %v3063_v41 = vpop.permute.xlu1 %3062 }
 0xe4f   :  { %4276 = vmatpush3.xpose.msk.msra.mxu1 %vm311_vm3, %v3065_v40  ;;  %4277 = vmatprep.mubr.msk.f32.mxu1 %vm4514_vm2, %v4513_v63 }
 0xe50   :  { %4285 = vmatprep.subr.mxu1 %v4513_v63 }
 0xe52   :  { %4278 = vmatmul.mubr.msk.f32.vlgmr.msra.gmra.mxu1 %vm311_vm3, %v3063_v41  ;;  %v3233_v43 = vpop.permute.xlu1 %3232 }
 0xe53   :  { %4286 = vmatpush3.xpose.msk.msra.mxu1 %vm311_vm3, %v3235_v42  ;;  %4287 = vmatprep.mubr.msk.f32.mxu1 %vm4514_vm2, %v4513_v63 }
 0xe54   :  { %4295 = vmatprep.subr.bf16.mxu1 %v4513_v63 }
 0xe56   :  { %4288 = vmatmul.mubr.msk.f32.vlgmr.msra.gmra.mxu1 %vm311_vm3, %v3233_v43 }
 0xe57   :  { %4299 = vmatprep.mubr.msk.bf16.mxu1 %vm4514_vm2, %v4513_v63 }
 0xefa   :  { %v2123_v44 = vpop.f32.mrf.mxu0 }
 0xefb   :  { %v2124_v46 = vadd.f32 %v2123_v44, %v4825_v35  ;;  %v2289_v47 = vpop.f32.mrf.mxu1 }
 0xefc   :  { %v2290_v48 = vadd.f32 %v2289_v47, %v4825_v35  ;;  %v4219_v50 = vpop.f32.mrf.mxu0 }
 0xefd   :  { %v4229_v51 = vpop.f32.mrf.mxu1  ;;  %v2127_v52 = vsel %vm311_vm3, %v2124_v46, -inf }
 0xefe   :  { %2128 = vmax.xlane.f32.xlu0 %v2127_v52  ;;  %v2293_v53 = vsel %vm311_vm3, %v2290_v48, -inf }
 0xeff   :  { %2294 = vmax.xlane.f32.xlu1 %v2293_v53 }
 0xf02   :  { %v2459_v54 = vpop.f32.mrf.mxu1 }
 0xf03   :  { %v5140_v55 = vadd.f32 %v2459_v54, %v4825_v35 }
 0xf04   :  { %v4239_v56 = vpop.f32.mrf.mxu1 }
 0xf05   :  { %v2463_v57 = vsel %vm311_vm3, %v5140_v55, -inf }
 0xf06   :  { %v2629_v58 = vpop.f32.mrf.mxu1  ;;  %2464 = vmax.xlane.f32.xlu0 %v2463_v57 }
 0xf07   :  { %v2630_v59 = vadd.f32 %v2629_v58, %v4825_v35 }
 0xf08   :  { %v4249_v60 = vpop.f32.mrf.mxu1 }
 0xf09   :  { %v2633_v61 = vsel %vm311_vm3, %v2630_v59, -inf }
 0xf0a   :  { %v2800_v0 = vpop.f32.mrf.mxu1  ;;  %2634 = vmax.xlane.f32.xlu0 %v2633_v61 }
 0xf0b   :  { %v2801_v1 = vadd.f32 %v2800_v0, %v4890_v13 }
 0xf0c   :  { %v4259_v3 = vpop.f32.mrf.mxu1 }
 0xf0d   :  { %v2804_v4 = vsel %vm311_vm3, %v2801_v1, -inf }
 0xf0e   :  { %v2966_v5 = vpop.f32.mrf.mxu1  ;;  %2805 = vmax.xlane.f32.xlu0 %v2804_v4 }
 0xf0f   :  { %v2967_v6 = vadd.f32 %v2966_v5, %v4890_v13 }
 0xf10   :  { %v4269_v7 = vpop.f32.mrf.mxu1 }
 0xf11   :  { %v2970_v8 = vsel %vm311_vm3, %v2967_v6, -inf }
 0xf12   :  { %2971 = vmax.xlane.f32.xlu1 %v2970_v8  ;;  %v3136_v10 = vpop.f32.mrf.mxu1 }
 0xf13   :  { %v3137_v35 = vadd.f32 %v3136_v10, %v4890_v13 }
 0xf14   :  { %v4279_v11 = vpop.f32.mrf.mxu1 }
 0xf15   :  { %v3140_v17 = vsel %vm311_vm3, %v3137_v35, -inf }
 0xf16   :  { %v3306_v21 = vpop.f32.mrf.mxu1  ;;  %3141 = vmax.xlane.f32.xlu0 %v3140_v17 }
 0xf17   :  { %v3307_v25 = vadd.f32 %v3306_v21, %v4890_v13 }
 0xf18   :  { %v4289_v22 = vpop.f32.mrf.mxu1 }
 0xf19   :  { %v3310_v26 = vsel %vm311_vm3, %v3307_v25, -inf }
 0xf23   :  { %2138 = vrot.lane.b32.xlu1 %v5067_v23, %s4522_s13 }
 0xf47   :  { %3311 = vmax.xlane.f32.xlu1 %v3310_v26 }
 0xf58   :  { %2474 = vrot.lane.b32.xlu1 %v5067_v23, %s4525_s26 }
 0xf5c   :  { %2644 = vrot.lane.b32.xlu1 %v5067_v23, %s4524_s24 }
 0xf60   :  { %2815 = vrot.lane.b32.xlu1 %v5079_v20, %s4522_s13 }
 0xf87   :  { %v2129_v27 = vpop.xlane.xlu0 %2128 }
 0xf88   :  { %v2130_v29 = vsub.f32 %v2124_v46, %v2129_v27  ;;  %v2295_v28 = vpop.xlane.xlu1 %2294 }
 0xf89   :  { %v2296_v30 = vsub.f32 %v2290_v48, %v2295_v28 }
 0xf8a   :  { %v2131_v31 = vmul.f32 1.442695, %v2130_v29 }
 0xf8b   :  { %v2297_v32 = vmul.f32 1.442695, %v2296_v30 }
 0xf8c   :  { %4430 = vpow2.f32 %v2131_v31 }
 0xf8d   :  { %4432 = vpow2.f32 %v2297_v32 }
 0xf8f   :  { %v2465_v13 = vpop.xlane.xlu0 %2464 }
 0xf90   :  { %v2466_v44 = vsub.f32 %v5140_v55, %v2465_v13 }
 0xf92   :  { %v2467_v47 = vmul.f32 1.442695, %v2466_v44 }
 0xf93   :  { %v2635_v34 = vpop.xlane.xlu0 %2634 }
 0xf94   :  { %v2636_v15 = vsub.f32 %v2630_v59, %v2635_v34 }
 0xf96   :  { %v2637_v36 = vmul.f32 1.442695, %v2636_v15 }
 0xf97   :  { %v2806_v46 = vpop.xlane.xlu0 %2805 }
 0xf98   :  { %4434 = vpow2.f32 %v2637_v36  ;;  %v2807_v48 = vsub.f32 %v2801_v1, %v2806_v46 }
 0xf99   :  { %v4431_v37 = vpop.eup %4430  ;;  %4436 = vpow2.f32 %v2467_v47 }
 0xf9a   :  { %v5162_v16 = vpop.eup %4432  ;;  %v2133_v38 = vsel %vm311_vm3, %v4431_v37, 0.0  ;;  %v2808_v51 = vmul.f32 1.442695, %v2807_v48 }
 0xf9b   :  { %v2972_v39 = vpop.xlane.xlu1 %2971  ;;  %2134 = vadd.xlane.f32.xlu0 %v2133_v38  ;;  %v2299_v40 = vsel %vm311_vm3, %v5162_v16, 0.0 }
 0xf9c   :  { %2300 = vadd.xlane.f32.xlu1 %v2299_v40  ;;  %4438 = vpow2.f32 %v2808_v51  ;;  %v2973_v53 = vsub.f32 %v2967_v6, %v2972_v39 }
 0xf9e   :  { %v2974_v56 = vmul.f32 1.442695, %v2973_v53 }
 0xf9f   :  { %v2139_v41 = vpop.permute.xlu1 %2138  ;;  %v3142_v50 = vpop.xlane.xlu0 %3141 }
 0xfa0   :  { %4221 = vmatpush3.msra.mxu0 %v2139_v41  ;;  %v3143_v52 = vsub.f32 %v3137_v35, %v3142_v50 }
 0xfa1   :  { %4230 = vmatprep.subr.mxu0 %v4513_v63 }
 0xfa2   :  { %v3144_v54 = vmul.f32 1.442695, %v3143_v52 }
 0xfa4   :  { %4440 = vpow2.f32 %v3144_v54 }
 0xfa5   :  { %v5168_v42 = vpop.eup %4434  ;;  %4442 = vpow2.f32 %v2974_v56 }
 0xfa6   :  { %v2639_v43 = vsel %vm311_vm3, %v5168_v42, 0.0  ;;  %v4437_v57 = vpop.eup %4436 }
 0xfa7   :  { %2640 = vadd.xlane.f32.xlu1 %v2639_v43 }
 0xfa9   :  { %v5178_v55 = vpop.eup %4438 }
 0xfaa   :  { %v2810_v61 = vsel %vm311_vm3, %v5178_v55, 0.0 }
 0xfb1   :  { %2304 = vrot.lane.b32.xlu0 %v5067_v23, %s4523_s1  ;;  %v2469_v23 = vsel %vm311_vm3, %v4437_v57, 0.0  ;;  %v5182_v0 = vpop.eup %4440 }
 0xfb2   :  { %v3146_v1 = vsel %vm311_vm3, %v5182_v0, 0.0  ;;  %v4443_v3 = vpop.eup %4442 }
 0xfb3   :  { %v2976_v4 = vsel %vm311_vm3, %v4443_v3, 0.0 }
 0xfb8   :  { %2981 = vrot.lane.b32.xlu1 %v5079_v20, %s4523_s1 }
 0xfd0   :  { %v3312_v58 = vpop.xlane.xlu1 %3311  ;;  %2470 = vadd.xlane.f32.xlu0 %v2469_v23  ;;  %v4370_v23 = vld [vmem:[%s5349_s5 + $0x18] sm:$0xff]  }
 0xfd1   :  { %v3313_v59 = vsub.f32 %v3307_v25, %v3312_v58  ;;  %4296 = vmatpush3.bf16.msra.mxu1 %v4370_v23  ;;  %v4371_v58 = vld [vmem:[%s5349_s5 + $0x10] sm:$0xff]  }
 0xfd2   :  { %4297 = vmatprep.subr.bf16.mxu1 %v4513_v63 }
 0xfd3   :  { %v3314_v60 = vmul.f32 1.442695, %v3313_v59 }
 0xfd4   :  { %2811 = vadd.xlane.f32.xlu0 %v2810_v61  ;;  %v2475_v7 = vpop.permute.xlu1 %2474 }
 0xfd5   :  { %4444 = vpow2.f32 %v3314_v60  ;;  %4298 = vmatpush3.bf16.msra.mxu1 %v4371_v58 }
 0xfd6   :  { %4311 = vmatprep.subr.bf16.mxu1 %v4513_v63 }
 0xfd8   :  { %3147 = vadd.xlane.f32.xlu0 %v3146_v1  ;;  %v2645_v8 = vpop.permute.xlu1 %2644 }
 0xfdc   :  { %2977 = vadd.xlane.f32.xlu1 %v2976_v4  ;;  %v2816_v10 = vpop.permute.xlu1 %2815 }
 0xfe2   :  { %v5187_v5 = vpop.eup %4444 }
 0xfe3   :  { %v3316_v6 = vsel %vm311_vm3, %v5187_v5, 0.0 }
 0xfe4   :  { %3317 = vadd.xlane.f32.xlu0 %v3316_v6 }
 0xfed   :  { %3321 = vrot.lane.b32.xlu1 %v5079_v20, %s4524_s24 }
 0xffa   :  { %3151 = vrot.lane.b32.xlu0 %v5079_v20, %s4525_s26 }
0x1024   :  { %v2135_v35 = vpop.xlane.xlu0 %2134 }
0x1025   :  { %4446 = vrcp.f32 %v2135_v35  ;;  %v2301_v11 = vpop.xlane.xlu1 %2300 }
0x1026   :  { %4448 = vrcp.f32 %v2301_v11 }
0x1028   :  { %v2305_v25 = vpop.permute.xlu0 %2304 }
0x1030   :  { %v2641_v26 = vpop.xlane.xlu1 %2640 }
0x1032   :  { %v4447_v17 = vpop.eup %4446 }
0x1033   :  { %v2137_v21 = vmul.f32 %v4447_v17, %v4431_v37  ;;  %v4449_v22 = vpop.eup %4448 }
0x1034   :  { %v2303_v20 = vmul.f32 %v4449_v22, %v5162_v16  ;;  %v2982_v28 = vpop.permute.xlu1 %2981 }
0x1035   :  { %4223 = vmatmul.mubr.msk.f32.vlgmr.msra.gmra.mxu0 %vm311_vm3, %v2137_v21  ;;  %v3408_v21 = vrot.slane %v5063_v18, %v1670_v9 }
0x1036   :  { %4231 = vmatpush3.msra.mxu0 %v2305_v25  ;;  %4232 = vmatprep.mubr.msk.f32.mxu0 %vm4514_vm2, %v4513_v63 }
0x1037   :  { %4240 = vmatprep.subr.mxu0 %v4513_v63 }
0x1039   :  { %4233 = vmatmul.mubr.msk.f32.vlgmr.msra.gmra.mxu0 %vm311_vm3, %v2303_v20 }
0x103a   :  { %4241 = vmatpush3.msra.mxu0 %v2475_v7  ;;  %4242 = vmatprep.mubr.msk.f32.mxu0 %vm4514_vm2, %v4513_v63 }
0x103b   :  { %4250 = vmatprep.subr.mxu0 %v4513_v63 }
0x1059   :  { %v2471_v27 = vpop.xlane.xlu0 %2470 }
0x105a   :  { %4450 = vrcp.f32 %v2471_v27 }
0x105b   :  { %4452 = vrcp.f32 %v2641_v26 }
0x105d   :  { %v2812_v29 = vpop.xlane.xlu0 %2811 }
0x105e   :  { %4454 = vrcp.f32 %v2812_v29 }
0x1061   :  { %v3148_v30 = vpop.xlane.xlu0 %3147 }
0x1065   :  { %v2978_v31 = vpop.xlane.xlu1 %2977 }
0x1066   :  { %4456 = vrcp.f32 %v2978_v31 }
0x1067   :  { %v4451_v32 = vpop.eup %4450  ;;  %4458 = vrcp.f32 %v3148_v30 }
0x1068   :  { %v2473_v13 = vmul.f32 %v4451_v32, %v4437_v57  ;;  %v4453_v34 = vpop.eup %4452 }
0x1069   :  { %v2643_v15 = vmul.f32 %v4453_v34, %v5168_v42  ;;  %v3322_v43 = vpop.permute.xlu1 %3321 }
0x106a   :  { %4243 = vmatmul.mubr.msk.f32.vlgmr.msra.gmra.mxu0 %vm311_vm3, %v2473_v13 }
0x106b   :  { %4251 = vmatpush3.msra.mxu0 %v2645_v8  ;;  %4252 = vmatprep.mubr.msk.f32.mxu0 %vm4514_vm2, %v4513_v63  ;;  %v4455_v36 = vpop.eup %4454 }
0x106c   :  { %4260 = vmatprep.subr.mxu0 %v4513_v63  ;;  %v2814_v16 = vmul.f32 %v4455_v36, %v5178_v55 }
0x106d   :  { %v3318_v37 = vpop.xlane.xlu0 %3317 }
0x106e   :  { %4460 = vrcp.f32 %v3318_v37  ;;  %4253 = vmatmul.mubr.msk.f32.vlgmr.msra.gmra.mxu0 %vm311_vm3, %v2643_v15 }
0x106f   :  { %4261 = vmatpush3.msra.mxu0 %v2816_v10  ;;  %4262 = vmatprep.mubr.msk.f32.mxu0 %vm4514_vm2, %v4513_v63 }
0x1070   :  { %4270 = vmatprep.subr.mxu0 %v4513_v63 }
0x1071   :  { %v3152_v41 = vpop.permute.xlu0 %3151 }
0x1072   :  { %4263 = vmatmul.mubr.msk.f32.vlgmr.msra.gmra.mxu0 %vm311_vm3, %v2814_v16 }
0x1073   :  { %v4457_v38 = vpop.eup %4456  ;;  %4271 = vmatpush3.msra.mxu0 %v2982_v28  ;;  %4272 = vmatprep.mubr.msk.f32.mxu0 %vm4514_vm2, %v4513_v63 }
0x1074   :  { %4280 = vmatprep.subr.mxu0 %v4513_v63  ;;  %v2980_v39 = vmul.f32 %v4457_v38, %v4443_v3  ;;  %v4459_v40 = vpop.eup %4458 }
0x1075   :  { %v3150_v42 = vmul.f32 %v4459_v40, %v5182_v0  ;;  %v4373_v40 = vld [vmem:[%s5350_s6 + $0x10] sm:$0xff]  }
0x1076   :  { %4273 = vmatmul.mubr.msk.f32.vlgmr.msra.gmra.mxu0 %vm311_vm3, %v2980_v39 }
0x1077   :  { %4281 = vmatpush3.msra.mxu0 %v3152_v41  ;;  %4282 = vmatprep.mubr.msk.f32.mxu0 %vm4514_vm2, %v4513_v63 }
0x1078   :  { %4290 = vmatprep.subr.mxu0 %v4513_v63 }
0x107a   :  { %4283 = vmatmul.mubr.msk.f32.vlgmr.msra.gmra.mxu0 %vm311_vm3, %v3150_v42 }
0x107b   :  { %v4461_v44 = vpop.eup %4460  ;;  %4291 = vmatpush3.msra.mxu0 %v3322_v43  ;;  %4292 = vmatprep.mubr.msk.f32.mxu0 %vm4514_vm2, %v4513_v63 }
0x107c   :  { %v3320_v46 = vmul.f32 %v4461_v44, %v5187_v5  ;;  %4303 = vmatprep.subr.bf16.mxu0 %v4513_v63 }
0x107e   :  { %4293 = vmatmul.mubr.msk.f32.vlgmr.msra.gmra.mxu0 %vm311_vm3, %v3320_v46 }
0x107f   :  { %4307 = vmatprep.mubr.msk.bf16.mxu0 %vm4514_vm2, %v4513_v63 }
0x10f5   :  { %v2210_v47 = vpop.f32.mrf.mxu0 }
0x10f6   :  { %2214 = vst.msk [vmem:[#allocation3] sm:$0xff] %vm311_vm3, %v2210_v47 }
0x10f7   :  { %v4224_v48 = vpop.f32.mrf.mxu0 }
0x10f9   :  { %v2376_v50 = vpop.f32.mrf.mxu0 }
0x10fa   :  { %2381 = vrot.lane.b32.xlu0 %v2376_v50, %s4526_s19 }
0x10fb   :  { %v4234_v51 = vpop.f32.mrf.mxu0 }
0x10fc   :  { %v3496_v51 = vrot.slane %v5063_v18, %v1758_v45  ;;  %v4374_v45 = vld [vmem:[%s5351_s7 + $0x38] sm:$0xff]  }
0x112a   :  { %v2546_v52 = vpop.f32.mrf.mxu0 }
0x112b   :  { %2551 = vrot.lane.b32.xlu0 %v2546_v52, %s4527_s28 }
0x112c   :  { %v4244_v53 = vpop.f32.mrf.mxu0 }
0x112e   :  { %v2716_v54 = vpop.f32.mrf.mxu0 }
0x112f   :  { %2721 = vrot.lane.b32.xlu0 %v2716_v54, %s4528_s15 }
0x1130   :  { %v4254_v56 = vpop.f32.mrf.mxu0 }
0x1131   :  { %v3502_v56 = vrot.slane %v5063_v18, %v1764_v49  ;;  %v4375_v49 = vld [vmem:[%s5351_s7 + $0x30] sm:$0xff]  }
0x1132   :  { %v2887_v57 = vpop.f32.mrf.mxu0 }
0x1133   :  { %2891 = vst.msk [vmem:[#allocation3 + $0x8] sm:$0xff] %vm311_vm3, %v2887_v57 }
0x1134   :  { %v4264_v55 = vpop.f32.mrf.mxu0 }
0x1136   :  { %v3053_v59 = vpop.f32.mrf.mxu0 }
0x1137   :  { %3058 = vrot.lane.b32.xlu1 %v3053_v59, %s4526_s19  ;;  %v4376_v59 = vld [vmem:[%s5351_s7 + $0x28] sm:$0xff]  }
0x1138   :  { %v4274_v60 = vpop.f32.mrf.mxu0 }
0x1139   :  { %v4377_v60 = vld [vmem:[%s5351_s7 + $0x20] sm:$0xff]  }
0x113a   :  { %v3223_v61 = vpop.f32.mrf.mxu0 }
0x113b   :  { %3228 = vrot.lane.b32.xlu1 %v3223_v61, %s4527_s28  ;;  %v3509_v61 = vrot.slane %v5063_v18, %v1771_v62 }
0x113c   :  { %v4284_v0 = vpop.f32.mrf.mxu0 }
0x113e   :  { %v3393_v1 = vpop.f32.mrf.mxu0 }
0x113f   :  { %3398 = vrot.lane.b32.xlu1 %v3393_v1, %s4528_s15 }
0x1140   :  { %v4294_v3 = vpop.f32.mrf.mxu0 }
0x116c   :  { %v2382_v4 = vpop.permute.xlu0 %2381 }
0x116d   :  { %2384 = vst.msk [vmem:[#allocation3] sm:$0xff] %vm644_vm4, %v2382_v4 }
0x119d   :  { %v2552_v5 = vpop.permute.xlu0 %2551 }
0x119e   :  { %2554 = vst.msk [vmem:[#allocation3] sm:$0xff] %vm815_vm5, %v2552_v5 }
0x11a1   :  { %v2722_v6 = vpop.permute.xlu0 %2721 }
0x11a2   :  { %2724 = vst.msk [vmem:[#allocation3] sm:$0xff] %vm986_vm6, %v2722_v6 }
0x11a9   :  { %v3059_v7 = vpop.permute.xlu1 %3058  ;;  %v3402_v35 = vld [vmem:[#allocation3] sm:$0xff] }
0x11aa   :  { %3061 = vst.msk [vmem:[#allocation3 + $0x8] sm:$0xff] %vm644_vm4, %v3059_v7 }
0x11ad   :  { %v3229_v8 = vpop.permute.xlu1 %3228 }
0x11ae   :  { %3231 = vst.msk [vmem:[#allocation3 + $0x8] sm:$0xff] %vm815_vm5, %v3229_v8 }
0x11b1   :  { %v3399_v10 = vpop.permute.xlu1 %3398 }
0x11b2   :  { %3401 = vst.msk [vmem:[#allocation3 + $0x8] sm:$0xff] %vm986_vm6, %v3399_v10 }
0x11b9   :  { %v3403_v11 = vld [vmem:[#allocation3 + $0x8] sm:$0xff] }
0x11ba   :  { %v3404_v17 = vpack.c.bf16 %v3403_v11, %v3402_v35 }
0x11bc   :  { %4300 = vmatmul.mubr.msk.bf16.vlgmr.msra.gmra.mxu1 %vm166_vm1, %v3404_v17 }
0x11bd   :  { %4319 = vmatprep.mubr.msk.bf16.mxu1 %vm4514_vm2, %v4513_v63  ;;  %4312 = vmatpush3.bf16.msra.mxu1 %v4374_v45 }
0x11be   :  { %4313 = vmatprep.subr.bf16.mxu1 %v4513_v63 }
0x11c1   :  { %4314 = vmatpush3.bf16.msra.mxu1 %v4375_v49  ;;  %v3688_v49 = vrot.slane %v5063_v18, %v1951_v2  ;;  %v4380_v2 = vld [vmem:[%s5354_s10 + $0x8] sm:$0xff]   ;;  %s4529_s10 = smov [#allocation6]  }
0x11c2   :  { %4315 = vmatprep.subr.bf16.mxu1 %v4513_v63  ;;  %s3841_s21 = sshll.u32 %s4529_s10, 4  ;;  %s3842_s21 = int_to_ptr.vmem [resolvable:$true] %s3841_s21 }
0x11c3   :  { %s4488_s22 = scalar_lea.vmem %s3842_s21, 32  ;;  %p4493_p6 = scmp.lt.s32.totalorder %s3842_s21, %s3842_s21 }
0x11c4   :  { %p4489_p5 = scmp.ne.s32.totalorder %s3842_s21, %s4488_s22  ;;  %p4494_p7 = scmp.lt.s32.totalorder %s4488_s22, %s4488_s22 }
0x11c5   :  { %4316 = vmatpush3.bf16.msra.mxu1 %v4376_v59 }
0x11c6   :  { %4317 = vmatprep.subr.bf16.mxu1 %v4513_v63  ;;  %p4495_p8 = por %p4494_p7, %p4493_p6 }
0x11c8   :  { %p4496_p9 = pnand %p4495_p8, %p4489_p5 }
0x11c9   :  { %4318 = vmatpush3.bf16.msra.mxu1 %v4377_v60 }
0x127c   :  { %v3458_v22 = vpop.f32.mrf.mxu1 }
0x127d   :  { %v3459_v25 = vadd.f32 %v3458_v22, %v3408_v21 }
0x127e   :  { %v4301_v20 = vpop.f32.mrf.mxu1 }
0x127f   :  { %v3465_v26 = vadd.f32 %v3459_v25, %v5051_v12 }
0x1280   :  { %v3461_v27 = vpop.f32.mrf.mxu1 }
0x1281   :  { %v3462_v29 = vadd.f32 %v3461_v27, %v3408_v21  ;;  %v3467_v28 = vsel %vm166_vm1, %v3465_v26, 0.0 }
0x1282   :  { %3468 = vadd.xlane.f32.xlu0 %v3467_v28  ;;  %v4302_v30 = vpop.f32.mrf.mxu1 }
0x1283   :  { %v3466_v31 = vadd.f32 %v3462_v29, %v5053_v14  ;;  %v4372_v14 = vld [vmem:[%s5350_s6 + $0x18] sm:$0xff]  }
0x1284   :  { %4304 = vmatpush3.bf16.msra.mxu0 %v4372_v14 }
0x1285   :  { %v3470_v32 = vsel %vm166_vm1, %v3466_v31, 0.0  ;;  %4305 = vmatprep.subr.bf16.mxu0 %v4513_v63 }
0x1286   :  { %3471 = vadd.xlane.f32.xlu1 %v3470_v32 }
0x1288   :  { %4306 = vmatpush3.bf16.msra.mxu0 %v4373_v40 }
0x1289   :  { %4323 = vmatprep.subr.bf16.mxu0 %v4513_v63 }
0x130b   :  { %v3469_v13 = vpop.xlane.xlu0 %3468 }
0x130c   :  { %v3473_v34 = vmul.f32 0.03125, %v3469_v13 }
0x130e   :  { %v3475_v15 = vsub.f32 %v3465_v26, %v3473_v34  ;;  %v3588_v34 = vrot.slane %v5063_v18, %v1850_v33 }
0x130f   :  { %v3472_v9 = vpop.xlane.xlu1 %3471 }
0x1310   :  { %v3474_v36 = vmul.f32 0.03125, %v3472_v9  ;;  %v3477_v37 = vmul.f32 %v3475_v15, %v3475_v15 }
0x1312   :  { %v3476_v16 = vsub.f32 %v3466_v31, %v3474_v36  ;;  %v3479_v12 = vsel %vm166_vm1, %v3477_v37, 0.0 }
0x1313   :  { %3480 = vadd.xlane.f32.xlu0 %v3479_v12 }
0x1314   :  { %v3478_v38 = vmul.f32 %v3476_v16, %v3476_v16 }
0x1316   :  { %v3482_v39 = vsel %vm166_vm1, %v3478_v38, 0.0 }
0x1317   :  { %3483 = vadd.xlane.f32.xlu0 %v3482_v39 }
0x139c   :  { %v3481_v41 = vpop.xlane.xlu0 %3480 }
0x139d   :  { %v3485_v42 = vmul.f32 0.03125, %v3481_v41 }
0x139f   :  { %v3487_v43 = vadd.f32 1e-12, %v3485_v42 }
0x13a0   :  { %v3484_v44 = vpop.xlane.xlu0 %3483 }
0x13a1   :  { %4462 = vrsqrt.f32 %v3487_v43  ;;  %v3486_v46 = vmul.f32 0.03125, %v3484_v44 }
0x13a3   :  { %v3488_v47 = vadd.f32 1e-12, %v3486_v46 }
0x13a5   :  { %4464 = vrsqrt.f32 %v3488_v47 }
0x13ae   :  { %v4463_v48 = vpop.eup %4462 }
0x13af   :  { %v3491_v50 = vmul.f32 %v4463_v48, %v3475_v15 }
0x13b1   :  { %v3497_v54 = vmul.f32 %v3496_v51, %v3491_v50 }
0x13b2   :  { %v4465_v52 = vpop.eup %4464 }
0x13b3   :  { %v3492_v53 = vmul.f32 %v4465_v52, %v3476_v16  ;;  %v3503_v23 = vadd.f32 %v3502_v56, %v3497_v54  ;;  %v4378_v52 = vld [vmem:[%s5353_s9 + $0x8] sm:$0xff]  }
0x13b5   :  { %v3498_v57 = vmul.f32 %v3496_v51, %v3492_v53  ;;  %v4379_v53 = vld [vmem:[%s5353_s9] sm:$0xff]  }
0x13b7   :  { %v3504_v55 = vadd.f32 %v3502_v56, %v3498_v57 }
0x13b9   :  { %v3505_v58 = vpack.c.bf16 %v3504_v55, %v3503_v23 }
0x13bb   :  { %4308 = vmatmul.mubr.msk.bf16.vlgmr.msra.gmra.mxu0 %vm166_vm1, %v3505_v58 }
0x13bc   :  { %4327 = vmatprep.mubr.msk.bf16.mxu0 %vm4514_vm2, %v4513_v63  ;;  %4324 = vmatpush3.bf16.msra.mxu0 %v4378_v52 }
0x13bd   :  { %4325 = vmatprep.subr.bf16.mxu0 %v4513_v63 }
0x13c0   :  { %4326 = vmatpush3.bf16.msra.mxu0 %v4379_v53 }
0x13c1   :  { %4331 = vmatprep.subr.bf16.mxu0 %v4513_v63 }
0x147b   :  { %v3559_v0 = vpop.f32.mrf.mxu0 }
0x147c   :  { %v3560_v1 = vadd.f32 %v3559_v0, %v3509_v61 }
0x147d   :  { %v4309_v3 = vpop.f32.mrf.mxu0 }
0x147e   :  { %v3566_v4 = vmul.f32 %v3560_v1, %v3560_v1  ;;  %v3694_v3 = vrot.slane %v5063_v18, %v1957_v24  ;;  %v3985_v24 = vld [vmem:[%s5355_s11] ss:$0 sm:$0xff] }
0x147f   :  { %v3562_v5 = vpop.f32.mrf.mxu0 }
0x1480   :  { %v3568_v6 = vmul.f32 %v3566_v4, %v3560_v1  ;;  %v3563_v7 = vadd.f32 %v3562_v5, %v3509_v61 }
0x1481   :  { %v4310_v8 = vpop.f32.mrf.mxu0 }
0x1482   :  { %v3570_v10 = vmul.f32 0.044715, %v3568_v6  ;;  %v3567_v35 = vmul.f32 %v3563_v7, %v3563_v7 }
0x1484   :  { %v3572_v11 = vadd.f32 %v3570_v10, %v3560_v1  ;;  %v3569_v17 = vmul.f32 %v3567_v35, %v3563_v7 }
0x1486   :  { %v3574_v21 = vmul.f32 0.7978846, %v3572_v11  ;;  %v3571_v22 = vmul.f32 0.044715, %v3569_v17 }
0x1488   :  { %4466 = vtanh.f32 %v3574_v21  ;;  %v3573_v25 = vadd.f32 %v3571_v22, %v3563_v7 }
0x148a   :  { %v3575_v20 = vmul.f32 0.7978846, %v3573_v25 }
0x148c   :  { %4468 = vtanh.f32 %v3575_v20 }
0x1495   :  { %v4467_v26 = vpop.eup %4466 }
0x1496   :  { %v3578_v62 = vadd.f32 1.0, %v4467_v26 }
0x1498   :  { %v3580_v29 = vmul.f32 0.5, %v3578_v62 }
0x1499   :  { %v4469_v27 = vpop.eup %4468 }
0x149a   :  { %v3579_v28 = vadd.f32 1.0, %v4469_v27  ;;  %v3582_v31 = vmul.f32 %v3580_v29, %v3560_v1 }
0x149c   :  { %v3581_v30 = vmul.f32 0.5, %v3579_v28 }
0x149e   :  { %v3583_v32 = vmul.f32 %v3581_v30, %v3563_v7 }
0x14a0   :  { %v3584_v13 = vpack.c.bf16 %v3583_v32, %v3582_v31 }
0x14a2   :  { %4320 = vmatmul.mubr.msk.bf16.vlgmr.msra.gmra.mxu1 %vm1876_vm7, %v3584_v13 }
0x1562   :  { %v3650_v15 = vpop.f32.mrf.mxu1 }
0x1563   :  { %v3651_v9 = vadd.f32 %v3650_v15, %v3588_v34 }
0x1564   :  { %v4321_v36 = vpop.f32.mrf.mxu1 }
0x1565   :  { %v3657_v37 = vadd.f32 %v3651_v9, %v3503_v23 }
0x1566   :  { %v3653_v16 = vpop.f32.mrf.mxu1 }
0x1567   :  { %v3654_v12 = vadd.f32 %v3653_v16, %v3588_v34  ;;  %v3659_v38 = vsel %vm166_vm1, %v3657_v37, 0.0 }
0x1568   :  { %3660 = vadd.xlane.f32.xlu1 %v3659_v38  ;;  %v4322_v39 = vpop.f32.mrf.mxu1 }
0x1569   :  { %v3658_v14 = vadd.f32 %v3654_v12, %v3504_v55 }
0x156b   :  { %v3662_v40 = vsel %vm166_vm1, %v3658_v14, 0.0 }
0x156c   :  { %3663 = vadd.xlane.f32.xlu0 %v3662_v40 }
0x15f1   :  { %v3661_v41 = vpop.xlane.xlu1 %3660 }
0x15f2   :  { %v3665_v42 = vmul.f32 0.03125, %v3661_v41 }
0x15f4   :  { %v3667_v43 = vsub.f32 %v3657_v37, %v3665_v42 }
0x15f5   :  { %v3664_v44 = vpop.xlane.xlu0 %3663 }
0x15f6   :  { %v3666_v46 = vmul.f32 0.03125, %v3664_v44  ;;  %v3669_v33 = vmul.f32 %v3667_v43, %v3667_v43 }
0x15f8   :  { %v3668_v47 = vsub.f32 %v3658_v14, %v3666_v46  ;;  %v3671_v48 = vsel %vm166_vm1, %v3669_v33, 0.0 }
0x15f9   :  { %3672 = vadd.xlane.f32.xlu1 %v3671_v48 }
0x15fa   :  { %v3670_v50 = vmul.f32 %v3668_v47, %v3668_v47 }
0x15fc   :  { %v3674_v51 = vsel %vm166_vm1, %v3670_v50, 0.0 }
0x15fd   :  { %3675 = vadd.xlane.f32.xlu0 %v3674_v51 }
0x1682   :  { %v3673_v54 = vpop.xlane.xlu1 %3672 }
0x1683   :  { %v3677_v56 = vmul.f32 0.03125, %v3673_v54 }
0x1685   :  { %v3679_v57 = vadd.f32 1e-12, %v3677_v56 }
0x1686   :  { %v3676_v23 = vpop.xlane.xlu0 %3675 }
0x1687   :  { %4470 = vrsqrt.f32 %v3679_v57  ;;  %v3678_v55 = vmul.f32 0.03125, %v3676_v23 }
0x1689   :  { %v3680_v58 = vadd.f32 1e-12, %v3678_v55 }
0x168b   :  { %4472 = vrsqrt.f32 %v3680_v58 }
0x1694   :  { %v4471_v45 = vpop.eup %4470 }
0x1695   :  { %v3683_v59 = vmul.f32 %v4471_v45, %v3667_v43 }
0x1697   :  { %v3689_v0 = vmul.f32 %v3688_v49, %v3683_v59 }
0x1698   :  { %v4473_v60 = vpop.eup %4472 }
0x1699   :  { %v3684_v61 = vmul.f32 %v4473_v60, %v3668_v47  ;;  %v3695_v5 = vadd.f32 %v3694_v3, %v3689_v0 }
0x169b   :  { %v3690_v1 = vmul.f32 %v3688_v49, %v3684_v61 }
0x169d   :  { %v3696_v4 = vadd.f32 %v3694_v3, %v3690_v1 }
0x169f   :  { %v3698_v6 = vrot.slane %v3696_v4, 7 }
0x16a1   :  { %v3701_v7 = vsel %vm3700_vm8, %v3695_v5, %v3698_v6 }
0x16a2   :  { %v3702_v8 = vpack.c.bf16 %v3701_v7, %v3701_v7 }
0x16a4   :  { %4328 = vmatmul.mubr.msk.bf16.vlgmr.msra.gmra.mxu0 %vm166_vm1, %v3702_v8 }
0x16a5   :  { %4335 = vmatprep.mubr.msk.bf16.mxu0 %vm4514_vm2, %v4513_v63  ;;  %4332 = vmatpush3.bf16.msra.mxu0 %v4380_v2 }
0x16a6   :  { %4333 = vmatprep.subr.bf16.mxu0 %v4513_v63  ;;  %v3989_v63 = vld [vmem:[%s5355_s11 + $0x1] ss:$0 sm:$0xff] }
0x16a9   :  { %4334 = vmatpush3.bf16.msra.mxu0 %v4381_v19 }
0x1764   :  { %v3761_v18 = vpop.f32.mrf.mxu0 }
0x1765   :  { %v3762_v10 = vadd.f32 %v3985_v24, %v3761_v18 }
0x1766   :  { %v4329_v35 = vpop.f32.mrf.mxu0 }
0x1767   :  { %4474 = vtanh.f32 %v3762_v10 }
0x1768   :  { %v3764_v11 = vpop.f32.mrf.mxu0 }
0x176a   :  { %v4330_v17 = vpop.f32.mrf.mxu0 }
0x1774   :  { %v4475_v21 = vpop.eup %4474 }
0x1775   :  { %v3768_v22 = vpack.c.bf16 %v4475_v21, %v4475_v21 }
0x1777   :  { %4336 = vmatmul.mubr.msk.bf16.vlgmr.msra.gmra.mxu0 %vm166_vm1, %v3768_v22 }
0x1837   :  { %v3827_v25 = vpop.f32.mrf.mxu0 }
0x1838   :  { %v3828_v20 = vadd.f32 %v3989_v63, %v3827_v25 }
0x1839   :  { %v4337_v26 = vpop.f32.mrf.mxu0 }
0x183a   :  { %3833 = vst [vmem:[#allocation6] sm:$0x3] %v3828_v20  }
0x183b   :  { %v3830_v62 = vpop.f32.mrf.mxu0 }
0x183c   :  { %4499 = shalt.err (!%p4496_p9)
}
0x183d   :  { %s4530_s0 = smov 1   ;;  %v4338_v27 = vpop.f32.mrf.mxu0 }
0x183e   :  { %3847 = dma.vmem_to_hbm [thread:$0]  %s3842_s21, 32, %s5356_s12, [#allocation7], %s4527_s28, %s4527_s28, %s4530_s0  }
0x183f   :  { %4510 = dma.done.wait [#allocation7], 32  }
0x1840   :  { %4511 = vsyncadd [#allocation7], 4294967264 }
0x1841   :  { %3851 = vsyncpa [#allocation7], 1 }

</bundles_post_ra>
